<compile_context>
chip_gen: v5e
topology: v5e:2x2
jax: 0.10.0
libtpu: 0.0.40
codegen_flags: <defaults>
</compile_context>

<pallas_src>
import functools

import jax
import jax.numpy as jnp
from jax import lax
from jax.experimental import pallas as pl
from jax.experimental.pallas import tpu as pltpu


def attn_block_kernel(x_ref, gmat_ref, gamma_ref, beta_ref,
                      wqkv_ref, bqkv_ref, wp_ref, bp_ref,
                      o_ref,
                      q_sc, k_sc, v_sc,
                      *, eps, group_size, chunk, sum_col):
    qi = pl.program_id(1)
    hw, c = x_ref.shape[1], x_ref.shape[2]
    cp = q_sc.shape[1]
    tq = o_ref.shape[1]
    n_chunks = hw // chunk

    # ---------------- once per batch (first query tile) ----------------------
    @pl.when(qi == 0)
    def _():
        gmat = gmat_ref[...]                                    # (C, G) f32
        n = float(hw * group_size)

        # GroupNorm pass 1: per-channel sums -> per-group mean.
        def sum_body(ci, acc):
            r0 = pl.multiple_of(ci * chunk, chunk)
            xb = x_ref[0, pl.ds(r0, chunk), :]                  # (chunk, C)
            return acc + jnp.sum(xb, axis=0, keepdims=True)
        s_c = lax.fori_loop(0, n_chunks, sum_body,
                            jnp.zeros((1, c), jnp.float32))
        mean_g = jnp.dot(s_c, gmat, preferred_element_type=jnp.float32) / n
        mean_c = lax.dot_general(                               # broadcast back
            mean_g, gmat, dimension_numbers=(((1,), (1,)), ((), ())),
            preferred_element_type=jnp.float32)                 # (1, C)

        # GroupNorm pass 2: centered second moment (no cancellation).
        def var_body(ci, acc):
            r0 = pl.multiple_of(ci * chunk, chunk)
            d = x_ref[0, pl.ds(r0, chunk), :] - mean_c
            return acc + jnp.sum(d * d, axis=0, keepdims=True)
        ssd_c = lax.fori_loop(0, n_chunks, var_body,
                              jnp.zeros((1, c), jnp.float32))
        var_g = jnp.dot(ssd_c, gmat, preferred_element_type=jnp.float32) / n
        inv_g = lax.rsqrt(var_g + eps)
        inv_c = lax.dot_general(
            inv_g, gmat, dimension_numbers=(((1,), (1,)), ((), ())),
            preferred_element_type=jnp.float32)                 # (1, C)

        scale = inv_c * gamma_ref[...]                          # gamma folded in
        shift = beta_ref[...] - mean_c * scale

        # Chunked fused q/k/v projection: only a (chunk, 3Cp) slab is live.
        wqkv = wqkv_ref[...]                                    # (C, 3Cp) bf16
        bqkv = bqkv_ref[...]                                    # (1, 3Cp) f32

        @pl.loop(0, n_chunks)
        def _(ci):
            r0 = pl.multiple_of(ci * chunk, chunk)
            xb = x_ref[0, pl.ds(r0, chunk), :]                  # (chunk, C) f32
            hb = (xb * scale + shift).astype(jnp.bfloat16)
            qkv = jnp.dot(hb, wqkv,
                          preferred_element_type=jnp.float32) + bqkv
            q_sc[pl.ds(r0, chunk), :] = qkv[:, :cp].astype(jnp.bfloat16)
            k_sc[pl.ds(r0, chunk), :] = qkv[:, cp:2 * cp].astype(jnp.bfloat16)
            v_sc[pl.ds(r0, chunk), :] = qkv[:, 2 * cp:].astype(jnp.bfloat16)
            # padded v output channel `sum_col` carries bias 1.0, giving an
            # all-ones column in v_sc used below for the softmax row sums.

    # ---------------- per query tile: attention -------------------------------
    row0 = pl.multiple_of(qi * tq, tq)
    q_t = q_sc[pl.ds(row0, tq), :]                              # (TQ, Cp) bf16
    x_t = x_ref[0, pl.ds(row0, tq), :]                          # (TQ, C) residual

    logits = lax.dot_general(                                   # no k transpose
        q_t, k_sc[...], dimension_numbers=(((1,), (1,)), ((), ())),
        preferred_element_type=jnp.float32)                     # (TQ, HW)
    m = jnp.max(logits, axis=-1, keepdims=True)
    p = jnp.exp(logits - m)                                     # unnormalized

    pv = jnp.dot(p.astype(jnp.bfloat16), v_sc[...],
                 preferred_element_type=jnp.float32)            # (TQ, Cp)
    if sum_col is not None:
        l = pv[:, sum_col:sum_col + 1]                          # row sums via MXU
    else:
        l = jnp.sum(p, axis=-1, keepdims=True)
    out = pv * pl.reciprocal(l, approx=True)                    # deferred norm

    proj = jnp.dot(out.astype(jnp.bfloat16), wp_ref[...],
                   preferred_element_type=jnp.float32) + bp_ref[...]  # (TQ, C)
    o_ref[0] = (x_t + proj).astype(o_ref.dtype)


def _tpu_generation():
    try:
        kind = jax.devices()[0].device_kind.lower()
    except Exception:
        return None
    for gen in ("v7", "v6", "v5", "v4", "v3", "v2"):
        if gen in kind:
            return gen
    return None


def _block_spec(shape, index_map, buffers=None):
    """BlockSpec with an optional explicit pipeline buffer count (graceful fallback)."""
    if buffers is not None and hasattr(pl, "Buffered"):
        try:
            return pl.BlockSpec(shape, index_map,
                                pipeline_mode=pl.Buffered(buffers))
        except (TypeError, ValueError):
            pass
    return pl.BlockSpec(shape, index_map)


def attn_block(x_nchw, params, *, num_groups=32, eps=1e-6, q_tile=None):
    """x_nchw: (B, C, H, W) float32.  Returns (B, C, H, W) float32."""
    B, C, H, W = x_nchw.shape
    HW = H * W
    assert C % num_groups == 0
    group_size = C // num_groups
    gen = _tpu_generation()

    # Generation-aware query tile: v6e/v7x MXU is 256 wide, v5e (and older) 128.
    if q_tile is None:
        q_tile = 128 if gen in ("v2", "v3", "v4", "v5") else 256
    TQ = min(q_tile, HW)
    while HW % TQ:
        TQ //= 2
    assert TQ >= 8 and TQ % 8 == 0 and HW % TQ == 0

    # Lane-dense channel padding (weights / VMEM scratch only; HBM stays at C).
    Cp = ((max(C, 128) + 127) // 128) * 128
    sum_col = C if C < Cp else None      # spare padded v column -> softmax sums

    f32 = jnp.float32
    # NCHW -> (B, HW, C) channels-last (same pixel order as the torch reshape).
    # TODO(synk): keep activations channels-last across the surrounding model so
    # this transpose (and its inverse below) disappears from the HBM path.
    x = jnp.transpose(x_nchw.astype(f32), (0, 2, 3, 1)).reshape(B, HW, C)

    def w2d(w):                         # torch conv (Cout, Cin, 1, 1) -> (Cin, Cout)
        return jnp.asarray(w, f32).reshape(C, C).T

    def pad_out(m):                     # (C, C) -> (C, Cp): pad output channels
        return jnp.pad(m, ((0, 0), (0, Cp - C)))

    def pad_in(m):                      # (C, C) -> (Cp, C): pad input channels
        return jnp.pad(m, ((0, Cp - C), (0, 0)))

    def pad_vec(v):                     # (C,) -> (1, Cp)
        return jnp.pad(jnp.asarray(v, f32).reshape(1, C), ((0, 0), (0, Cp - C)))

    def vec(v):                         # (C,) -> (1, C)
        return jnp.asarray(v, f32).reshape(1, C)

    qk_scale = float(C) ** (-0.5)       # fold attention scale into q weights/bias
    wqkv = jnp.concatenate(
        [pad_out(w2d(params["wq"]) * qk_scale),
         pad_out(w2d(params["wk"])),
         pad_out(w2d(params["wv"]))], axis=1).astype(jnp.bfloat16)   # (C, 3Cp)
    bqkv = jnp.concatenate(
        [pad_vec(params["bq"]) * qk_scale,
         pad_vec(params["bk"]),
         pad_vec(params["bv"])], axis=1)                              # (1, 3Cp) f32
    if sum_col is not None:
        # Bias 1.0 on a padded (zero-weight) v output channel: the projection
        # writes an all-ones column into v_sc so p @ v also produces the softmax
        # denominator on the MXU for free.
        bqkv = bqkv.at[0, 2 * Cp + sum_col].set(1.0)
    wp = pad_in(w2d(params["wp"])).astype(jnp.bfloat16)               # (Cp, C)
    bp = vec(params["bp"])
    gamma = vec(params["gamma"])
    beta = vec(params["beta"])

    # Group membership matrix (C, G) for the GroupNorm reductions.
    gmat = (jnp.arange(C)[:, None] // group_size
            == jnp.arange(num_groups)[None, :]).astype(f32)

    kernel = functools.partial(attn_block_kernel, eps=eps,
                               group_size=group_size, chunk=TQ, sum_col=sum_col)

    # Generation-aware VMEM budget derived from the actual buffers.
    est = (HW * C * 4                         # x block (single-buffered)
           + 2 * TQ * C * 4                   # output block (double-buffered)
           + 3 * HW * Cp * 2                  # q/k/v bf16 scratch
           + (C * 3 * Cp + Cp * C) * 2        # bf16 weights (single-buffered)
           + (3 * Cp + 4 * C + C * num_groups) * 4   # biases / gamma / beta / gmat
           + TQ * HW * (4 + 2)                # f32 logits + bf16 p
           + TQ * 3 * Cp * 4                  # qkv projection chunk transient
           + 4 * TQ * Cp * 4)                 # small per-tile transients
    caps = {"v7": 50 << 20, "v6": 96 << 20, "v5": 96 << 20, "v4": 96 << 20}
    cap = caps.get(gen)
    vmem_limit = (None if cap is None
                  else min(max(int(est * 1.5) + (4 << 20), 32 << 20), cap))

    # TODO(synk): on v7x (2 TensorCores) a B=1 decode only uses one core because
    # the q-tile axis is "arbitrary" (it carries the q/k/v scratch); hoisting the
    # GroupNorm+qkv projection into its own pass would let it be "parallel".
    def build_call(single_buffer):
        def io_spec(shape, index_map):
            return (_block_spec(shape, index_map, buffers=1)
                    if single_buffer else pl.BlockSpec(shape, index_map))

        def const(shape):
            return io_spec(shape, lambda b, q: (0,) * len(shape))

        return pl.pallas_call(
            kernel,
            out_shape=jax.ShapeDtypeStruct((B, HW, C), f32),
            grid_spec=pltpu.PrefetchScalarGridSpec(
                num_scalar_prefetch=0,
                grid=(B, HW // TQ),
                in_specs=[
                    io_spec((1, HW, C), lambda b, q: (b, 0, 0)),   # x, once/batch
                    const((C, num_groups)),                        # group membership
                    const((1, C)), const((1, C)),                  # gamma, beta
                    const((C, 3 * Cp)), const((1, 3 * Cp)),        # fused qkv w, b
                    const((Cp, C)), const((1, C)),                 # proj w, b
                ],
                out_specs=pl.BlockSpec((1, TQ, C), lambda b, q: (b, q, 0)),
                scratch_shapes=[
                    pltpu.VMEM((HW, Cp), jnp.bfloat16),   # q (attn scale folded)
                    pltpu.VMEM((HW, Cp), jnp.bfloat16),   # k
                    pltpu.VMEM((HW, Cp), jnp.bfloat16),   # v (+ ones column)
                ],
            ),
            compiler_params=pltpu.CompilerParams(
                dimension_semantics=("parallel", "arbitrary"),
                vmem_limit_bytes=vmem_limit,
            ),
        )

    operands = (x, gmat, gamma, beta, wqkv, bqkv, wp, bp)
    try:
        y = build_call(True)(*operands)
    except Exception:
        # pl.Buffered(1) / pipeline_mode unsupported on this jax build:
        # fall back to default double buffering (semantics unchanged).
        y = build_call(False)(*operands)

    return jnp.transpose(y.reshape(B, H, W, C), (0, 3, 1, 2))


def attn_block_reference(x_nchw, params, *, num_groups=32, eps=1e-6):
    """Pure-JAX f32 reference mirroring the PyTorch forward (for verification)."""
    B, C, H, W = x_nchw.shape
    x = x_nchw.astype(jnp.float32)
    xg = x.reshape(B, num_groups, C // num_groups, H, W)
    mean = xg.mean(axis=(2, 3, 4), keepdims=True)
    var = xg.var(axis=(2, 3, 4), keepdims=True)
    h = ((xg - mean) / jnp.sqrt(var + eps)).reshape(B, C, H, W)
    h = h * params["gamma"].reshape(1, C, 1, 1) + params["beta"].reshape(1, C, 1, 1)

    def conv1x1(t, w, b):
        y = jnp.einsum("bchw,oc->bohw", t, w.reshape(C, C))
        return y + b.reshape(1, C, 1, 1)

    q = conv1x1(h, params["wq"], params["bq"])
    k = conv1x1(h, params["wk"], params["bk"])
    v = conv1x1(h, params["wv"], params["bv"])
    q = q.reshape(B, C, H * W).transpose(0, 2, 1)          # (B, HW, C)
    k = k.reshape(B, C, H * W)                             # (B, C, HW)
    w_ = jnp.einsum("bic,bcj->bij", q, k) * (float(C) ** (-0.5))
    w_ = jax.nn.softmax(w_, axis=2)
    v = v.reshape(B, C, H * W)
    h_ = jnp.einsum("bcj,bij->bci", v, w_).reshape(B, C, H, W)
    h_ = conv1x1(h_, params["wp"], params["bp"])
    return x + h_


if __name__ == "__main__":
    B, C, H, W = 2, 32, 16, 16      # in_channels=32 so GroupNorm(32, C) is valid
    key = jax.random.PRNGKey(0)
    ks = jax.random.split(key, 10)

    x = jax.random.normal(ks[0], (B, C, H, W), dtype=jnp.float32)
    params = {
        "gamma": 1.0 + 0.1 * jax.random.normal(ks[1], (C,), dtype=jnp.float32),
        "beta": 0.1 * jax.random.normal(ks[2], (C,), dtype=jnp.float32),
        "wq": 0.2 * jax.random.normal(ks[3], (C, C, 1, 1), dtype=jnp.float32),
        "bq": 0.1 * jax.random.normal(ks[4], (C,), dtype=jnp.float32),
        "wk": 0.2 * jax.random.normal(ks[5], (C, C, 1, 1), dtype=jnp.float32),
        "bk": 0.1 * jax.random.normal(ks[6], (C,), dtype=jnp.float32),
        "wv": 0.2 * jax.random.normal(ks[7], (C, C, 1, 1), dtype=jnp.float32),
        "bv": 0.1 * jax.random.normal(ks[8], (C,), dtype=jnp.float32),
        "wp": 0.2 * jax.random.normal(ks[9], (C, C, 1, 1), dtype=jnp.float32),
        "bp": jnp.zeros((C,), dtype=jnp.float32),
    }

    y = jax.block_until_ready(attn_block(x, params))
    y_ref = jax.block_until_ready(attn_block_reference(x, params))

    assert y.shape == (B, C, H, W)
    max_err = float(jnp.max(jnp.abs(y - y_ref)))
    mean_err = float(jnp.mean(jnp.abs(y - y_ref)))
    # bf16 MXU operands (f32 accumulation) vs. the all-f32 reference.
    assert max_err < 5e-2 and mean_err < 1e-2, (max_err, mean_err)
    print("KERNEL_OK")
</pallas_src>

<mosaic_0001>
module attributes {stable_mosaic.version = 11 : i64} {
  func.func @attn_block_kernel(%arg0: i32, %arg1: i32, %arg2: memref<1x256x32xf32, #tpu.memory_space<vmem>>, %arg3: memref<32x32xf32, #tpu.memory_space<vmem>>, %arg4: memref<1x32xf32, #tpu.memory_space<vmem>>, %arg5: memref<1x32xf32, #tpu.memory_space<vmem>>, %arg6: memref<32x384xbf16, #tpu.memory_space<vmem>>, %arg7: memref<1x384xf32, #tpu.memory_space<vmem>>, %arg8: memref<128x32xbf16, #tpu.memory_space<vmem>>, %arg9: memref<1x32xf32, #tpu.memory_space<vmem>>, %arg10: memref<1x256x32xf32, #tpu.memory_space<vmem>>, %arg11: memref<256x128xbf16, #tpu.memory_space<vmem>>, %arg12: memref<256x128xbf16, #tpu.memory_space<vmem>>, %arg13: memref<256x128xbf16, #tpu.memory_space<vmem>>) attributes {dimension_semantics = [#tpu.dimension_semantics<parallel>, #tpu.dimension_semantics<arbitrary>], iteration_bounds = array<i64: 2, 1>, scalar_prefetch = 0 : i64, scratch_operands = 3 : i64, tpu.core_type = #tpu.core_type<tc>, window_params = [{pipeline_mode = #tpu.pipeline_mode<synchronous>, transform_indices = @transform_0, window_bounds = array<i64: 1, 256, 32>}, {pipeline_mode = #tpu.pipeline_mode<synchronous>, transform_indices = @transform_1, window_bounds = array<i64: 32, 32>}, {pipeline_mode = #tpu.pipeline_mode<synchronous>, transform_indices = @transform_2, window_bounds = array<i64: 1, 32>}, {pipeline_mode = #tpu.pipeline_mode<synchronous>, transform_indices = @transform_3, window_bounds = array<i64: 1, 32>}, {pipeline_mode = #tpu.pipeline_mode<synchronous>, transform_indices = @transform_4, window_bounds = array<i64: 32, 384>}, {pipeline_mode = #tpu.pipeline_mode<synchronous>, transform_indices = @transform_5, window_bounds = array<i64: 1, 384>}, {pipeline_mode = #tpu.pipeline_mode<synchronous>, transform_indices = @transform_6, window_bounds = array<i64: 128, 32>}, {pipeline_mode = #tpu.pipeline_mode<synchronous>, transform_indices = @transform_7, window_bounds = array<i64: 1, 32>}, {transform_indices = @transform_8, window_bounds = array<i64: 1, 256, 32>}]} {
    %c0_i32 = arith.constant 0 : i32
    %0 = arith.cmpi eq, %arg1, %c0_i32 : i32
    %1 = arith.extui %0 : i1 to i32
    %c0_i32_0 = arith.constant 0 : i32
    %2 = arith.cmpi ne, %1, %c0_i32_0 : i32
    scf.if %2 {
      %c0_17 = arith.constant 0 : index
      %c0_18 = arith.constant 0 : index
      %34 = vector.load %arg3[%c0_17, %c0_18] : memref<32x32xf32, #tpu.memory_space<vmem>>, vector<32x32xf32>
      %cst_19 = arith.constant 0.000000e+00 : f32
      %35 = vector.broadcast %cst_19 : f32 to vector<1x32xf32>
      %c0_i32_20 = arith.constant 0 : i32
      %c256_i32_21 = arith.constant 256 : i32
      %36 = arith.muli %c0_i32_20, %c256_i32_21 : i32
      %37 = tpu.assume_multiple %36, 256 : i32
      %c0_22 = arith.constant 0 : index
      %38 = arith.index_cast %37 : i32 to index
      %c0_23 = arith.constant 0 : index
      %39 = vector.load %arg2[%c0_22, %38, %c0_23] : memref<1x256x32xf32, #tpu.memory_space<vmem>>, vector<1x256x32xf32>
      %40 = vector.shape_cast %39 : vector<1x256x32xf32> to vector<256x32xf32>
      %cst_24 = arith.constant dense<0.000000e+00> : vector<32xf32>
      %41 = vector.multi_reduction <add>, %40, %cst_24 [0] : vector<256x32xf32> to vector<32xf32>
      %42 = vector.shape_cast %41 : vector<32xf32> to vector<1x32xf32>
      %43 = arith.addf %35, %42 : vector<1x32xf32>
      %c1_i32 = arith.constant 1 : i32
      %cst_25 = arith.constant dense<0.000000e+00> : vector<1x32xf32>
      %44 = tpu.matmul %43, %34, %cst_25 {dimension_numbers = #tpu.dot_dimension_numbers<[1], [0], [0], [1], [0, 0, 1, 1], [], []>} : vector<1x32xf32>, vector<32x32xf32>, vector<1x32xf32> -> vector<1x32xf32>
      %cst_26 = arith.constant 2.560000e+02 : f32
      %45 = vector.broadcast %cst_26 : f32 to vector<1x32xf32>
      %46 = arith.divf %44, %45 : vector<1x32xf32>
      %cst_27 = arith.constant dense<0.000000e+00> : vector<1x32xf32>
      %47 = tpu.matmul %46, %34, %cst_27 {dimension_numbers = #tpu.dot_dimension_numbers<[1], [1], [0], [0], [0, 0, 1, 0], [], []>} : vector<1x32xf32>, vector<32x32xf32>, vector<1x32xf32> -> vector<1x32xf32>
      %cst_28 = arith.constant 0.000000e+00 : f32
      %48 = vector.broadcast %cst_28 : f32 to vector<1x32xf32>
      %c0_i32_29 = arith.constant 0 : i32
      %c256_i32_30 = arith.constant 256 : i32
      %49 = arith.muli %c0_i32_29, %c256_i32_30 : i32
      %50 = tpu.assume_multiple %49, 256 : i32
      %c0_31 = arith.constant 0 : index
      %51 = arith.index_cast %50 : i32 to index
      %c0_32 = arith.constant 0 : index
      %52 = vector.load %arg2[%c0_31, %51, %c0_32] : memref<1x256x32xf32, #tpu.memory_space<vmem>>, vector<1x256x32xf32>
      %53 = vector.shape_cast %52 : vector<1x256x32xf32> to vector<256x32xf32>
      %54 = vector.broadcast %47 : vector<1x32xf32> to vector<256x32xf32>
      %55 = arith.subf %53, %54 : vector<256x32xf32>
      %56 = arith.mulf %55, %55 : vector<256x32xf32>
      %cst_33 = arith.constant dense<0.000000e+00> : vector<32xf32>
      %57 = vector.multi_reduction <add>, %56, %cst_33 [0] : vector<256x32xf32> to vector<32xf32>
      %58 = vector.shape_cast %57 : vector<32xf32> to vector<1x32xf32>
      %59 = arith.addf %48, %58 : vector<1x32xf32>
      %c1_i32_34 = arith.constant 1 : i32
      %cst_35 = arith.constant dense<0.000000e+00> : vector<1x32xf32>
      %60 = tpu.matmul %59, %34, %cst_35 {dimension_numbers = #tpu.dot_dimension_numbers<[1], [0], [0], [1], [0, 0, 1, 1], [], []>} : vector<1x32xf32>, vector<32x32xf32>, vector<1x32xf32> -> vector<1x32xf32>
      %cst_36 = arith.constant 2.560000e+02 : f32
      %61 = vector.broadcast %cst_36 : f32 to vector<1x32xf32>
      %62 = arith.divf %60, %61 : vector<1x32xf32>
      %cst_37 = arith.constant 9.99999997E-7 : f32
      %63 = vector.broadcast %cst_37 : f32 to vector<1x32xf32>
      %64 = arith.addf %62, %63 : vector<1x32xf32>
      %65 = math.rsqrt %64 : vector<1x32xf32>
      %cst_38 = arith.constant dense<0.000000e+00> : vector<1x32xf32>
      %66 = tpu.matmul %65, %34, %cst_38 {dimension_numbers = #tpu.dot_dimension_numbers<[1], [1], [0], [0], [0, 0, 1, 0], [], []>} : vector<1x32xf32>, vector<32x32xf32>, vector<1x32xf32> -> vector<1x32xf32>
      %c0_39 = arith.constant 0 : index
      %c0_40 = arith.constant 0 : index
      %67 = vector.load %arg4[%c0_39, %c0_40] : memref<1x32xf32, #tpu.memory_space<vmem>>, vector<1x32xf32>
      %68 = arith.mulf %66, %67 : vector<1x32xf32>
      %c0_41 = arith.constant 0 : index
      %c0_42 = arith.constant 0 : index
      %69 = vector.load %arg5[%c0_41, %c0_42] : memref<1x32xf32, #tpu.memory_space<vmem>>, vector<1x32xf32>
      %70 = arith.mulf %47, %68 : vector<1x32xf32>
      %71 = arith.subf %69, %70 : vector<1x32xf32>
      %c0_43 = arith.constant 0 : index
      %c0_44 = arith.constant 0 : index
      %72 = vector.load %arg6[%c0_43, %c0_44] : memref<32x384xbf16, #tpu.memory_space<vmem>>, vector<32x384xbf16>
      %c0_45 = arith.constant 0 : index
      %c0_46 = arith.constant 0 : index
      %73 = vector.load %arg7[%c0_45, %c0_46] : memref<1x384xf32, #tpu.memory_space<vmem>>, vector<1x384xf32>
      %c0_i32_47 = arith.constant 0 : i32
      %c1_i32_48 = arith.constant 1 : i32
      %74 = arith.muli %c0_i32_47, %c1_i32_48 : i32
      %c0_i32_49 = arith.constant 0 : i32
      %75 = arith.addi %c0_i32_49, %74 : i32
      %c256_i32_50 = arith.constant 256 : i32
      %76 = arith.muli %75, %c256_i32_50 : i32
      %77 = tpu.assume_multiple %76, 256 : i32
      %c0_51 = arith.constant 0 : index
      %78 = arith.index_cast %77 : i32 to index
      %c0_52 = arith.constant 0 : index
      %79 = vector.load %arg2[%c0_51, %78, %c0_52] : memref<1x256x32xf32, #tpu.memory_space<vmem>>, vector<1x256x32xf32>
      %80 = vector.shape_cast %79 : vector<1x256x32xf32> to vector<256x32xf32>
      %81 = vector.broadcast %68 : vector<1x32xf32> to vector<256x32xf32>
      %82 = arith.mulf %80, %81 : vector<256x32xf32>
      %83 = vector.broadcast %71 : vector<1x32xf32> to vector<256x32xf32>
      %84 = arith.addf %82, %83 : vector<256x32xf32>
      %85 = arith.truncf %84 : vector<256x32xf32> to vector<256x32xbf16>
      %cst_53 = arith.constant dense<0.000000e+00> : vector<256x384xf32>
      %86 = tpu.matmul %85, %72, %cst_53 {dimension_numbers = #tpu.dot_dimension_numbers<[1], [0], [0], [1], [0, 0, 1, 1], [], []>} : vector<256x32xbf16>, vector<32x384xbf16>, vector<256x384xf32> -> vector<256x384xf32>
      %87 = vector.broadcast %73 : vector<1x384xf32> to vector<256x384xf32>
      %88 = arith.addf %86, %87 : vector<256x384xf32>
      %89 = vector.extract_strided_slice %88 {offsets = [0, 0], sizes = [256, 128], strides = [1, 1]} : vector<256x384xf32> to vector<256x128xf32>
      %90 = arith.truncf %89 : vector<256x128xf32> to vector<256x128xbf16>
      %91 = arith.index_cast %77 : i32 to index
      %c0_54 = arith.constant 0 : index
      %92 = vector.load %arg11[%91, %c0_54] : memref<256x128xbf16, #tpu.memory_space<vmem>>, vector<256x128xbf16>
      tpu.vector_store %arg11[%91, %c0_54], %90 {strides = array<i32>} : memref<256x128xbf16, #tpu.memory_space<vmem>>, vector<256x128xbf16>,
      %93 = vector.extract_strided_slice %88 {offsets = [0, 128], sizes = [256, 128], strides = [1, 1]} : vector<256x384xf32> to vector<256x128xf32>
      %94 = arith.truncf %93 : vector<256x128xf32> to vector<256x128xbf16>
      %95 = arith.index_cast %77 : i32 to index
      %c0_55 = arith.constant 0 : index
      %96 = vector.load %arg12[%95, %c0_55] : memref<256x128xbf16, #tpu.memory_space<vmem>>, vector<256x128xbf16>
      tpu.vector_store %arg12[%95, %c0_55], %94 {strides = array<i32>} : memref<256x128xbf16, #tpu.memory_space<vmem>>, vector<256x128xbf16>,
      %97 = vector.extract_strided_slice %88 {offsets = [0, 256], sizes = [256, 128], strides = [1, 1]} : vector<256x384xf32> to vector<256x128xf32>
      %98 = arith.truncf %97 : vector<256x128xf32> to vector<256x128xbf16>
      %99 = arith.index_cast %77 : i32 to index
      %c0_56 = arith.constant 0 : index
      %100 = vector.load %arg13[%99, %c0_56] : memref<256x128xbf16, #tpu.memory_space<vmem>>, vector<256x128xbf16>
      tpu.vector_store %arg13[%99, %c0_56], %98 {strides = array<i32>} : memref<256x128xbf16, #tpu.memory_space<vmem>>, vector<256x128xbf16>,
      %c1_i32_57 = arith.constant 1 : i32
    } else {
    }
    %c256_i32 = arith.constant 256 : i32
    %3 = arith.muli %arg1, %c256_i32 : i32
    %4 = tpu.assume_multiple %3, 256 : i32
    %5 = arith.index_cast %4 : i32 to index
    %c0 = arith.constant 0 : index
    %6 = vector.load %arg11[%5, %c0] : memref<256x128xbf16, #tpu.memory_space<vmem>>, vector<256x128xbf16>
    %c0_1 = arith.constant 0 : index
    %7 = arith.index_cast %4 : i32 to index
    %c0_2 = arith.constant 0 : index
    %8 = vector.load %arg2[%c0_1, %7, %c0_2] : memref<1x256x32xf32, #tpu.memory_space<vmem>>, vector<1x256x32xf32>
    %9 = vector.shape_cast %8 : vector<1x256x32xf32> to vector<256x32xf32>
    %c0_3 = arith.constant 0 : index
    %c0_4 = arith.constant 0 : index
    %10 = vector.load %arg12[%c0_3, %c0_4] : memref<256x128xbf16, #tpu.memory_space<vmem>>, vector<256x128xbf16>
    %cst = arith.constant dense<0.000000e+00> : vector<256x256xf32>
    %11 = tpu.matmul %6, %10, %cst {dimension_numbers = #tpu.dot_dimension_numbers<[1], [1], [0], [0], [0, 0, 1, 0], [], []>} : vector<256x128xbf16>, vector<256x128xbf16>, vector<256x256xf32> -> vector<256x256xf32>
    %cst_5 = arith.constant dense<0xFF800000> : vector<256xf32>
    %12 = vector.multi_reduction <maximumf>, %11, %cst_5 [1] : vector<256x256xf32> to vector<256xf32>
    %13 = vector.shape_cast %12 : vector<256xf32> to vector<256x1xf32>
    %14 = vector.broadcast %13 : vector<256x1xf32> to vector<256x256xf32>
    %15 = arith.subf %11, %14 : vector<256x256xf32>
    %16 = math.exp %15 : vector<256x256xf32>
    %17 = arith.truncf %16 : vector<256x256xf32> to vector<256x256xbf16>
    %c0_6 = arith.constant 0 : index
    %c0_7 = arith.constant 0 : index
    %18 = vector.load %arg13[%c0_6, %c0_7] : memref<256x128xbf16, #tpu.memory_space<vmem>>, vector<256x128xbf16>
    %cst_8 = arith.constant dense<0.000000e+00> : vector<256x128xf32>
    %19 = tpu.matmul %17, %18, %cst_8 {dimension_numbers = #tpu.dot_dimension_numbers<[1], [0], [0], [1], [0, 0, 1, 1], [], []>} : vector<256x256xbf16>, vector<256x128xbf16>, vector<256x128xf32> -> vector<256x128xf32>
    %20 = vector.extract_strided_slice %19 {offsets = [0, 32], sizes = [256, 1], strides = [1, 1]} : vector<256x128xf32> to vector<256x1xf32>
    %21 = tpu.reciprocal %20 {approx = true} : vector<256x1xf32> -> vector<256x1xf32>
    %22 = vector.broadcast %21 : vector<256x1xf32> to vector<256x128xf32>
    %23 = arith.mulf %19, %22 : vector<256x128xf32>
    %24 = arith.truncf %23 : vector<256x128xf32> to vector<256x128xbf16>
    %c0_9 = arith.constant 0 : index
    %c0_10 = arith.constant 0 : index
    %25 = vector.load %arg8[%c0_9, %c0_10] : memref<128x32xbf16, #tpu.memory_space<vmem>>, vector<128x32xbf16>
    %cst_11 = arith.constant dense<0.000000e+00> : vector<256x32xf32>
    %26 = tpu.matmul %24, %25, %cst_11 {dimension_numbers = #tpu.dot_dimension_numbers<[1], [0], [0], [1], [0, 0, 1, 1], [], []>} : vector<256x128xbf16>, vector<128x32xbf16>, vector<256x32xf32> -> vector<256x32xf32>
    %c0_12 = arith.constant 0 : index
    %c0_13 = arith.constant 0 : index
    %27 = vector.load %arg9[%c0_12, %c0_13] : memref<1x32xf32, #tpu.memory_space<vmem>>, vector<1x32xf32>
    %28 = vector.broadcast %27 : vector<1x32xf32> to vector<256x32xf32>
    %29 = arith.addf %26, %28 : vector<256x32xf32>
    %30 = arith.addf %9, %29 : vector<256x32xf32>
    %c0_14 = arith.constant 0 : index
    %c0_15 = arith.constant 0 : index
    %c0_16 = arith.constant 0 : index
    %31 = vector.load %arg10[%c0_14, %c0_15, %c0_16] : memref<1x256x32xf32, #tpu.memory_space<vmem>>, vector<1x256x32xf32>
    %32 = vector.shape_cast %31 : vector<1x256x32xf32> to vector<256x32xf32>
    %33 = vector.shape_cast %30 : vector<256x32xf32> to vector<1x256x32xf32>
    tpu.vector_store %arg10[%c0_14, %c0_15, %c0_16], %33 {strides = array<i32>} : memref<1x256x32xf32, #tpu.memory_space<vmem>>, vector<1x256x32xf32>,
    return
  }
  func.func @transform_0(%arg0: i32, %arg1: i32) -> (i32, i32, i32) {
    %c0_i32 = arith.constant 0 : i32
    %c0_i32_0 = arith.constant 0 : i32
    %c0_i32_1 = arith.constant 0 : i32
    return %arg0, %c0_i32, %c0_i32_0 : i32, i32, i32
  }
  func.func @transform_1(%arg0: i32, %arg1: i32) -> (i32, i32) {
    %c0_i32 = arith.constant 0 : i32
    %c0_i32_0 = arith.constant 0 : i32
    %c0_i32_1 = arith.constant 0 : i32
    return %c0_i32, %c0_i32_0 : i32, i32
  }
  func.func @transform_2(%arg0: i32, %arg1: i32) -> (i32, i32) {
    %c0_i32 = arith.constant 0 : i32
    %c0_i32_0 = arith.constant 0 : i32
    %c0_i32_1 = arith.constant 0 : i32
    return %c0_i32, %c0_i32_0 : i32, i32
  }
  func.func @transform_3(%arg0: i32, %arg1: i32) -> (i32, i32) {
    %c0_i32 = arith.constant 0 : i32
    %c0_i32_0 = arith.constant 0 : i32
    %c0_i32_1 = arith.constant 0 : i32
    return %c0_i32, %c0_i32_0 : i32, i32
  }
  func.func @transform_4(%arg0: i32, %arg1: i32) -> (i32, i32) {
    %c0_i32 = arith.constant 0 : i32
    %c0_i32_0 = arith.constant 0 : i32
    %c0_i32_1 = arith.constant 0 : i32
    return %c0_i32, %c0_i32_0 : i32, i32
  }
  func.func @transform_5(%arg0: i32, %arg1: i32) -> (i32, i32) {
    %c0_i32 = arith.constant 0 : i32
    %c0_i32_0 = arith.constant 0 : i32
    %c0_i32_1 = arith.constant 0 : i32
    return %c0_i32, %c0_i32_0 : i32, i32
  }
  func.func @transform_6(%arg0: i32, %arg1: i32) -> (i32, i32) {
    %c0_i32 = arith.constant 0 : i32
    %c0_i32_0 = arith.constant 0 : i32
    %c0_i32_1 = arith.constant 0 : i32
    return %c0_i32, %c0_i32_0 : i32, i32
  }
  func.func @transform_7(%arg0: i32, %arg1: i32) -> (i32, i32) {
    %c0_i32 = arith.constant 0 : i32
    %c0_i32_0 = arith.constant 0 : i32
    %c0_i32_1 = arith.constant 0 : i32
    return %c0_i32, %c0_i32_0 : i32, i32
  }
  func.func @transform_8(%arg0: i32, %arg1: i32) -> (i32, i32, i32) {
    %c0_i32 = arith.constant 0 : i32
    %c0_i32_0 = arith.constant 0 : i32
    return %arg0, %arg1, %c0_i32 : i32, i32, i32
  }
}

module attributes {stable_mosaic.version = 11 : i64} {
  func.func @attn_block_kernel(%arg0: i32, %arg1: i32, %arg2: memref<1x256x32xf32, #tpu.memory_space<vmem>>, %arg3: memref<32x32xf32, #tpu.memory_space<vmem>>, %arg4: memref<1x32xf32, #tpu.memory_space<vmem>>, %arg5: memref<1x32xf32, #tpu.memory_space<vmem>>, %arg6: memref<32x384xbf16, #tpu.memory_space<vmem>>, %arg7: memref<1x384xf32, #tpu.memory_space<vmem>>, %arg8: memref<128x32xbf16, #tpu.memory_space<vmem>>, %arg9: memref<1x32xf32, #tpu.memory_space<vmem>>, %arg10: memref<1x256x32xf32, #tpu.memory_space<vmem>>, %arg11: memref<256x128xbf16, #tpu.memory_space<vmem>>, %arg12: memref<256x128xbf16, #tpu.memory_space<vmem>>, %arg13: memref<256x128xbf16, #tpu.memory_space<vmem>>) attributes {dimension_semantics = [#tpu.dimension_semantics<parallel>, #tpu.dimension_semantics<arbitrary>], iteration_bounds = array<i64: 2, 1>, scalar_prefetch = 0 : i64, scratch_operands = 3 : i64, tpu.core_type = #tpu.core_type<tc>, window_params = [{transform_indices = @transform_0, window_bounds = array<i64: 1, 256, 32>}, {pipeline_mode = #tpu.pipeline_mode<synchronous>, transform_indices = @transform_1, window_bounds = array<i64: 32, 32>}, {pipeline_mode = #tpu.pipeline_mode<synchronous>, transform_indices = @transform_2, window_bounds = array<i64: 1, 32>}, {pipeline_mode = #tpu.pipeline_mode<synchronous>, transform_indices = @transform_3, window_bounds = array<i64: 1, 32>}, {pipeline_mode = #tpu.pipeline_mode<synchronous>, transform_indices = @transform_4, window_bounds = array<i64: 32, 384>}, {pipeline_mode = #tpu.pipeline_mode<synchronous>, transform_indices = @transform_5, window_bounds = array<i64: 1, 384>}, {pipeline_mode = #tpu.pipeline_mode<synchronous>, transform_indices = @transform_6, window_bounds = array<i64: 128, 32>}, {pipeline_mode = #tpu.pipeline_mode<synchronous>, transform_indices = @transform_7, window_bounds = array<i64: 1, 32>}, {transform_indices = @transform_8, window_bounds = array<i64: 1, 256, 32>}]} {
    %c0_i32 = arith.constant 0 : i32
    %0 = arith.cmpi eq, %arg1, %c0_i32 : i32
    %1 = arith.extui %0 : i1 to i32
    %c0_i32_0 = arith.constant 0 : i32
    %2 = arith.cmpi ne, %1, %c0_i32_0 : i32
    scf.if %2 {
      %c0_17 = arith.constant 0 : index
      %c0_18 = arith.constant 0 : index
      %34 = vector.load %arg3[%c0_17, %c0_18] : memref<32x32xf32, #tpu.memory_space<vmem>>, vector<32x32xf32>
      %cst_19 = arith.constant 0.000000e+00 : f32
      %35 = vector.broadcast %cst_19 : f32 to vector<1x32xf32>
      %c0_i32_20 = arith.constant 0 : i32
      %c256_i32_21 = arith.constant 256 : i32
      %36 = arith.muli %c0_i32_20, %c256_i32_21 : i32
      %37 = tpu.assume_multiple %36, 256 : i32
      %c0_22 = arith.constant 0 : index
      %38 = arith.index_cast %37 : i32 to index
      %c0_23 = arith.constant 0 : index
      %39 = vector.load %arg2[%c0_22, %38, %c0_23] : memref<1x256x32xf32, #tpu.memory_space<vmem>>, vector<1x256x32xf32>
      %40 = vector.shape_cast %39 : vector<1x256x32xf32> to vector<256x32xf32>
      %cst_24 = arith.constant dense<0.000000e+00> : vector<32xf32>
      %41 = vector.multi_reduction <add>, %40, %cst_24 [0] : vector<256x32xf32> to vector<32xf32>
      %42 = vector.shape_cast %41 : vector<32xf32> to vector<1x32xf32>
      %43 = arith.addf %35, %42 : vector<1x32xf32>
      %c1_i32 = arith.constant 1 : i32
      %cst_25 = arith.constant dense<0.000000e+00> : vector<1x32xf32>
      %44 = tpu.matmul %43, %34, %cst_25 {dimension_numbers = #tpu.dot_dimension_numbers<[1], [0], [0], [1], [0, 0, 1, 1], [], []>} : vector<1x32xf32>, vector<32x32xf32>, vector<1x32xf32> -> vector<1x32xf32>
      %cst_26 = arith.constant 2.560000e+02 : f32
      %45 = vector.broadcast %cst_26 : f32 to vector<1x32xf32>
      %46 = arith.divf %44, %45 : vector<1x32xf32>
      %cst_27 = arith.constant dense<0.000000e+00> : vector<1x32xf32>
      %47 = tpu.matmul %46, %34, %cst_27 {dimension_numbers = #tpu.dot_dimension_numbers<[1], [1], [0], [0], [0, 0, 1, 0], [], []>} : vector<1x32xf32>, vector<32x32xf32>, vector<1x32xf32> -> vector<1x32xf32>
      %cst_28 = arith.constant 0.000000e+00 : f32
      %48 = vector.broadcast %cst_28 : f32 to vector<1x32xf32>
      %c0_i32_29 = arith.constant 0 : i32
      %c256_i32_30 = arith.constant 256 : i32
      %49 = arith.muli %c0_i32_29, %c256_i32_30 : i32
      %50 = tpu.assume_multiple %49, 256 : i32
      %c0_31 = arith.constant 0 : index
      %51 = arith.index_cast %50 : i32 to index
      %c0_32 = arith.constant 0 : index
      %52 = vector.load %arg2[%c0_31, %51, %c0_32] : memref<1x256x32xf32, #tpu.memory_space<vmem>>, vector<1x256x32xf32>
      %53 = vector.shape_cast %52 : vector<1x256x32xf32> to vector<256x32xf32>
      %54 = vector.broadcast %47 : vector<1x32xf32> to vector<256x32xf32>
      %55 = arith.subf %53, %54 : vector<256x32xf32>
      %56 = arith.mulf %55, %55 : vector<256x32xf32>
      %cst_33 = arith.constant dense<0.000000e+00> : vector<32xf32>
      %57 = vector.multi_reduction <add>, %56, %cst_33 [0] : vector<256x32xf32> to vector<32xf32>
      %58 = vector.shape_cast %57 : vector<32xf32> to vector<1x32xf32>
      %59 = arith.addf %48, %58 : vector<1x32xf32>
      %c1_i32_34 = arith.constant 1 : i32
      %cst_35 = arith.constant dense<0.000000e+00> : vector<1x32xf32>
      %60 = tpu.matmul %59, %34, %cst_35 {dimension_numbers = #tpu.dot_dimension_numbers<[1], [0], [0], [1], [0, 0, 1, 1], [], []>} : vector<1x32xf32>, vector<32x32xf32>, vector<1x32xf32> -> vector<1x32xf32>
      %cst_36 = arith.constant 2.560000e+02 : f32
      %61 = vector.broadcast %cst_36 : f32 to vector<1x32xf32>
      %62 = arith.divf %60, %61 : vector<1x32xf32>
      %cst_37 = arith.constant 9.99999997E-7 : f32
      %63 = vector.broadcast %cst_37 : f32 to vector<1x32xf32>
      %64 = arith.addf %62, %63 : vector<1x32xf32>
      %65 = math.rsqrt %64 : vector<1x32xf32>
      %cst_38 = arith.constant dense<0.000000e+00> : vector<1x32xf32>
      %66 = tpu.matmul %65, %34, %cst_38 {dimension_numbers = #tpu.dot_dimension_numbers<[1], [1], [0], [0], [0, 0, 1, 0], [], []>} : vector<1x32xf32>, vector<32x32xf32>, vector<1x32xf32> -> vector<1x32xf32>
      %c0_39 = arith.constant 0 : index
      %c0_40 = arith.constant 0 : index
      %67 = vector.load %arg4[%c0_39, %c0_40] : memref<1x32xf32, #tpu.memory_space<vmem>>, vector<1x32xf32>
      %68 = arith.mulf %66, %67 : vector<1x32xf32>
      %c0_41 = arith.constant 0 : index
      %c0_42 = arith.constant 0 : index
      %69 = vector.load %arg5[%c0_41, %c0_42] : memref<1x32xf32, #tpu.memory_space<vmem>>, vector<1x32xf32>
      %70 = arith.mulf %47, %68 : vector<1x32xf32>
      %71 = arith.subf %69, %70 : vector<1x32xf32>
      %c0_43 = arith.constant 0 : index
      %c0_44 = arith.constant 0 : index
      %72 = vector.load %arg6[%c0_43, %c0_44] : memref<32x384xbf16, #tpu.memory_space<vmem>>, vector<32x384xbf16>
      %c0_45 = arith.constant 0 : index
      %c0_46 = arith.constant 0 : index
      %73 = vector.load %arg7[%c0_45, %c0_46] : memref<1x384xf32, #tpu.memory_space<vmem>>, vector<1x384xf32>
      %c0_i32_47 = arith.constant 0 : i32
      %c1_i32_48 = arith.constant 1 : i32
      %74 = arith.muli %c0_i32_47, %c1_i32_48 : i32
      %c0_i32_49 = arith.constant 0 : i32
      %75 = arith.addi %c0_i32_49, %74 : i32
      %c256_i32_50 = arith.constant 256 : i32
      %76 = arith.muli %75, %c256_i32_50 : i32
      %77 = tpu.assume_multiple %76, 256 : i32
      %c0_51 = arith.constant 0 : index
      %78 = arith.index_cast %77 : i32 to index
      %c0_52 = arith.constant 0 : index
      %79 = vector.load %arg2[%c0_51, %78, %c0_52] : memref<1x256x32xf32, #tpu.memory_space<vmem>>, vector<1x256x32xf32>
      %80 = vector.shape_cast %79 : vector<1x256x32xf32> to vector<256x32xf32>
      %81 = vector.broadcast %68 : vector<1x32xf32> to vector<256x32xf32>
      %82 = arith.mulf %80, %81 : vector<256x32xf32>
      %83 = vector.broadcast %71 : vector<1x32xf32> to vector<256x32xf32>
      %84 = arith.addf %82, %83 : vector<256x32xf32>
      %85 = arith.truncf %84 : vector<256x32xf32> to vector<256x32xbf16>
      %cst_53 = arith.constant dense<0.000000e+00> : vector<256x384xf32>
      %86 = tpu.matmul %85, %72, %cst_53 {dimension_numbers = #tpu.dot_dimension_numbers<[1], [0], [0], [1], [0, 0, 1, 1], [], []>} : vector<256x32xbf16>, vector<32x384xbf16>, vector<256x384xf32> -> vector<256x384xf32>
      %87 = vector.broadcast %73 : vector<1x384xf32> to vector<256x384xf32>
      %88 = arith.addf %86, %87 : vector<256x384xf32>
      %89 = vector.extract_strided_slice %88 {offsets = [0, 0], sizes = [256, 128], strides = [1, 1]} : vector<256x384xf32> to vector<256x128xf32>
      %90 = arith.truncf %89 : vector<256x128xf32> to vector<256x128xbf16>
      %91 = arith.index_cast %77 : i32 to index
      %c0_54 = arith.constant 0 : index
      %92 = vector.load %arg11[%91, %c0_54] : memref<256x128xbf16, #tpu.memory_space<vmem>>, vector<256x128xbf16>
      tpu.vector_store %arg11[%91, %c0_54], %90 {strides = array<i32>} : memref<256x128xbf16, #tpu.memory_space<vmem>>, vector<256x128xbf16>,
      %93 = vector.extract_strided_slice %88 {offsets = [0, 128], sizes = [256, 128], strides = [1, 1]} : vector<256x384xf32> to vector<256x128xf32>
      %94 = arith.truncf %93 : vector<256x128xf32> to vector<256x128xbf16>
      %95 = arith.index_cast %77 : i32 to index
      %c0_55 = arith.constant 0 : index
      %96 = vector.load %arg12[%95, %c0_55] : memref<256x128xbf16, #tpu.memory_space<vmem>>, vector<256x128xbf16>
      tpu.vector_store %arg12[%95, %c0_55], %94 {strides = array<i32>} : memref<256x128xbf16, #tpu.memory_space<vmem>>, vector<256x128xbf16>,
      %97 = vector.extract_strided_slice %88 {offsets = [0, 256], sizes = [256, 128], strides = [1, 1]} : vector<256x384xf32> to vector<256x128xf32>
      %98 = arith.truncf %97 : vector<256x128xf32> to vector<256x128xbf16>
      %99 = arith.index_cast %77 : i32 to index
      %c0_56 = arith.constant 0 : index
      %100 = vector.load %arg13[%99, %c0_56] : memref<256x128xbf16, #tpu.memory_space<vmem>>, vector<256x128xbf16>
      tpu.vector_store %arg13[%99, %c0_56], %98 {strides = array<i32>} : memref<256x128xbf16, #tpu.memory_space<vmem>>, vector<256x128xbf16>,
      %c1_i32_57 = arith.constant 1 : i32
    } else {
    }
    %c256_i32 = arith.constant 256 : i32
    %3 = arith.muli %arg1, %c256_i32 : i32
    %4 = tpu.assume_multiple %3, 256 : i32
    %5 = arith.index_cast %4 : i32 to index
    %c0 = arith.constant 0 : index
    %6 = vector.load %arg11[%5, %c0] : memref<256x128xbf16, #tpu.memory_space<vmem>>, vector<256x128xbf16>
    %c0_1 = arith.constant 0 : index
    %7 = arith.index_cast %4 : i32 to index
    %c0_2 = arith.constant 0 : index
    %8 = vector.load %arg2[%c0_1, %7, %c0_2] : memref<1x256x32xf32, #tpu.memory_space<vmem>>, vector<1x256x32xf32>
    %9 = vector.shape_cast %8 : vector<1x256x32xf32> to vector<256x32xf32>
    %c0_3 = arith.constant 0 : index
    %c0_4 = arith.constant 0 : index
    %10 = vector.load %arg12[%c0_3, %c0_4] : memref<256x128xbf16, #tpu.memory_space<vmem>>, vector<256x128xbf16>
    %cst = arith.constant dense<0.000000e+00> : vector<256x256xf32>
    %11 = tpu.matmul %6, %10, %cst {dimension_numbers = #tpu.dot_dimension_numbers<[1], [1], [0], [0], [0, 0, 1, 0], [], []>} : vector<256x128xbf16>, vector<256x128xbf16>, vector<256x256xf32> -> vector<256x256xf32>
    %cst_5 = arith.constant dense<0xFF800000> : vector<256xf32>
    %12 = vector.multi_reduction <maximumf>, %11, %cst_5 [1] : vector<256x256xf32> to vector<256xf32>
    %13 = vector.shape_cast %12 : vector<256xf32> to vector<256x1xf32>
    %14 = vector.broadcast %13 : vector<256x1xf32> to vector<256x256xf32>
    %15 = arith.subf %11, %14 : vector<256x256xf32>
    %16 = math.exp %15 : vector<256x256xf32>
    %17 = arith.truncf %16 : vector<256x256xf32> to vector<256x256xbf16>
    %c0_6 = arith.constant 0 : index
    %c0_7 = arith.constant 0 : index
    %18 = vector.load %arg13[%c0_6, %c0_7] : memref<256x128xbf16, #tpu.memory_space<vmem>>, vector<256x128xbf16>
    %cst_8 = arith.constant dense<0.000000e+00> : vector<256x128xf32>
    %19 = tpu.matmul %17, %18, %cst_8 {dimension_numbers = #tpu.dot_dimension_numbers<[1], [0], [0], [1], [0, 0, 1, 1], [], []>} : vector<256x256xbf16>, vector<256x128xbf16>, vector<256x128xf32> -> vector<256x128xf32>
    %20 = vector.extract_strided_slice %19 {offsets = [0, 32], sizes = [256, 1], strides = [1, 1]} : vector<256x128xf32> to vector<256x1xf32>
    %21 = tpu.reciprocal %20 {approx = true} : vector<256x1xf32> -> vector<256x1xf32>
    %22 = vector.broadcast %21 : vector<256x1xf32> to vector<256x128xf32>
    %23 = arith.mulf %19, %22 : vector<256x128xf32>
    %24 = arith.truncf %23 : vector<256x128xf32> to vector<256x128xbf16>
    %c0_9 = arith.constant 0 : index
    %c0_10 = arith.constant 0 : index
    %25 = vector.load %arg8[%c0_9, %c0_10] : memref<128x32xbf16, #tpu.memory_space<vmem>>, vector<128x32xbf16>
    %cst_11 = arith.constant dense<0.000000e+00> : vector<256x32xf32>
    %26 = tpu.matmul %24, %25, %cst_11 {dimension_numbers = #tpu.dot_dimension_numbers<[1], [0], [0], [1], [0, 0, 1, 1], [], []>} : vector<256x128xbf16>, vector<128x32xbf16>, vector<256x32xf32> -> vector<256x32xf32>
    %c0_12 = arith.constant 0 : index
    %c0_13 = arith.constant 0 : index
    %27 = vector.load %arg9[%c0_12, %c0_13] : memref<1x32xf32, #tpu.memory_space<vmem>>, vector<1x32xf32>
    %28 = vector.broadcast %27 : vector<1x32xf32> to vector<256x32xf32>
    %29 = arith.addf %26, %28 : vector<256x32xf32>
    %30 = arith.addf %9, %29 : vector<256x32xf32>
    %c0_14 = arith.constant 0 : index
    %c0_15 = arith.constant 0 : index
    %c0_16 = arith.constant 0 : index
    %31 = vector.load %arg10[%c0_14, %c0_15, %c0_16] : memref<1x256x32xf32, #tpu.memory_space<vmem>>, vector<1x256x32xf32>
    %32 = vector.shape_cast %31 : vector<1x256x32xf32> to vector<256x32xf32>
    %33 = vector.shape_cast %30 : vector<256x32xf32> to vector<1x256x32xf32>
    tpu.vector_store %arg10[%c0_14, %c0_15, %c0_16], %33 {strides = array<i32>} : memref<1x256x32xf32, #tpu.memory_space<vmem>>, vector<1x256x32xf32>,
    return
  }
  func.func @transform_0(%arg0: i32, %arg1: i32) -> (i32, i32, i32) {
    %c0_i32 = arith.constant 0 : i32
    %c0_i32_0 = arith.constant 0 : i32
    %c0_i32_1 = arith.constant 0 : i32
    return %arg0, %c0_i32, %c0_i32_0 : i32, i32, i32
  }
  func.func @transform_1(%arg0: i32, %arg1: i32) -> (i32, i32) {
    %c0_i32 = arith.constant 0 : i32
    %c0_i32_0 = arith.constant 0 : i32
    %c0_i32_1 = arith.constant 0 : i32
    return %c0_i32, %c0_i32_0 : i32, i32
  }
  func.func @transform_2(%arg0: i32, %arg1: i32) -> (i32, i32) {
    %c0_i32 = arith.constant 0 : i32
    %c0_i32_0 = arith.constant 0 : i32
    %c0_i32_1 = arith.constant 0 : i32
    return %c0_i32, %c0_i32_0 : i32, i32
  }
  func.func @transform_3(%arg0: i32, %arg1: i32) -> (i32, i32) {
    %c0_i32 = arith.constant 0 : i32
    %c0_i32_0 = arith.constant 0 : i32
    %c0_i32_1 = arith.constant 0 : i32
    return %c0_i32, %c0_i32_0 : i32, i32
  }
  func.func @transform_4(%arg0: i32, %arg1: i32) -> (i32, i32) {
    %c0_i32 = arith.constant 0 : i32
    %c0_i32_0 = arith.constant 0 : i32
    %c0_i32_1 = arith.constant 0 : i32
    return %c0_i32, %c0_i32_0 : i32, i32
  }
  func.func @transform_5(%arg0: i32, %arg1: i32) -> (i32, i32) {
    %c0_i32 = arith.constant 0 : i32
    %c0_i32_0 = arith.constant 0 : i32
    %c0_i32_1 = arith.constant 0 : i32
    return %c0_i32, %c0_i32_0 : i32, i32
  }
  func.func @transform_6(%arg0: i32, %arg1: i32) -> (i32, i32) {
    %c0_i32 = arith.constant 0 : i32
    %c0_i32_0 = arith.constant 0 : i32
    %c0_i32_1 = arith.constant 0 : i32
    return %c0_i32, %c0_i32_0 : i32, i32
  }
  func.func @transform_7(%arg0: i32, %arg1: i32) -> (i32, i32) {
    %c0_i32 = arith.constant 0 : i32
    %c0_i32_0 = arith.constant 0 : i32
    %c0_i32_1 = arith.constant 0 : i32
    return %c0_i32, %c0_i32_0 : i32, i32
  }
  func.func @transform_8(%arg0: i32, %arg1: i32) -> (i32, i32, i32) {
    %c0_i32 = arith.constant 0 : i32
    %c0_i32_0 = arith.constant 0 : i32
    return %arg0, %arg1, %c0_i32 : i32, i32, i32
  }
}

</mosaic_0001>

<bundles_post_ra>
// kernel: tpu_custom_call.1
= control target key start
LH: loop header
LB: loop body
LE: loop exit
PB: predicated region body
PF: predicated region fallthrough
CT: control target
= control target key end

     0   :  { %s3972_s27 = smov 0   ;;  %s3974_s28 = smov 0   ;;  %s5217_s0 = inlined_call_operand.vmem [shape: f32[2,256,32], index: 0, kind: input, shape index: {}]   ;;  %s5218_s1 = inlined_call_operand.vmem [shape: f32[32,32], index: 1, kind: input, shape index: {}]   ;;  %s5219_s2 = inlined_call_operand.vmem [shape: f32[1,32], index: 2, kind: input, shape index: {}]   ;;  %s5220_s3 = inlined_call_operand.vmem [shape: f32[1,32], index: 3, kind: input, shape index: {}]   ;;  %s5221_s4 = inlined_call_operand.vmem [shape: bf16[32,384], index: 4, kind: input, shape index: {}]   ;;  %s5222_s5 = inlined_call_operand.vmem [shape: f32[1,384], index: 5, kind: input, shape index: {}]   ;;  %s5223_s6 = inlined_call_operand.vmem [shape: bf16[128,32], index: 6, kind: input, shape index: {}]   ;;  %s5224_s7 = inlined_call_operand.vmem [shape: f32[1,32], index: 7, kind: input, shape index: {}]   ;;  %s5225_s8 = inlined_call_operand.vmem [shape: f32[2,256,32], index: 8, kind: output, shape index: {}]  }
   0x1   :  { %s3976_s29 = smov 0  }
   0x2 LB: > { %s30_s30 = sadd.s32 1, %s3919_s28  ;;  %p2995_p0 = scmp.ge.s32.totalorder %s3923_s29, 1  ;;  %s3923_s29 = sphi %s3976_s29, %s18_s29   ;;  %s3919_s28 = sphi %s3974_s28, %s5227_s28   ;;  %s3915_s27 = sphi %s3972_s27, %s5226_s27  }
   0x3   : > { %p32_p1 = scmp.ge.s32.totalorder %s30_s30, 2  ;;  %p276_p2 = scmp.lt.s32.totalorder %s3923_s29, 3 }
   0x5   : > { %s5229_s30 = smov (%p32_p1, %s30_s30), 0  ;;  %p277_p3 = pnand %p2995_p0, %p276_p2 }
   0x6   : > { %p314_p4 = scmp.lt.s32.totalorder (!%p277_p3), %s3915_s27, 1 }
   0x7   : > { %280 = sbr.rel (%p277_p3) target bundleno = 2092 (0x82c), region = 52 }
   0xc   : > { %v337_v0 = vld [vmem:[%s5218_s1 + $0x18] sm:$0xff]  ;;  %v336_v1 = vld [vmem:[%s5218_s1 + $0x10] sm:$0xff]  ;;  %vm370_vm0 = vcmask 261120   ;;  %v335_v2 = vld [vmem:[%s5218_s1 + $0x8] sm:$0xff]  ;;  %s5231_s27 = smov (!%p314_p4, %s3915_s27), 1 }
   0xd   : > { %456 = vmatpush.msra.mxu0 %v337_v0  ;;  %3001 = vmatpush.xpose.msk.msra.mxu1 %vm370_vm0, %v337_v0  ;;  %v334_v3 = vld [vmem:[%s5218_s1] sm:$0xff]  ;;  %s3310_s17 = sshll.u32 %s5231_s27, 8 }
   0xe   : > { %657 = vmatpush.msra.mxu2 %v337_v0  ;;  %s4011_s20 = scalar_lea.vmem %s5217_s0, %s3310_s17  ;;  %s5066_s23 = scalar_lea.vmem %s5225_s8, %s3310_s17 }
   0xf   : > { %457 = vmatpush.msra.mxu0 %v336_v1  ;;  %v4015_v4 = vld [vmem:[%s4011_s20] sm:$0xff]  ;;  %v4018_v5 = vld [vmem:[%s4011_s20 + $0x8] sm:$0xff]  ;;  %v4021_v6 = vld [vmem:[%s4011_s20 + $0x10] sm:$0xff] }
  0x10   : > { %658 = vmatpush.msra.mxu2 %v336_v1  ;;  %v4024_v7 = vld [vmem:[%s4011_s20 + $0x18] sm:$0xff]  ;;  %v371_v8 = vsel %vm370_vm0, %v4015_v4, 0.0  ;;  %v372_v9 = vsel %vm370_vm0, %v4018_v5, 0.0  ;;  %v374_v10 = vsel %vm370_vm0, %v4021_v6, 0.0  ;;  %v4033_v11 = vld [vmem:[%s4011_s20 + $0x20] sm:$0xff]  ;;  %v4039_v14 = vld [vmem:[%s4011_s20 + $0x28] sm:$0xff] }
  0x11   : > { %458 = vmatpush.msra.mxu0 %v335_v2  ;;  %3002 = vmatpush.xpose.msk.msra.mxu1 %vm370_vm0, %v336_v1  ;;  %v373_v12 = vadd.f32 %v372_v9, %v371_v8  ;;  %v376_v13 = vsel %vm370_vm0, %v4024_v7, 0.0  ;;  %v378_v16 = vsel %vm370_vm0, %v4033_v11, 0.0  ;;  %v4044_v17 = vld [vmem:[%s4011_s20 + $0x30] sm:$0xff]  ;;  %v380_v19 = vsel %vm370_vm0, %v4039_v14, 0.0  ;;  %v4050_v20 = vld [vmem:[%s4011_s20 + $0x38] sm:$0xff]  ;;  %v4056_v23 = vld [vmem:[%s4011_s20 + $0x40] sm:$0xff] }
  0x12   : > { %659 = vmatpush.msra.mxu2 %v335_v2  ;;  %v382_v22 = vsel %vm370_vm0, %v4044_v17, 0.0  ;;  %v384_v25 = vsel %vm370_vm0, %v4050_v20, 0.0  ;;  %v4061_v26 = vld [vmem:[%s4011_s20 + $0x48] sm:$0xff]  ;;  %v386_v28 = vsel %vm370_vm0, %v4056_v23, 0.0  ;;  %v4067_v29 = vld [vmem:[%s4011_s20 + $0x50] sm:$0xff]  ;;  %v4072_v32 = vld [vmem:[%s4011_s20 + $0x58] sm:$0xff] }
  0x13   : > { %459 = vmatpush.msra.mxu0 %v334_v3  ;;  %v375_v15 = vadd.f32 %v374_v10, %v373_v12  ;;  %v388_v31 = vsel %vm370_vm0, %v4061_v26, 0.0  ;;  %v390_v34 = vsel %vm370_vm0, %v4067_v29, 0.0  ;;  %v4078_v35 = vld [vmem:[%s4011_s20 + $0x60] sm:$0xff]  ;;  %v392_v37 = vsel %vm370_vm0, %v4072_v32, 0.0  ;;  %v4083_v38 = vld [vmem:[%s4011_s20 + $0x68] sm:$0xff]  ;;  %v4089_v41 = vld [vmem:[%s4011_s20 + $0x70] sm:$0xff] }
  0x14   : > { %660 = vmatpush.msra.mxu2 %v334_v3  ;;  %v394_v40 = vsel %vm370_vm0, %v4078_v35, 0.0  ;;  %v396_v43 = vsel %vm370_vm0, %v4083_v38, 0.0  ;;  %v4094_v44 = vld [vmem:[%s4011_s20 + $0x78] sm:$0xff]  ;;  %v398_v46 = vsel %vm370_vm0, %v4089_v41, 0.0  ;;  %v4099_v47 = vld [vmem:[%s4011_s20 + $0x80] sm:$0xff]  ;;  %v4104_v50 = vld [vmem:[%s4011_s20 + $0x88] sm:$0xff] }
  0x15   : > { %3003 = vmatpush.xpose.msk.msra.mxu1 %vm370_vm0, %v335_v2  ;;  %v377_v18 = vadd.f32 %v376_v13, %v375_v15  ;;  %v400_v49 = vsel %vm370_vm0, %v4094_v44, 0.0  ;;  %v402_v52 = vsel %vm370_vm0, %v4099_v47, 0.0  ;;  %v4109_v53 = vld [vmem:[%s4011_s20 + $0x90] sm:$0xff]  ;;  %v404_v55 = vsel %vm370_vm0, %v4104_v50, 0.0  ;;  %v4114_v56 = vld [vmem:[%s4011_s20 + $0x98] sm:$0xff]  ;;  %v4119_v59 = vld [vmem:[%s4011_s20 + $0xa0] sm:$0xff] }
  0x16   : > { %v406_v58 = vsel %vm370_vm0, %v4109_v53, 0.0  ;;  %v408_v61 = vsel %vm370_vm0, %v4114_v56, 0.0  ;;  %v4124_v62 = vld [vmem:[%s4011_s20 + $0xa8] sm:$0xff]  ;;  %v4134_v8 = vld [vmem:[%s4011_s20 + $0xb8] sm:$0xff]  ;;  %v4139_v12 = vld [vmem:[%s4011_s20 + $0xc0] sm:$0xff] }
  0x17   : > { %v379_v21 = vadd.f32 %v378_v16, %v377_v18  ;;  %v416_v15 = vsel %vm370_vm0, %v4134_v8, 0.0  ;;  %v4144_v16 = vld [vmem:[%s4011_s20 + $0xc8] sm:$0xff] }
  0x19   : > { %3004 = vmatpush.xpose.msk.msra.mxu1 %vm370_vm0, %v334_v3  ;;  %v381_v24 = vadd.f32 %v380_v19, %v379_v21  ;;  %v418_v19 = vsel %vm370_vm0, %v4139_v12, 0.0  ;;  %v4149_v21 = vld [vmem:[%s4011_s20 + $0xd0] sm:$0xff] }
  0x1b   : > { %v383_v27 = vadd.f32 %v382_v22, %v381_v24  ;;  %v420_v24 = vsel %vm370_vm0, %v4144_v16, 0.0 }
  0x1d   : > { %3007 = vmatpush.xpose.msk.msrb.mxu1 %vm370_vm0, %v337_v0  ;;  %v385_v30 = vadd.f32 %v384_v25, %v383_v27  ;;  %v410_v0 = vsel %vm370_vm0, %v4119_v59, 0.0  ;;  %v4154_v25 = vld [vmem:[%s4011_s20 + $0xd8] sm:$0xff] }
  0x1f   : > { %v387_v33 = vadd.f32 %v386_v28, %v385_v30  ;;  %v422_v28 = vsel %vm370_vm0, %v4149_v21, 0.0  ;;  %v4159_v30 = vld [vmem:[%s4011_s20 + $0xe0] sm:$0xff] }
  0x21   : > { %3008 = vmatpush.xpose.msk.msrb.mxu1 %vm370_vm0, %v336_v1  ;;  %v389_v36 = vadd.f32 %v388_v31, %v387_v33  ;;  %v4129_v1 = vld [vmem:[%s4011_s20 + $0xb0] sm:$0xff]  ;;  %v424_v33 = vsel %vm370_vm0, %v4154_v25, 0.0 }
  0x22   : > { %v414_v10 = vsel %vm370_vm0, %v4129_v1, 0.0 }
  0x23   : > { %v391_v39 = vadd.f32 %v390_v34, %v389_v36  ;;  %v4164_v34 = vld [vmem:[%s4011_s20 + $0xe8] sm:$0xff] }
  0x25   : > { %3009 = vmatpush.xpose.msk.msrb.mxu1 %vm370_vm0, %v335_v2  ;;  %v393_v42 = vadd.f32 %v392_v37, %v391_v39  ;;  %v426_v37 = vsel %vm370_vm0, %v4159_v30, 0.0  ;;  %v4169_v39 = vld [vmem:[%s4011_s20 + $0xf0] sm:$0xff] }
  0x27   : > { %v395_v45 = vadd.f32 %v394_v40, %v393_v42  ;;  %v428_v42 = vsel %vm370_vm0, %v4164_v34, 0.0 }
  0x29   : > { %3010 = vmatpush.xpose.msk.msrb.mxu1 %vm370_vm0, %v334_v3  ;;  %v397_v48 = vadd.f32 %v396_v43, %v395_v45  ;;  %v412_v3 = vsel %vm370_vm0, %v4124_v62, 0.0  ;;  %v4174_v43 = vld [vmem:[%s4011_s20 + $0xf8] sm:$0xff] }
  0x2b   : > { %v399_v51 = vadd.f32 %v398_v46, %v397_v48  ;;  %v430_v46 = vsel %vm370_vm0, %v4169_v39, 0.0 }
  0x2d   : > { %v401_v54 = vadd.f32 %v400_v49, %v399_v51  ;;  %v432_v49 = vsel %vm370_vm0, %v4174_v43, 0.0 }
  0x2f   : > { %v403_v57 = vadd.f32 %v402_v52, %v401_v54 }
  0x31   : > { %v405_v60 = vadd.f32 %v404_v55, %v403_v57 }
  0x33   : > { %v407_v63 = vadd.f32 %v406_v58, %v405_v60 }
  0x35   : > { %v409_v2 = vadd.f32 %v408_v61, %v407_v63  ;;  %v3925_v63 = vmov 256.0  }
  0x36   : > { %3705 = vrcp.f32 %v3925_v63 }
  0x37   : > { %v411_v9 = vadd.f32 %v410_v0, %v409_v2 }
  0x39   : > { %v413_v13 = vadd.f32 %v412_v3, %v411_v9 }
  0x3b   : > { %v415_v18 = vadd.f32 %v414_v10, %v413_v13 }
  0x3c   : > { %v3706_v0 = vpop.eup %3705 }
  0x3d   : > { %v417_v22 = vadd.f32 %v416_v15, %v415_v18  ;;  %v465_v2 = vmul.f32 256.0, %v3706_v0  ;;  %vm469_vm1 = vweird.f32 %v3706_v0 }
  0x3f   : > { %v419_v27 = vadd.f32 %v418_v19, %v417_v22  ;;  %v466_v3 = vsub.f32 1.0, %v465_v2 }
  0x41   : > { %v421_v31 = vadd.f32 %v420_v24, %v419_v27  ;;  %v467_v9 = vmul.f32 %v3706_v0, %v466_v3 }
  0x43   : > { %v423_v36 = vadd.f32 %v422_v28, %v421_v31  ;;  %v468_v10 = vadd.f32 %v3706_v0, %v467_v9 }
  0x45   : > { %v425_v40 = vadd.f32 %v424_v33, %v423_v36  ;;  %v4181_v13 = vsel %vm469_vm1, %v3706_v0, %v468_v10 }
  0x47   : > { %v427_v45 = vadd.f32 %v426_v37, %v425_v40 }
  0x49   : > { %v429_v48 = vadd.f32 %v428_v42, %v427_v45 }
  0x4b   : > { %v431_v51 = vadd.f32 %v430_v46, %v429_v48 }
  0x4d   : > { %v433_v52 = vadd.f32 %v432_v49, %v431_v51 }
  0x4f   : > { %v434_v54 = vrot.slane %v433_v52, 4 }
  0x51   : > { %v435_v55 = vadd.f32 %v434_v54, %v433_v52 }
  0x53   : > { %v436_v57 = vrot.slane %v435_v55, 2 }
  0x55   : > { %v437_v58 = vadd.f32 %v436_v57, %v435_v55 }
  0x57   : > { %v438_v60 = vrot.slane %v437_v58, 1 }
  0x59   : > { %v439_v61 = vadd.f32 %v438_v60, %v437_v58 }
  0x5b   : > { %3000 = vmatmul.msk.f32.vlgmr.msra.gmra.mxu0 %vm370_vm0, %v439_v61 }
  0xd8   : > { %v461_v15 = vpop.f32.mrf.mxu0 }
  0xd9   : > { %v471_v18 = vmul.f32 %v4181_v13, %v461_v15 }
  0xdb   : > { %3005 = vmatmul.msk.f32.vlgmr.msra.gmra.mxu1 %vm370_vm0, %v471_v18 }
 0x158   : > { %v4185_v19 = vpop.f32.mrf.mxu1 }
 0x159   : > { %v4188_v22 = vperm.slane %v4185_v19, 0 }
 0x15b   : > { %v508_v24 = vsub.f32 %v4015_v4, %v4188_v22  ;;  %v509_v27 = vsub.f32 %v4018_v5, %v4188_v22  ;;  %v510_v28 = vsub.f32 %v4021_v6, %v4188_v22  ;;  %v511_v31 = vsub.f32 %v4024_v7, %v4188_v22 }
 0x15c   : > { %v512_v37 = vsub.f32 %v4033_v11, %v4188_v22  ;;  %v513_v42 = vsub.f32 %v4039_v14, %v4188_v22  ;;  %v514_v51 = vsub.f32 %v4044_v17, %v4188_v22  ;;  %v515_v57 = vsub.f32 %v4050_v20, %v4188_v22 }
 0x15d   : > { %v540_v33 = vmul.f32 %v508_v24, %v508_v24  ;;  %v541_v36 = vmul.f32 %v509_v27, %v509_v27  ;;  %v542_v40 = vmul.f32 %v510_v28, %v510_v28  ;;  %v543_v45 = vmul.f32 %v511_v31, %v511_v31 }
 0x15e   : > { %v544_v52 = vmul.f32 %v512_v37, %v512_v37  ;;  %v545_v58 = vmul.f32 %v513_v42, %v513_v42  ;;  %v516_v63 = vsub.f32 %v4056_v23, %v4188_v22  ;;  %v546_v0 = vmul.f32 %v514_v51, %v514_v51 }
 0x15f   : > { %v572_v46 = vsel %vm370_vm0, %v540_v33, 0.0  ;;  %v573_v48 = vsel %vm370_vm0, %v541_v36, 0.0  ;;  %v575_v54 = vsel %vm370_vm0, %v542_v40, 0.0  ;;  %v577_v60 = vsel %vm370_vm0, %v543_v45, 0.0 }
 0x160   : > { %v574_v49 = vadd.f32 %v573_v48, %v572_v46  ;;  %v579_v2 = vsel %vm370_vm0, %v544_v52, 0.0  ;;  %v517_v9 = vsub.f32 %v4061_v26, %v4188_v22  ;;  %v547_v10 = vmul.f32 %v515_v57, %v515_v57 }
 0x161   : > { %v581_v15 = vsel %vm370_vm0, %v545_v58, 0.0  ;;  %v518_v24 = vsub.f32 %v4067_v29, %v4188_v22  ;;  %v548_v27 = vmul.f32 %v516_v63, %v516_v63  ;;  %v583_v28 = vsel %vm370_vm0, %v546_v0, 0.0 }
 0x162   : > { %v576_v55 = vadd.f32 %v575_v54, %v574_v49  ;;  %v519_v33 = vsub.f32 %v4072_v32, %v4188_v22  ;;  %v549_v36 = vmul.f32 %v517_v9, %v517_v9  ;;  %v585_v37 = vsel %vm370_vm0, %v547_v10, 0.0 }
 0x163   : > { %v520_v42 = vsub.f32 %v4078_v35, %v4188_v22  ;;  %v550_v45 = vmul.f32 %v518_v24, %v518_v24  ;;  %v587_v46 = vsel %vm370_vm0, %v548_v27, 0.0  ;;  %v521_v49 = vsub.f32 %v4083_v38, %v4188_v22 }
 0x164   : > { %v578_v61 = vadd.f32 %v577_v60, %v576_v55  ;;  %v551_v51 = vmul.f32 %v519_v33, %v519_v33  ;;  %v589_v52 = vsel %vm370_vm0, %v549_v36, 0.0  ;;  %v522_v55 = vsub.f32 %v4089_v41, %v4188_v22 }
 0x165   : > { %v552_v57 = vmul.f32 %v520_v42, %v520_v42  ;;  %v591_v58 = vsel %vm370_vm0, %v550_v45, 0.0  ;;  %v553_v63 = vmul.f32 %v521_v49, %v521_v49 }
 0x166   : > { %v580_v3 = vadd.f32 %v579_v2, %v578_v61  ;;  %v523_v61 = vsub.f32 %v4094_v44, %v4188_v22  ;;  %v593_v0 = vsel %vm370_vm0, %v551_v51, 0.0  ;;  %v554_v9 = vmul.f32 %v522_v55, %v522_v55 }
 0x167   : > { %v595_v10 = vsel %vm370_vm0, %v552_v57, 0.0  ;;  %v597_v27 = vsel %vm370_vm0, %v553_v63, 0.0 }
 0x168   : > { %v582_v18 = vadd.f32 %v581_v15, %v580_v3  ;;  %v524_v3 = vsub.f32 %v4099_v47, %v4188_v22  ;;  %v555_v24 = vmul.f32 %v523_v61, %v523_v61  ;;  %v599_v36 = vsel %vm370_vm0, %v554_v9, 0.0 }
 0x16a   : > { %v584_v31 = vadd.f32 %v583_v28, %v582_v18  ;;  %v525_v18 = vsub.f32 %v4104_v50, %v4188_v22  ;;  %v556_v33 = vmul.f32 %v524_v3, %v524_v3  ;;  %v601_v45 = vsel %vm370_vm0, %v555_v24, 0.0 }
 0x16c   : > { %v586_v40 = vadd.f32 %v585_v37, %v584_v31  ;;  %v526_v31 = vsub.f32 %v4109_v53, %v4188_v22  ;;  %v557_v42 = vmul.f32 %v525_v18, %v525_v18  ;;  %v603_v51 = vsel %vm370_vm0, %v556_v33, 0.0 }
 0x16e   : > { %v588_v48 = vadd.f32 %v587_v46, %v586_v40  ;;  %v527_v40 = vsub.f32 %v4114_v56, %v4188_v22  ;;  %v558_v49 = vmul.f32 %v526_v31, %v526_v31  ;;  %v605_v57 = vsel %vm370_vm0, %v557_v42, 0.0 }
 0x170   : > { %v590_v54 = vadd.f32 %v589_v52, %v588_v48  ;;  %v528_v48 = vsub.f32 %v4119_v59, %v4188_v22  ;;  %v559_v55 = vmul.f32 %v527_v40, %v527_v40  ;;  %v607_v63 = vsel %vm370_vm0, %v558_v49, 0.0 }
 0x172   : > { %v592_v60 = vadd.f32 %v591_v58, %v590_v54  ;;  %v529_v54 = vsub.f32 %v4124_v62, %v4188_v22  ;;  %v560_v61 = vmul.f32 %v528_v48, %v528_v48  ;;  %v609_v9 = vsel %vm370_vm0, %v559_v55, 0.0 }
 0x174   : > { %v594_v2 = vadd.f32 %v593_v0, %v592_v60  ;;  %v530_v60 = vsub.f32 %v4129_v1, %v4188_v22  ;;  %v561_v3 = vmul.f32 %v529_v54, %v529_v54  ;;  %v611_v24 = vsel %vm370_vm0, %v560_v61, 0.0 }
 0x176   : > { %v596_v15 = vadd.f32 %v595_v10, %v594_v2  ;;  %v531_v2 = vsub.f32 %v4134_v8, %v4188_v22  ;;  %v562_v18 = vmul.f32 %v530_v60, %v530_v60  ;;  %v613_v33 = vsel %vm370_vm0, %v561_v3, 0.0 }
 0x178   : > { %v598_v28 = vadd.f32 %v597_v27, %v596_v15  ;;  %v532_v15 = vsub.f32 %v4139_v12, %v4188_v22  ;;  %v563_v31 = vmul.f32 %v531_v2, %v531_v2  ;;  %v615_v42 = vsel %vm370_vm0, %v562_v18, 0.0 }
 0x17a   : > { %v600_v37 = vadd.f32 %v599_v36, %v598_v28  ;;  %v533_v28 = vsub.f32 %v4144_v16, %v4188_v22  ;;  %v564_v40 = vmul.f32 %v532_v15, %v532_v15  ;;  %v617_v49 = vsel %vm370_vm0, %v563_v31, 0.0 }
 0x17c   : > { %v602_v46 = vadd.f32 %v601_v45, %v600_v37  ;;  %v534_v37 = vsub.f32 %v4149_v21, %v4188_v22  ;;  %v565_v48 = vmul.f32 %v533_v28, %v533_v28  ;;  %v619_v55 = vsel %vm370_vm0, %v564_v40, 0.0 }
 0x17e   : > { %v604_v52 = vadd.f32 %v603_v51, %v602_v46  ;;  %v535_v46 = vsub.f32 %v4154_v25, %v4188_v22  ;;  %v566_v54 = vmul.f32 %v534_v37, %v534_v37  ;;  %v621_v61 = vsel %vm370_vm0, %v565_v48, 0.0 }
 0x180   : > { %v606_v58 = vadd.f32 %v605_v57, %v604_v52  ;;  %v536_v52 = vsub.f32 %v4159_v30, %v4188_v22  ;;  %v567_v60 = vmul.f32 %v535_v46, %v535_v46  ;;  %v623_v3 = vsel %vm370_vm0, %v566_v54, 0.0 }
 0x182   : > { %v608_v0 = vadd.f32 %v607_v63, %v606_v58  ;;  %v537_v58 = vsub.f32 %v4164_v34, %v4188_v22  ;;  %v568_v2 = vmul.f32 %v536_v52, %v536_v52  ;;  %v625_v18 = vsel %vm370_vm0, %v567_v60, 0.0 }
 0x184   : > { %v610_v10 = vadd.f32 %v609_v9, %v608_v0  ;;  %v538_v0 = vsub.f32 %v4169_v39, %v4188_v22  ;;  %v569_v15 = vmul.f32 %v537_v58, %v537_v58  ;;  %v627_v28 = vsel %vm370_vm0, %v568_v2, 0.0 }
 0x186   : > { %v612_v27 = vadd.f32 %v611_v24, %v610_v10  ;;  %v539_v10 = vsub.f32 %v4174_v43, %v4188_v22 }
 0x188   : > { %v614_v36 = vadd.f32 %v613_v33, %v612_v27  ;;  %v570_v27 = vmul.f32 %v538_v0, %v538_v0  ;;  %v571_v33 = vmul.f32 %v539_v10, %v539_v10  ;;  %v3026_v10 = vld [vmem:[%s5221_s4 + $0x18] sm:$0xf] }
 0x18a   : > { %v616_v45 = vadd.f32 %v615_v42, %v614_v36  ;;  %v629_v36 = vsel %vm370_vm0, %v569_v15, 0.0  ;;  %v631_v40 = vsel %vm370_vm0, %v570_v27, 0.0  ;;  %v3315_v15 = vld [vmem:[%s5221_s4 + $0x1c] sm:$0xf]  ;;  %v3034_v27 = vld [vmem:[%s5221_s4 + $0x20] sm:$0xf] }
 0x18c   : > { %v618_v51 = vadd.f32 %v617_v49, %v616_v45  ;;  %v633_v45 = vsel %vm370_vm0, %v571_v33, 0.0 }
 0x18e   : > { %v620_v57 = vadd.f32 %v619_v55, %v618_v51 }
 0x190   : > { %v622_v63 = vadd.f32 %v621_v61, %v620_v57 }
 0x192   : > { %v624_v9 = vadd.f32 %v623_v3, %v622_v63 }
 0x194   : > { %v626_v24 = vadd.f32 %v625_v18, %v624_v9 }
 0x196   : > { %v628_v31 = vadd.f32 %v627_v28, %v626_v24  ;;  %v3028_v24 = vld [vmem:[%s5221_s4 + $0x24] sm:$0xf0]  ;;  %v3317_v28 = vld [vmem:[%s5221_s4 + $0x28] sm:$0xf0] }
 0x197   : > { %v3035_v33 = vor.u32 %v3317_v28, %v3034_v27 }
 0x198   : > { %v630_v37 = vadd.f32 %v629_v36, %v628_v31  ;;  %v3031_v31 = vor.u32 %v3315_v15, %v3028_v24  ;;  %v3014_v36 = vld [vmem:[%s5221_s4] sm:$0xf] }
 0x199   : > { %1069 = vmatpush.bf16.msra.mxu1 %v3035_v33 }
 0x19a   : > { %v632_v42 = vadd.f32 %v631_v40, %v630_v37  ;;  %v3313_v37 = vld [vmem:[%s5221_s4 + $0x8] sm:$0xf0]  ;;  %v3312_v40 = vld [vmem:[%s5221_s4 + $0x4] sm:$0xf]  ;;  %980 = vmatpush.bf16.msrb.mxu2 %v3031_v31 }
 0x19c   : > { %v634_v46 = vadd.f32 %v633_v45, %v632_v42  ;;  %v3015_v42 = vor.u32 %v3313_v37, %v3014_v36  ;;  %v3016_v45 = vld [vmem:[%s5221_s4 + $0xc] sm:$0xf0] }
 0x19e   : > { %v635_v48 = vrot.slane %v634_v46, 4 }
 0x1a0   : > { %v636_v22 = vadd.f32 %v635_v48, %v634_v46  ;;  %v3022_v46 = vld [vmem:[%s5221_s4 + $0x8] sm:$0xf]  ;;  %v3314_v48 = vld [vmem:[%s5221_s4 + $0x10] sm:$0xf0] }
 0x1a2   : > { %v637_v49 = vrot.slane %v636_v22, 2 }
 0x1a4   : > { %v638_v51 = vadd.f32 %v637_v49, %v636_v22  ;;  %v3019_v22 = vor.u32 %v3312_v40, %v3016_v45  ;;  %v3023_v49 = vor.u32 %v3314_v48, %v3022_v46 }
 0x1a6   : > { %v639_v52 = vrot.slane %v638_v51, 1  ;;  %981 = vmatpush.bf16.msrb.mxu2 %v3019_v22  ;;  %1070 = vmatpush.bf16.msra.mxu1 %v3023_v49 }
 0x1a8   : > { %v640_v54 = vadd.f32 %v639_v52, %v638_v51  ;;  %v700_v51 = vld [vmem:[%s5219_s2] sm:$0x1] }
 0x1aa   : > { %3006 = vmatmul.msk.f32.vlgmr.msra.gmra.mxu2 %vm370_vm0, %v640_v54 }
 0x22d   : > { %v662_v55 = vpop.f32.mrf.mxu2 }
 0x22e   : > { %v665_v57 = vmul.f32 %v662_v55, %v4181_v13  ;;  %v3316_v13 = vld [vmem:[%s5221_s4 + $0x20] sm:$0xf0]  ;;  %v702_v55 = vld [vmem:[%s5220_s3] sm:$0x1] }
 0x22f   : > { %v3027_v18 = vor.u32 %v3316_v13, %v3026_v10 }
 0x230   : > { %v666_v58 = vadd.f32 1e-06, %v665_v57 }
 0x231   : > { %891 = vmatpush.bf16.msrb.mxu0 %v3027_v18 }
 0x232   : > { %3707 = vrsqrt.f32 %v666_v58  ;;  %vm673_vm3 = vweird.f32 %v666_v58 }
 0x235   : > { %892 = vmatpush.bf16.msrb.mxu0 %v3015_v42 }
 0x238   : > { %v3708_v60 = vpop.eup %3707 }
 0x239   : > { %v668_v61 = vmul.f32 %v3708_v60, %v666_v58  ;;  %vm674_vm2 = vweird.f32 %v3708_v60 }
 0x23a   : > { %vm675_vm4 = vmor %vm673_vm3, %vm674_vm2 }
 0x23b   : > { %v669_v63 = vmul.f32 %v3708_v60, %v668_v61 }
 0x23d   : > { %v670_v0 = vmul.f32 0.5, %v669_v63 }
 0x23f   : > { %v671_v2 = vsub.f32 1.5, %v670_v0 }
 0x241   : > { %v672_v3 = vmul.f32 %v3708_v60, %v671_v2 }
 0x243   : > { %v676_v9 = vsel %vm675_vm4, %v3708_v60, %v672_v3 }
 0x244   : > { %3011 = vmatmul.msk.f32.vlgmr.msrb.gmra.mxu1 %vm370_vm0, %v676_v9 }
 0x2c1   : > { %v697_v52 = vpop.f32.mrf.mxu1 }
 0x2c2   : > { %v701_v54 = vmul.f32 %v700_v51, %v697_v52 }
 0x2c4   : > { %v703_v57 = vmul.f32 %v701_v54, %v4185_v19  ;;  %v4332_v58 = vperm.slane %v701_v54, 0 }
 0x2c6   : > { %v704_v60 = vsub.f32 %v702_v55, %v703_v57  ;;  %v715_v63 = vmul.f32 %v4332_v58, %v4015_v4  ;;  %v716_v0 = vmul.f32 %v4332_v58, %v4018_v5  ;;  %v717_v2 = vmul.f32 %v4332_v58, %v4021_v6 }
 0x2c7   : > { %v723_v19 = vmul.f32 %v4332_v58, %v4056_v23  ;;  %v724_v10 = vmul.f32 %v4332_v58, %v4061_v26  ;;  %v718_v13 = vmul.f32 %v4332_v58, %v4024_v7  ;;  %v725_v4 = vmul.f32 %v4332_v58, %v4067_v29 }
 0x2c8   : > { %v4334_v61 = vperm.slane %v704_v60, 0  ;;  %v726_v5 = vmul.f32 %v4332_v58, %v4072_v32  ;;  %v727_v6 = vmul.f32 %v4332_v58, %v4078_v35  ;;  %v728_v26 = vmul.f32 %v4332_v58, %v4083_v38 }
 0x2c9   : > { %v729_v31 = vmul.f32 %v4332_v58, %v4089_v41  ;;  %v730_v33 = vmul.f32 %v4332_v58, %v4094_v44  ;;  %v731_v36 = vmul.f32 %v4332_v58, %v4099_v47  ;;  %v732_v40 = vmul.f32 %v4332_v58, %v4104_v50 }
 0x2ca   : > { %v750_v3 = vadd.f32 %v4334_v61, %v715_v63  ;;  %v751_v9 = vadd.f32 %v4334_v61, %v716_v0  ;;  %v758_v18 = vadd.f32 %v4334_v61, %v723_v19  ;;  %v759_v23 = vadd.f32 %v4334_v61, %v724_v10 }
 0x2cb   : > { %v752_v24 = vadd.f32 %v4334_v61, %v717_v2  ;;  %v753_v7 = vadd.f32 %v4334_v61, %v718_v13  ;;  %v760_v29 = vadd.f32 %v4334_v61, %v725_v4  ;;  %v761_v27 = vadd.f32 %v4334_v61, %v726_v5 }
 0x2cc   : > { %v782_v15 = vpack.c.bf16 %v751_v9, %v750_v3  ;;  %v4366_v32 = vpack.c.bf16 %v759_v23, %v758_v18  ;;  %v762_v35 = vadd.f32 %v4334_v61, %v727_v6  ;;  %v763_v28 = vadd.f32 %v4334_v61, %v728_v26 }
 0x2cd   : > { %v4371_v38 = vpack.c.bf16 %v761_v27, %v760_v29  ;;  %v733_v42 = vmul.f32 %v4332_v58, %v4109_v53  ;;  %v734_v45 = vmul.f32 %v4332_v58, %v4114_v56  ;;  %v764_v46 = vadd.f32 %v4334_v61, %v729_v31 }
 0x2ce   : > { %3036 = vmatmul.msk.bf16.vlgmr.msrb.gmra.mxu0 %vm370_vm0, %v782_v15  ;;  %3052 = vmatmul.msk.bf16.vlgmr.msrb.gmra.mxu2 %vm370_vm0, %v782_v15  ;;  %v4379_v37 = vpack.c.bf16 %v763_v28, %v762_v35  ;;  %v765_v41 = vadd.f32 %v4334_v61, %v730_v33  ;;  %v766_v44 = vadd.f32 %v4334_v61, %v731_v36 }
 0x2cf   : > { %3068 = vmatmul.msk.bf16.vlgmr.msra.gmra.mxu1 %vm370_vm0, %v782_v15  ;;  %v735_v47 = vmul.f32 %v4332_v58, %v4119_v59  ;;  %v767_v48 = vadd.f32 %v4334_v61, %v732_v40  ;;  %v768_v22 = vadd.f32 %v4334_v61, %v733_v42  ;;  %v769_v50 = vadd.f32 %v4334_v61, %v734_v45 }
 0x2d0   : > { %v736_v53 = vmul.f32 %v4332_v58, %v4124_v62  ;;  %v789_v49 = vpack.c.bf16 %v765_v41, %v764_v46  ;;  %v737_v51 = vmul.f32 %v4332_v58, %v4129_v1  ;;  %v738_v52 = vmul.f32 %v4332_v58, %v4134_v8 }
 0x2d1   : > { %v770_v56 = vadd.f32 %v4334_v61, %v735_v47  ;;  %v4402_v54 = vpack.c.bf16 %v767_v48, %v766_v44  ;;  %v4404_v59 = vpack.c.bf16 %v769_v50, %v768_v22  ;;  %v739_v57 = vmul.f32 %v4332_v58, %v4139_v12 }
 0x2d2   : > { %v771_v55 = vadd.f32 %v4334_v61, %v736_v53  ;;  %v772_v62 = vadd.f32 %v4334_v61, %v737_v51  ;;  %v773_v60 = vadd.f32 %v4334_v61, %v738_v52  ;;  %v740_v63 = vmul.f32 %v4332_v58, %v4144_v16 }
 0x2d3   : > { %v741_v1 = vmul.f32 %v4332_v58, %v4149_v21  ;;  %v774_v0 = vadd.f32 %v4334_v61, %v739_v57  ;;  %v742_v2 = vmul.f32 %v4332_v58, %v4154_v25  ;;  %v743_v12 = vmul.f32 %v4332_v58, %v4159_v30 }
 0x2d4   : > { %v4415_v8 = vpack.c.bf16 %v771_v55, %v770_v56  ;;  %v4422_v3 = vpack.c.bf16 %v773_v60, %v772_v62  ;;  %v775_v9 = vadd.f32 %v4334_v61, %v740_v63  ;;  %v744_v16 = vmul.f32 %v4332_v58, %v4164_v34 }
 0x2d5   : > { %v776_v19 = vadd.f32 %v4334_v61, %v741_v1  ;;  %v777_v21 = vadd.f32 %v4334_v61, %v742_v2  ;;  %v778_v10 = vadd.f32 %v4334_v61, %v743_v12  ;;  %v745_v13 = vmul.f32 %v4332_v58, %v4169_v39 }
 0x2d6   : > { %v746_v25 = vmul.f32 %v4332_v58, %v4174_v43  ;;  %v4434_v30 = vpack.c.bf16 %v775_v9, %v774_v0  ;;  %v779_v4 = vadd.f32 %v4334_v61, %v744_v16  ;;  %v783_v18 = vpack.c.bf16 %v753_v7, %v752_v24 }
 0x2d7   : > { %v4437_v5 = vpack.c.bf16 %v777_v21, %v776_v19  ;;  %v780_v6 = vadd.f32 %v4334_v61, %v745_v13  ;;  %v719_v39 = vmul.f32 %v4332_v58, %v4033_v11  ;;  %v720_v43 = vmul.f32 %v4332_v58, %v4039_v14 }
 0x2d8   : > { %v781_v34 = vadd.f32 %v4334_v61, %v746_v25  ;;  %v4441_v15 = vpack.c.bf16 %v779_v4, %v778_v10  ;;  %v721_v24 = vmul.f32 %v4332_v58, %v4044_v17  ;;  %v722_v11 = vmul.f32 %v4332_v58, %v4050_v20  ;;  %v713_v58 = vld [vmem:[%s5222_s5] sm:$0x7] }
 0x2d9   : > { %v754_v26 = vadd.f32 %v4334_v61, %v719_v39  ;;  %v755_v29 = vadd.f32 %v4334_v61, %v720_v43  ;;  %v4504_v42 = vperm.slane %v713_v58, 1 }
 0x2da   : > { %v4443_v23 = vpack.c.bf16 %v781_v34, %v780_v6  ;;  %v756_v7 = vadd.f32 %v4334_v61, %v721_v24  ;;  %v757_v14 = vadd.f32 %v4334_v61, %v722_v11  ;;  %v4496_v61 = vperm.slane %v713_v58, 0 }
 0x2db   : > { %v784_v27 = vpack.c.bf16 %v755_v29, %v754_v26 }
 0x2dc   : > { %v785_v35 = vpack.c.bf16 %v757_v14, %v756_v7 }
 0x2de   : > { %3037 = vmatmul.msk.bf16.gmra.mxu0 %vm370_vm0, %v783_v18  ;;  %3053 = vmatmul.msk.bf16.gmra.mxu2 %vm370_vm0, %v783_v18 }
 0x2df   : > { %3069 = vmatmul.msk.bf16.gmra.mxu1 %vm370_vm0, %v783_v18 }
 0x2ee   : > { %3038 = vmatmul.msk.bf16.gmra.mxu0 %vm370_vm0, %v784_v27  ;;  %3054 = vmatmul.msk.bf16.gmra.mxu2 %vm370_vm0, %v784_v27 }
 0x2ef   : > { %3070 = vmatmul.msk.bf16.gmra.mxu1 %vm370_vm0, %v784_v27 }
 0x2fe   : > { %3039 = vmatmul.msk.bf16.gmra.mxu0 %vm370_vm0, %v785_v35  ;;  %3055 = vmatmul.msk.bf16.gmra.mxu2 %vm370_vm0, %v785_v35 }
 0x2ff   : > { %3071 = vmatmul.msk.bf16.gmra.mxu1 %vm370_vm0, %v785_v35 }
 0x30e   : > { %3040 = vmatmul.msk.bf16.gmra.mxu0 %vm370_vm0, %v4366_v32  ;;  %3056 = vmatmul.msk.bf16.gmra.mxu2 %vm370_vm0, %v4366_v32 }
 0x30f   : > { %3072 = vmatmul.msk.bf16.gmra.mxu1 %vm370_vm0, %v4366_v32  ;;  %v4498_v32 = vperm.slane %v713_v58, 2 }
 0x31e   : > { %3041 = vmatmul.msk.bf16.gmra.mxu0 %vm370_vm0, %v4371_v38  ;;  %3057 = vmatmul.msk.bf16.gmra.mxu2 %vm370_vm0, %v4371_v38 }
 0x31f   : > { %3073 = vmatmul.msk.bf16.gmra.mxu1 %vm370_vm0, %v4371_v38 }
 0x32e   : > { %3042 = vmatmul.msk.bf16.gmra.mxu0 %vm370_vm0, %v4379_v37  ;;  %3058 = vmatmul.msk.bf16.gmra.mxu2 %vm370_vm0, %v4379_v37 }
 0x32f   : > { %3074 = vmatmul.msk.bf16.gmra.mxu1 %vm370_vm0, %v4379_v37 }
 0x33e   : > { %3043 = vmatmul.msk.bf16.gmra.mxu0 %vm370_vm0, %v789_v49  ;;  %3059 = vmatmul.msk.bf16.gmra.mxu2 %vm370_vm0, %v789_v49 }
 0x33f   : > { %3075 = vmatmul.msk.bf16.gmra.mxu1 %vm370_vm0, %v789_v49 }
 0x34b   : > { %v894_v17 = vpop.f32.mrf.mxu0 }
 0x34c   : > { %v1072_v20 = vpop.f32.mrf.mxu1  ;;  %v895_v31 = vadd.f32 %v894_v17, %v4496_v61 }
 0x34d   : > { %v1073_v37 = vadd.f32 %v1072_v20, %v4498_v32 }
 0x34e   : > { %3044 = vmatmul.msk.bf16.gmra.mxu0 %vm370_vm0, %v4402_v54  ;;  %3060 = vmatmul.msk.bf16.gmra.mxu2 %vm370_vm0, %v4402_v54 }
 0x34f   : > { %3076 = vmatmul.msk.bf16.gmra.mxu1 %vm370_vm0, %v4402_v54 }
 0x351   : > { %v983_v28 = vpop.f32.mrf.mxu2 }
 0x352   : > { %v984_v44 = vadd.f32 %v983_v28, %v4504_v42 }
 0x353   : > { %v896_v38 = vpop.f32.mrf.mxu0 }
 0x354   : > { %v897_v33 = vadd.f32 %v896_v38, %v4496_v61  ;;  %v1074_v36 = vpop.f32.mrf.mxu1 }
 0x355   : > { %v1075_v40 = vadd.f32 %v1074_v36, %v4498_v32 }
 0x356   : > { %v3377_v45 = vpack.c.bf16 %v897_v33, %v895_v31 }
 0x357   : > { %v3537_v46 = vpack.c.bf16 %v1075_v40, %v1073_v37 }
 0x358   : > { %3378 = vst [vmem:[#allocation2 + $0x30] sm:$0xff] %v3377_v45  }
 0x359   : > { %3538 = vst [vmem:[#allocation4 + $0x8] sm:$0xff] %v3537_v46   ;;  %v985_v41 = vpop.f32.mrf.mxu2 }
 0x35a   : > { %v986_v47 = vadd.f32 %v985_v41, %v4504_v42 }
 0x35b   : > { %v899_v48 = vpop.f32.mrf.mxu0 }
 0x35c   : > { %v3457_v22 = vpack.c.bf16 %v986_v47, %v984_v44  ;;  %v1077_v50 = vpop.f32.mrf.mxu1  ;;  %v900_v56 = vadd.f32 %v899_v48, %v4496_v61 }
 0x35d   : > { %v1078_v54 = vadd.f32 %v1077_v50, %v4498_v32 }
 0x35e   : > { %3458 = vst [vmem:[#allocation3 + $0x28] sm:$0xff] %v3457_v22   ;;  %3045 = vmatmul.msk.bf16.gmra.mxu0 %vm370_vm0, %v4404_v59  ;;  %3061 = vmatmul.msk.bf16.gmra.mxu2 %vm370_vm0, %v4404_v59 }
 0x35f   : > { %3077 = vmatmul.msk.bf16.gmra.mxu1 %vm370_vm0, %v4404_v59 }
 0x361   : > { %v988_v53 = vpop.f32.mrf.mxu2 }
 0x362   : > { %v989_v63 = vadd.f32 %v988_v53, %v4504_v42 }
 0x363   : > { %v901_v49 = vpop.f32.mrf.mxu0 }
 0x364   : > { %v902_v51 = vadd.f32 %v901_v49, %v4496_v61  ;;  %v1079_v52 = vpop.f32.mrf.mxu1 }
 0x365   : > { %v1080_v55 = vadd.f32 %v1079_v52, %v4498_v32 }
 0x366   : > { %v3382_v57 = vpack.c.bf16 %v902_v51, %v900_v56 }
 0x367   : > { %v3542_v62 = vpack.c.bf16 %v1080_v55, %v1078_v54 }
 0x368   : > { %3614 = vst [vmem:[#allocation2] sm:$0xff] %v3382_v57  }
 0x369   : > { %3644 = vst [vmem:[#allocation4] sm:$0xff] %v3542_v62   ;;  %v990_v60 = vpop.f32.mrf.mxu2 }
 0x36a   : > { %v991_v59 = vadd.f32 %v990_v60, %v4504_v42 }
 0x36b   : > { %v904_v1 = vpop.f32.mrf.mxu0 }
 0x36c   : > { %v3462_v0 = vpack.c.bf16 %v991_v59, %v989_v63  ;;  %v1082_v2 = vpop.f32.mrf.mxu1  ;;  %v905_v19 = vadd.f32 %v904_v1, %v4496_v61 }
 0x36d   : > { %v1083_v10 = vadd.f32 %v1082_v2, %v4498_v32 }
 0x36e   : > { %3629 = vst [vmem:[#allocation3 + $0x68] sm:$0xff] %v3462_v0   ;;  %3046 = vmatmul.msk.bf16.gmra.mxu0 %vm370_vm0, %v4415_v8  ;;  %3062 = vmatmul.msk.bf16.gmra.mxu2 %vm370_vm0, %v4415_v8 }
 0x36f   : > { %3078 = vmatmul.msk.bf16.gmra.mxu1 %vm370_vm0, %v4415_v8 }
 0x371   : > { %v993_v12 = vpop.f32.mrf.mxu2 }
 0x372   : > { %v994_v34 = vadd.f32 %v993_v12, %v4504_v42 }
 0x373   : > { %v906_v9 = vpop.f32.mrf.mxu0 }
 0x374   : > { %v907_v16 = vadd.f32 %v906_v9, %v4496_v61  ;;  %v1084_v21 = vpop.f32.mrf.mxu1 }
 0x375   : > { %v1085_v13 = vadd.f32 %v1084_v21, %v4498_v32 }
 0x376   : > { %v3387_v25 = vpack.c.bf16 %v907_v16, %v905_v19 }
 0x377   : > { %v3547_v4 = vpack.c.bf16 %v1085_v13, %v1083_v10 }
 0x378   : > { %3615 = vst [vmem:[#allocation2 + $0x58] sm:$0xff] %v3387_v25  }
 0x379   : > { %3645 = vst [vmem:[#allocation4 + $0x48] sm:$0xff] %v3547_v4   ;;  %v995_v6 = vpop.f32.mrf.mxu2 }
 0x37a   : > { %v996_v8 = vadd.f32 %v995_v6, %v4504_v42 }
 0x37b   : > { %v909_v18 = vpop.f32.mrf.mxu0 }
 0x37c   : > { %v3467_v39 = vpack.c.bf16 %v996_v8, %v994_v34  ;;  %v1087_v43 = vpop.f32.mrf.mxu1  ;;  %v910_v27 = vadd.f32 %v909_v18, %v4496_v61 }
 0x37d   : > { %v1088_v7 = vadd.f32 %v1087_v43, %v4498_v32 }
 0x37e   : > { %3630 = vst [vmem:[#allocation3 + $0x10] sm:$0xff] %v3467_v39   ;;  %3047 = vmatmul.msk.bf16.gmra.mxu0 %vm370_vm0, %v4422_v3  ;;  %3063 = vmatmul.msk.bf16.gmra.mxu2 %vm370_vm0, %v4422_v3 }
 0x37f   : > { %3079 = vmatmul.msk.bf16.gmra.mxu1 %vm370_vm0, %v4422_v3 }
 0x381   : > { %v998_v26 = vpop.f32.mrf.mxu2 }
 0x382   : > { %v999_v58 = vadd.f32 %v998_v26, %v4504_v42 }
 0x383   : > { %v911_v29 = vpop.f32.mrf.mxu0 }
 0x384   : > { %v912_v24 = vadd.f32 %v911_v29, %v4496_v61  ;;  %v1089_v11 = vpop.f32.mrf.mxu1 }
 0x385   : > { %v1090_v14 = vadd.f32 %v1089_v11, %v4498_v32 }
 0x386   : > { %v3392_v35 = vpack.c.bf16 %v912_v24, %v910_v27 }
 0x387   : > { %v3552_v17 = vpack.c.bf16 %v1090_v14, %v1088_v7 }
 0x388   : > { %3616 = vst [vmem:[#allocation2 + $0x18] sm:$0xff] %v3392_v35  }
 0x389   : > { %3646 = vst [vmem:[#allocation4 + $0x60] sm:$0xff] %v3552_v17   ;;  %v1000_v20 = vpop.f32.mrf.mxu2 }
 0x38a   : > { %v1001_v3 = vadd.f32 %v1000_v20, %v4504_v42 }
 0x38b   : > { %v914_v28 = vpop.f32.mrf.mxu0 }
 0x38c   : > { %v3472_v38 = vpack.c.bf16 %v1001_v3, %v999_v58  ;;  %v1092_v31 = vpop.f32.mrf.mxu1  ;;  %v915_v37 = vadd.f32 %v914_v28, %v4496_v61 }
 0x38d   : > { %v1093_v46 = vadd.f32 %v1092_v31, %v4498_v32 }
 0x38e   : > { %3631 = vst [vmem:[#allocation3 + $0x40] sm:$0xff] %v3472_v38   ;;  %3048 = vmatmul.msk.bf16.gmra.mxu0 %vm370_vm0, %v4434_v30  ;;  %3064 = vmatmul.msk.bf16.gmra.mxu2 %vm370_vm0, %v4434_v30 }
 0x38f   : > { %3080 = vmatmul.msk.bf16.gmra.mxu1 %vm370_vm0, %v4434_v30 }
 0x391   : > { %v1003_v33 = vpop.f32.mrf.mxu2 }
 0x392   : > { %v1004_v22 = vadd.f32 %v1003_v33, %v4504_v42 }
 0x393   : > { %v916_v36 = vpop.f32.mrf.mxu0 }
 0x394   : > { %v917_v40 = vadd.f32 %v916_v36, %v4496_v61  ;;  %v1094_v45 = vpop.f32.mrf.mxu1 }
 0x395   : > { %v1095_v41 = vadd.f32 %v1094_v45, %v4498_v32 }
 0x396   : > { %v3397_v44 = vpack.c.bf16 %v917_v40, %v915_v37 }
 0x397   : > { %v3557_v47 = vpack.c.bf16 %v1095_v41, %v1093_v46 }
 0x398   : > { %3617 = vst [vmem:[#allocation2 + $0x50] sm:$0xff] %v3397_v44  }
 0x399   : > { %3647 = vst [vmem:[#allocation4 + $0x68] sm:$0xff] %v3557_v47   ;;  %v1005_v48 = vpop.f32.mrf.mxu2 }
 0x39a   : > { %v1006_v30 = vadd.f32 %v1005_v48, %v4504_v42 }
 0x39b   : > { %v919_v50 = vpop.f32.mrf.mxu0 }
 0x39c   : > { %v3477_v53 = vpack.c.bf16 %v1006_v30, %v1004_v22  ;;  %v1097_v49 = vpop.f32.mrf.mxu1  ;;  %v920_v52 = vadd.f32 %v919_v50, %v4496_v61 }
 0x39d   : > { %v1098_v57 = vadd.f32 %v1097_v49, %v4498_v32 }
 0x39e   : > { %3632 = vst [vmem:[#allocation3 + $0x48] sm:$0xff] %v3477_v53   ;;  %3049 = vmatmul.msk.bf16.gmra.mxu0 %vm370_vm0, %v4437_v5  ;;  %3065 = vmatmul.msk.bf16.gmra.mxu2 %vm370_vm0, %v4437_v5 }
 0x39f   : > { %3081 = vmatmul.msk.bf16.gmra.mxu1 %vm370_vm0, %v4437_v5 }
 0x3a1   : > { %v1008_v56 = vpop.f32.mrf.mxu2 }
 0x3a2   : > { %v1009_v1 = vadd.f32 %v1008_v56, %v4504_v42 }
 0x3a3   : > { %v921_v51 = vpop.f32.mrf.mxu0 }
 0x3a4   : > { %v922_v54 = vadd.f32 %v921_v51, %v4496_v61  ;;  %v1099_v55 = vpop.f32.mrf.mxu1 }
 0x3a5   : > { %v1100_v62 = vadd.f32 %v1099_v55, %v4498_v32 }
 0x3a6   : > { %v3402_v60 = vpack.c.bf16 %v922_v54, %v920_v52  ;;  %v3354_v54 = vld [vmem:[#allocation4 + $0x68] sm:$0xff] }
 0x3a7   : > { %v3562_v63 = vpack.c.bf16 %v1100_v62, %v1098_v57  ;;  %v3353_v57 = vld [vmem:[#allocation4 + $0x60] sm:$0xff] }
 0x3a8   : > { %3618 = vst [vmem:[#allocation2 + $0x68] sm:$0xff] %v3402_v60  }
 0x3a9   : > { %3648 = vst [vmem:[#allocation4 + $0x18] sm:$0xff] %v3562_v63   ;;  %v1010_v59 = vpop.f32.mrf.mxu2 }
 0x3aa   : > { %v1011_v5 = vadd.f32 %v1010_v59, %v4504_v42 }
 0x3ab   : > { %v924_v0 = vpop.f32.mrf.mxu0 }
 0x3ac   : > { %v3482_v2 = vpack.c.bf16 %v1011_v5, %v1009_v1  ;;  %v1102_v12 = vpop.f32.mrf.mxu1  ;;  %v925_v16 = vadd.f32 %v924_v0, %v4496_v61  ;;  %v3352_v5 = vld [vmem:[#allocation4 + $0x48] sm:$0xff] }
 0x3ad   : > { %v1103_v13 = vadd.f32 %v1102_v12, %v4498_v32 }
 0x3ae   : > { %3633 = vst [vmem:[#allocation3 + $0x30] sm:$0xff] %v3482_v2   ;;  %3050 = vmatmul.msk.bf16.gmra.mxu0 %vm370_vm0, %v4441_v15  ;;  %3066 = vmatmul.msk.bf16.gmra.mxu2 %vm370_vm0, %v4441_v15 }
 0x3af   : > { %3082 = vmatmul.msk.bf16.gmra.mxu1 %vm370_vm0, %v4441_v15 }
 0x3b0   : > { %v3355_v30 = vld [vmem:[#allocation4 + $0x18] sm:$0xff] }
 0x3b1   : > { %v1013_v9 = vpop.f32.mrf.mxu2 }
 0x3b2   : > { %v1014_v8 = vadd.f32 %v1013_v9, %v4504_v42 }
 0x3b3   : > { %v926_v19 = vpop.f32.mrf.mxu0 }
 0x3b4   : > { %v927_v21 = vadd.f32 %v926_v19, %v4496_v61  ;;  %v1104_v10 = vpop.f32.mrf.mxu1 }
 0x3b5   : > { %v1105_v25 = vadd.f32 %v1104_v10, %v4498_v32  ;;  %v3339_v12 = vld [vmem:[#allocation3 + $0x30] sm:$0xff] }
 0x3b6   : > { %v3407_v4 = vpack.c.bf16 %v927_v21, %v925_v16  ;;  %v3351_v16 = vld [vmem:[#allocation4] sm:$0xff] }
 0x3b7   : > { %v3567_v6 = vpack.c.bf16 %v1105_v25, %v1103_v13 }
 0x3b8   : > { %3619 = vst [vmem:[#allocation2 + $0x8] sm:$0xff] %v3407_v4  }
 0x3b9   : > { %3649 = vst [vmem:[#allocation4 + $0x10] sm:$0xff] %v3567_v6   ;;  %v1015_v34 = vpop.f32.mrf.mxu2 }
 0x3ba   : > { %v1016_v15 = vadd.f32 %v1015_v34, %v4504_v42  ;;  %v3350_v34 = vld [vmem:[#allocation4 + $0x8] sm:$0xff] }
 0x3bb   : > { %v929_v18 = vpop.f32.mrf.mxu0 }
 0x3bc   : > { %v3487_v39 = vpack.c.bf16 %v1016_v15, %v1014_v8  ;;  %v1107_v43 = vpop.f32.mrf.mxu1  ;;  %v930_v27 = vadd.f32 %v929_v18, %v4496_v61  ;;  %v3338_v8 = vld [vmem:[#allocation3 + $0x48] sm:$0xff] }
 0x3bd   : > { %v1108_v7 = vadd.f32 %v1107_v43, %v4498_v32 }
 0x3be   : > { %3634 = vst [vmem:[#allocation3 + $0x70] sm:$0xff] %v3487_v39   ;;  %3051 = vmatmul.msk.bf16.gmra.mxu0 %vm370_vm0, %v4443_v23  ;;  %3067 = vmatmul.msk.bf16.gmra.mxu2 %vm370_vm0, %v4443_v23 }
 0x3bf   : > { %3083 = vmatmul.msk.bf16.gmra.mxu1 %vm370_vm0, %v4443_v23 }
 0x3c0   : > { %v3356_v46 = vld [vmem:[#allocation4 + $0x10] sm:$0xff] }
 0x3c1   : > { %v1018_v26 = vpop.f32.mrf.mxu2 }
 0x3c2   : > { %v1019_v58 = vadd.f32 %v1018_v26, %v4504_v42 }
 0x3c3   : > { %v931_v29 = vpop.f32.mrf.mxu0 }
 0x3c4   : > { %v932_v24 = vadd.f32 %v931_v29, %v4496_v61  ;;  %v1109_v11 = vpop.f32.mrf.mxu1 }
 0x3c5   : > { %v1110_v14 = vadd.f32 %v1109_v11, %v4498_v32  ;;  %v3340_v55 = vld [vmem:[#allocation3 + $0x70] sm:$0xff] }
 0x3c6   : > { %v3412_v35 = vpack.c.bf16 %v932_v24, %v930_v27  ;;  %v3337_v24 = vld [vmem:[#allocation3 + $0x40] sm:$0xff] }
 0x3c7   : > { %v3572_v17 = vpack.c.bf16 %v1110_v14, %v1108_v7 }
 0x3c8   : > { %3620 = vst [vmem:[#allocation2 + $0x48] sm:$0xff] %v3412_v35  }
 0x3c9   : > { %3650 = vst [vmem:[#allocation4 + $0x38] sm:$0xff] %v3572_v17   ;;  %v1020_v20 = vpop.f32.mrf.mxu2 }
 0x3ca   : > { %v1021_v23 = vadd.f32 %v1020_v20, %v4504_v42 }
 0x3cb   : > { %v934_v3 = vpop.f32.mrf.mxu0 }
 0x3cc   : > { %v3492_v28 = vpack.c.bf16 %v1021_v23, %v1019_v58  ;;  %v1112_v38 = vpop.f32.mrf.mxu1  ;;  %v935_v37 = vadd.f32 %v934_v3, %v4496_v61  ;;  %v3336_v3 = vld [vmem:[#allocation3 + $0x10] sm:$0xff] }
 0x3cd   : > { %v1113_v41 = vadd.f32 %v1112_v38, %v4498_v32 }
 0x3ce   : > { %3635 = vst [vmem:[#allocation3 + $0x38] sm:$0xff] %v3492_v28  }
 0x3d0   : > { %v3357_v31 = vld [vmem:[#allocation4 + $0x38] sm:$0xff] }
 0x3d1   : > { %v1023_v33 = vpop.f32.mrf.mxu2  ;;  %2264 = vmatpush.bf16.msra.mxu2 %v3357_v31 }
 0x3d2   : > { %v1024_v53 = vadd.f32 %v1023_v33, %v4504_v42 }
 0x3d3   : > { %v936_v36 = vpop.f32.mrf.mxu0 }
 0x3d4   : > { %v937_v40 = vadd.f32 %v936_v36, %v4496_v61  ;;  %v1114_v45 = vpop.f32.mrf.mxu1 }
 0x3d5   : > { %v1115_v44 = vadd.f32 %v1114_v45, %v4498_v32  ;;  %v3341_v47 = vld [vmem:[#allocation3 + $0x38] sm:$0xff]  ;;  %2265 = vmatpush.bf16.msra.mxu2 %v3356_v46  ;;  %v3335_v45 = vld [vmem:[#allocation3 + $0x68] sm:$0xff] }
 0x3d6   : > { %v3417_v48 = vpack.c.bf16 %v937_v40, %v935_v37  ;;  %1638 = vmatpush.bf16.xpose.msra.mxu3 %v3341_v47 }
 0x3d7   : > { %v3577_v22 = vpack.c.bf16 %v1115_v44, %v1113_v41 }
 0x3d8   : > { %3621 = vst [vmem:[#allocation2 + $0x40] sm:$0xff] %v3417_v48  }
 0x3d9   : > { %3651 = vst [vmem:[#allocation4 + $0x40] sm:$0xff] %v3577_v22   ;;  %v1025_v50 = vpop.f32.mrf.mxu2  ;;  %2266 = vmatpush.bf16.msra.mxu2 %v3355_v30 }
 0x3da   : > { %v1026_v49 = vadd.f32 %v1025_v50, %v4504_v42 }
 0x3db   : > { %v939_v56 = vpop.f32.mrf.mxu0 }
 0x3dc   : > { %v3497_v51 = vpack.c.bf16 %v1026_v49, %v1024_v53  ;;  %v1117_v52 = vpop.f32.mrf.mxu1  ;;  %v940_v63 = vadd.f32 %v939_v56, %v4496_v61  ;;  %v3334_v53 = vld [vmem:[#allocation3 + $0x28] sm:$0xff] }
 0x3dd   : > { %2267 = vmatpush.bf16.msra.mxu2 %v3354_v54  ;;  %v1118_v0 = vadd.f32 %v1117_v52, %v4498_v32 }
 0x3de   : > { %3636 = vst [vmem:[#allocation3 + $0x20] sm:$0xff] %v3497_v51   ;;  %1639 = vmatpush.bf16.xpose.msra.mxu3 %v3340_v55  ;;  %v4618_v55 = vld [vmem:[#allocation2 + $0x30] sm:$0xff] }
 0x3e1   : > { %v1028_v62 = vpop.f32.mrf.mxu2  ;;  %2268 = vmatpush.bf16.msra.mxu2 %v3353_v57 }
 0x3e2   : > { %v1029_v10 = vadd.f32 %v1028_v62, %v4504_v42 }
 0x3e3   : > { %v941_v60 = vpop.f32.mrf.mxu0 }
 0x3e4   : > { %v942_v59 = vadd.f32 %v941_v60, %v4496_v61  ;;  %v1119_v1 = vpop.f32.mrf.mxu1 }
 0x3e5   : > { %v1120_v2 = vadd.f32 %v1119_v1, %v4498_v32  ;;  %2269 = vmatpush.bf16.msra.mxu2 %v3352_v5 }
 0x3e6   : > { %v3422_v9 = vpack.c.bf16 %v942_v59, %v940_v63  ;;  %1640 = vmatpush.bf16.xpose.msra.mxu3 %v3339_v12 }
 0x3e7   : > { %v3582_v19 = vpack.c.bf16 %v1120_v2, %v1118_v0 }
 0x3e8   : > { %3622 = vst [vmem:[#allocation2 + $0x20] sm:$0xff] %v3422_v9  }
 0x3e9   : > { %3652 = vst [vmem:[#allocation4 + $0x28] sm:$0xff] %v3582_v19   ;;  %v1030_v21 = vpop.f32.mrf.mxu2  ;;  %2270 = vmatpush.bf16.msra.mxu2 %v3351_v16 }
 0x3ea   : > { %v1031_v13 = vadd.f32 %v1030_v21, %v4504_v42 }
 0x3eb   : > { %v944_v25 = vpop.f32.mrf.mxu0 }
 0x3ec   : > { %v3502_v4 = vpack.c.bf16 %v1031_v13, %v1029_v10  ;;  %v1122_v6 = vpop.f32.mrf.mxu1  ;;  %v945_v39 = vadd.f32 %v944_v25, %v4496_v61  ;;  %v4627_v13 = vld [vmem:[#allocation2] sm:$0xff] }
 0x3ed   : > { %2271 = vmatpush.bf16.msra.mxu2 %v3350_v34  ;;  %v1123_v29 = vadd.f32 %v1122_v6, %v4498_v32 }
 0x3ee   : > { %3637 = vst [vmem:[#allocation3 + $0x78] sm:$0xff] %v3502_v4   ;;  %1641 = vmatpush.bf16.xpose.msra.mxu3 %v3338_v8 }
 0x3f1   : > { %v1033_v15 = vpop.f32.mrf.mxu2 }
 0x3f2   : > { %v1034_v35 = vadd.f32 %v1033_v15, %v4504_v42 }
 0x3f3   : > { %v946_v18 = vpop.f32.mrf.mxu0 }
 0x3f4   : > { %v947_v43 = vadd.f32 %v946_v18, %v4496_v61  ;;  %v1124_v26 = vpop.f32.mrf.mxu1 }
 0x3f5   : > { %v1125_v27 = vadd.f32 %v1124_v26, %v4498_v32 }
 0x3f6   : > { %v3427_v11 = vpack.c.bf16 %v947_v43, %v945_v39  ;;  %1642 = vmatpush.bf16.xpose.msra.mxu3 %v3337_v24 }
 0x3f7   : > { %v3587_v7 = vpack.c.bf16 %v1125_v27, %v1123_v29 }
 0x3f8   : > { %3623 = vst [vmem:[#allocation2 + $0x10] sm:$0xff] %v3427_v11  }
 0x3f9   : > { %3653 = vst [vmem:[#allocation4 + $0x70] sm:$0xff] %v3587_v7   ;;  %v1035_v14 = vpop.f32.mrf.mxu2 }
 0x3fa   : > { %v1036_v17 = vadd.f32 %v1035_v14, %v4504_v42  ;;  %v4636_v14 = vld [vmem:[#allocation2 + $0x58] sm:$0xff] }
 0x3fb   : > { %v949_v20 = vpop.f32.mrf.mxu0 }
 0x3fc   : > { %v3507_v58 = vpack.c.bf16 %v1036_v17, %v1034_v35  ;;  %v1127_v23 = vpop.f32.mrf.mxu1  ;;  %v950_v31 = vadd.f32 %v949_v20, %v4496_v61 }
 0x3fd   : > { %v1128_v37 = vadd.f32 %v1127_v23, %v4498_v32 }
 0x3fe   : > { %3638 = vst [vmem:[#allocation3 + $0x18] sm:$0xff] %v3507_v58   ;;  %1643 = vmatpush.bf16.xpose.msra.mxu3 %v3336_v3 }
 0x401   : > { %v1038_v28 = vpop.f32.mrf.mxu2 }
 0x402   : > { %v1039_v47 = vadd.f32 %v1038_v28, %v4504_v42 }
 0x403   : > { %v951_v38 = vpop.f32.mrf.mxu0 }
 0x404   : > { %v952_v33 = vadd.f32 %v951_v38, %v4496_v61  ;;  %v1129_v36 = vpop.f32.mrf.mxu1 }
 0x405   : > { %v1130_v40 = vadd.f32 %v1129_v36, %v4498_v32 }
 0x406   : > { %v3432_v46 = vpack.c.bf16 %v952_v33, %v950_v31  ;;  %1644 = vmatpush.bf16.xpose.msra.mxu3 %v3335_v45 }
 0x407   : > { %v3592_v41 = vpack.c.bf16 %v1130_v40, %v1128_v37 }
 0x408   : > { %3624 = vst [vmem:[#allocation2 + $0x38] sm:$0xff] %v3432_v46  }
 0x409   : > { %3654 = vst [vmem:[#allocation4 + $0x20] sm:$0xff] %v3592_v41   ;;  %v1040_v44 = vpop.f32.mrf.mxu2  ;;  %v4645_v41 = vld [vmem:[#allocation2 + $0x18] sm:$0xff] }
 0x40a   : > { %v1041_v48 = vadd.f32 %v1040_v44, %v4504_v42 }
 0x40b   : > { %v954_v22 = vpop.f32.mrf.mxu0 }
 0x40c   : > { %v3512_v30 = vpack.c.bf16 %v1041_v48, %v1039_v47  ;;  %v1132_v50 = vpop.f32.mrf.mxu1  ;;  %v955_v51 = vadd.f32 %v954_v22, %v4496_v61 }
 0x40d   : > { %v1133_v57 = vadd.f32 %v1132_v50, %v4498_v32 }
 0x40e   : > { %3639 = vst [vmem:[#allocation3 + $0x58] sm:$0xff] %v3512_v30   ;;  %1645 = vmatpush.bf16.xpose.msra.mxu3 %v3334_v53 }
 0x411   : > { %v1043_v49 = vpop.f32.mrf.mxu2 }
 0x412   : > { %v1044_v1 = vadd.f32 %v1043_v49, %v4504_v42 }
 0x413   : > { %v956_v56 = vpop.f32.mrf.mxu0 }
 0x414   : > { %v957_v52 = vadd.f32 %v956_v56, %v4496_v61  ;;  %v1134_v54 = vpop.f32.mrf.mxu1 }
 0x415   : > { %v1135_v62 = vadd.f32 %v1134_v54, %v4498_v32  ;;  %1646 = vmatmul.bf16.vlgmr.msra.gmra.mxu3 %v4618_v55 }
 0x416   : > { %v3437_v60 = vpack.c.bf16 %v957_v52, %v955_v51  ;;  %v3322_v51 = vld [vmem:[#allocation2 + $0x50] sm:$0xff] }
 0x417   : > { %v3597_v63 = vpack.c.bf16 %v1135_v62, %v1133_v57  ;;  %v3361_v62 = vld [vmem:[#allocation4 + $0x20] sm:$0xff] }
 0x418   : > { %3625 = vst [vmem:[#allocation2 + $0x60] sm:$0xff] %v3437_v60   ;;  %v3360_v60 = vld [vmem:[#allocation4 + $0x70] sm:$0xff] }
 0x419   : > { %3655 = vst [vmem:[#allocation4 + $0x58] sm:$0xff] %v3597_v63   ;;  %v1045_v59 = vpop.f32.mrf.mxu2 }
 0x41a   : > { %v1046_v5 = vadd.f32 %v1045_v59, %v4504_v42  ;;  %v3359_v59 = vld [vmem:[#allocation4 + $0x28] sm:$0xff] }
 0x41b   : > { %v959_v0 = vpop.f32.mrf.mxu0 }
 0x41c   : > { %v3517_v2 = vpack.c.bf16 %v1046_v5, %v1044_v1  ;;  %v1137_v12 = vpop.f32.mrf.mxu1  ;;  %v960_v16 = vadd.f32 %v959_v0, %v4496_v61  ;;  %v3358_v1 = vld [vmem:[#allocation4 + $0x40] sm:$0xff]  ;;  %v3324_v0 = vld [vmem:[#allocation2 + $0x8] sm:$0xff] }
 0x41d   : > { %v1138_v25 = vadd.f32 %v1137_v12, %v4498_v32  ;;  %v3344_v12 = vld [vmem:[#allocation3 + $0x18] sm:$0xff] }
 0x41e   : > { %3640 = vst [vmem:[#allocation3] sm:$0xff] %v3517_v2   ;;  %v3345_v2 = vld [vmem:[#allocation3 + $0x58] sm:$0xff] }
 0x420   : > { %v3362_v54 = vld [vmem:[#allocation4 + $0x58] sm:$0xff] }
 0x421   : > { %v1048_v9 = vpop.f32.mrf.mxu2 }
 0x422   : > { %v1049_v15 = vadd.f32 %v1048_v9, %v4504_v42  ;;  %v3325_v9 = vld [vmem:[#allocation2 + $0x48] sm:$0xff] }
 0x423   : > { %v961_v19 = vpop.f32.mrf.mxu0 }
 0x424   : > { %v962_v21 = vadd.f32 %v961_v19, %v4496_v61  ;;  %v1139_v10 = vpop.f32.mrf.mxu1  ;;  %v3343_v19 = vld [vmem:[#allocation3 + $0x78] sm:$0xff] }
 0x425   : > { %v1140_v4 = vadd.f32 %v1139_v10, %v4498_v32  ;;  %1651 = vmatmul.bf16.gmra.mxu3 %v4627_v13  ;;  %v3346_v5 = vld [vmem:[#allocation3] sm:$0xff] }
 0x426   : > { %v3442_v6 = vpack.c.bf16 %v962_v21, %v960_v16  ;;  %v3342_v16 = vld [vmem:[#allocation3 + $0x20] sm:$0xff] }
 0x427   : > { %v3602_v34 = vpack.c.bf16 %v1140_v4, %v1138_v25  ;;  %v3326_v21 = vld [vmem:[#allocation2 + $0x40] sm:$0xff]  ;;  %v3328_v25 = vld [vmem:[#allocation2 + $0x10] sm:$0xff] }
 0x428   : > { %3626 = vst [vmem:[#allocation2 + $0x70] sm:$0xff] %v3442_v6   ;;  %v3327_v10 = vld [vmem:[#allocation2 + $0x20] sm:$0xff]  ;;  %v3329_v6 = vld [vmem:[#allocation2 + $0x38] sm:$0xff] }
 0x429   : > { %3656 = vst [vmem:[#allocation4 + $0x30] sm:$0xff] %v3602_v34   ;;  %v1050_v8 = vpop.f32.mrf.mxu2 }
 0x42a   : > { %v1051_v18 = vadd.f32 %v1050_v8, %v4504_v42 }
 0x42b   : > { %v964_v39 = vpop.f32.mrf.mxu0 }
 0x42c   : > { %v3522_v43 = vpack.c.bf16 %v1051_v18, %v1049_v15  ;;  %v1142_v26 = vpop.f32.mrf.mxu1  ;;  %v965_v24 = vadd.f32 %v964_v39, %v4496_v61  ;;  %v3330_v15 = vld [vmem:[#allocation2 + $0x60] sm:$0xff] }
 0x42d   : > { %v1143_v35 = vadd.f32 %v1142_v26, %v4498_v32 }
 0x42e   : > { %3641 = vst [vmem:[#allocation3 + $0x8] sm:$0xff] %v3522_v43  }
 0x431   : > { %v1053_v29 = vpop.f32.mrf.mxu2 }
 0x432   : > { %v1054_v3 = vadd.f32 %v1053_v29, %v4504_v42 }
 0x433   : > { %v966_v27 = vpop.f32.mrf.mxu0 }
 0x434   : > { %v967_v11 = vadd.f32 %v966_v27, %v4496_v61  ;;  %v1144_v7 = vpop.f32.mrf.mxu1 }
 0x435   : > { %v1145_v17 = vadd.f32 %v1144_v7, %v4498_v32  ;;  %1656 = vmatmul.bf16.gmra.mxu3 %v4636_v14  ;;  %v3347_v63 = vld [vmem:[#allocation3 + $0x8] sm:$0xff] }
 0x436   : > { %v3447_v20 = vpack.c.bf16 %v967_v11, %v965_v24 }
 0x437   : > { %v3607_v58 = vpack.c.bf16 %v1145_v17, %v1143_v35 }
 0x438   : > { %3627 = vst [vmem:[#allocation2 + $0x78] sm:$0xff] %v3447_v20  }
 0x439   : > { %3657 = vst [vmem:[#allocation4 + $0x50] sm:$0xff] %v3607_v58   ;;  %v1055_v23 = vpop.f32.mrf.mxu2 }
 0x43a   : > { %v1056_v28 = vadd.f32 %v1055_v23, %v4504_v42 }
 0x43b   : > { %v969_v38 = vpop.f32.mrf.mxu0 }
 0x43c   : > { %v3527_v31 = vpack.c.bf16 %v1056_v28, %v1054_v3  ;;  %v1147_v33 = vpop.f32.mrf.mxu1  ;;  %v970_v40 = vadd.f32 %v969_v38, %v4496_v61 }
 0x43d   : > { %v1148_v44 = vadd.f32 %v1147_v33, %v4498_v32 }
 0x43e   : > { %3642 = vst [vmem:[#allocation3 + $0x60] sm:$0xff] %v3527_v31  }
 0x43f   : > { %v3332_v43 = vld [vmem:[#allocation2 + $0x78] sm:$0xff] }
 0x440   : > { %v3364_v56 = vld [vmem:[#allocation4 + $0x50] sm:$0xff] }
 0x441   : > { %v1058_v36 = vpop.f32.mrf.mxu2 }
 0x442   : > { %v1059_v50 = vadd.f32 %v1058_v36, %v4504_v42 }
 0x443   : > { %v971_v37 = vpop.f32.mrf.mxu0 }
 0x444   : > { %v972_v45 = vadd.f32 %v971_v37, %v4496_v61  ;;  %v1149_v46 = vpop.f32.mrf.mxu1 }
 0x445   : > { %v1150_v47 = vadd.f32 %v1149_v46, %v4498_v32  ;;  %1661 = vmatmul.bf16.gmra.mxu3 %v4645_v41  ;;  %v3363_v32 = vld [vmem:[#allocation4 + $0x30] sm:$0xff]  ;;  %v3348_v57 = vld [vmem:[#allocation3 + $0x60] sm:$0xff] }
 0x446   : > { %v3452_v48 = vpack.c.bf16 %v972_v45, %v970_v40 }
 0x447   : > { %v3612_v22 = vpack.c.bf16 %v1150_v47, %v1148_v44 }
 0x448   : > { %3628 = vst [vmem:[#allocation2 + $0x28] sm:$0xff] %v3452_v48  }
 0x449   : > { %3658 = vst [vmem:[#allocation4 + $0x78] sm:$0xff] %v3612_v22   ;;  %v1060_v30 = vpop.f32.mrf.mxu2 }
 0x44a   : > { %v1061_v53 = vadd.f32 %v1060_v30, %v4504_v42  ;;  %v3323_v42 = vld [vmem:[#allocation2 + $0x68] sm:$0xff] }
 0x44c   : > { %v3532_v49 = vpack.c.bf16 %v1061_v53, %v1059_v50 }
 0x44e   : > { %3643 = vst [vmem:[#allocation3 + $0x50] sm:$0xff] %v3532_v49  }
 0x44f   : > { %v4670_v29 = vld [vmem:[#allocation2 + $0x28] sm:$0xff] }
 0x450   : > { %v3365_v61 = vld [vmem:[#allocation4 + $0x78] sm:$0xff] }
 0x451   : > { %2353 = vmatpush.bf16.msrb.mxu1 %v3365_v61 }
 0x455   : > { %v3349_v52 = vld [vmem:[#allocation3 + $0x50] sm:$0xff]  ;;  %2354 = vmatpush.bf16.msrb.mxu1 %v3364_v56  ;;  %1666 = vmatmul.bf16.gmra.mxu3 %v3322_v51 }
 0x456   : > { %1727 = vmatpush.bf16.xpose.msra.mxu0 %v3349_v52 }
 0x459   : > { %2355 = vmatpush.bf16.msrb.mxu1 %v3363_v32 }
 0x45d   : > { %2356 = vmatpush.bf16.msrb.mxu1 %v3362_v54 }
 0x45e   : > { %1728 = vmatpush.bf16.xpose.msra.mxu0 %v3348_v57 }
 0x461   : > { %2357 = vmatpush.bf16.msrb.mxu1 %v3361_v62 }
 0x465   : > { %2358 = vmatpush.bf16.msrb.mxu1 %v3360_v60  ;;  %1671 = vmatmul.bf16.gmra.mxu3 %v3323_v42 }
 0x466   : > { %1729 = vmatpush.bf16.xpose.msra.mxu0 %v3347_v63 }
 0x469   : > { %2359 = vmatpush.bf16.msrb.mxu1 %v3359_v59 }
 0x46d   : > { %2360 = vmatpush.bf16.msrb.mxu1 %v3358_v1 }
 0x46e   : > { %1730 = vmatpush.bf16.xpose.msra.mxu0 %v3346_v5 }
 0x475   : > { %1676 = vmatmul.bf16.gmra.mxu3 %v3324_v0 }
 0x476   : > { %1731 = vmatpush.bf16.xpose.msra.mxu0 %v3345_v2 }
 0x47e   : > { %1732 = vmatpush.bf16.xpose.msra.mxu0 %v3344_v12 }
 0x485   : > { %1681 = vmatmul.bf16.gmra.mxu3 %v3325_v9 }
 0x486   : > { %1733 = vmatpush.bf16.xpose.msra.mxu0 %v3343_v19 }
 0x48e   : > { %1734 = vmatpush.bf16.xpose.msra.mxu0 %v3342_v16 }
 0x495   : > { %1686 = vmatmul.bf16.gmra.mxu3 %v3326_v21  ;;  %1735 = vmatmul.bf16.vlgmr.msra.gmra.mxu0 %v4618_v55 }
 0x498   : > { %v4655_v4 = vpop.f32.mrf.mxu3 }
 0x4a0   : > { %v4658_v34 = vpop.f32.mrf.mxu3 }
 0x4a5   : > { %1691 = vmatmul.bf16.gmra.mxu3 %v3327_v10  ;;  %1740 = vmatmul.bf16.gmra.mxu0 %v4627_v13  ;;  %v3331_v13 = vld [vmem:[#allocation2 + $0x70] sm:$0xff] }
 0x4a8   : > { %v4660_v8 = vpop.f32.mrf.mxu3 }
 0x4b0   : > { %v4662_v55 = vpop.f32.mrf.mxu3 }
 0x4b5   : > { %1696 = vmatmul.bf16.gmra.mxu3 %v3328_v25  ;;  %1745 = vmatmul.bf16.gmra.mxu0 %v4636_v14 }
 0x4b8   : > { %v4664_v18 = vpop.f32.mrf.mxu3 }
 0x4c0   : > { %v4666_v39 = vpop.f32.mrf.mxu3 }
 0x4c5   : > { %1701 = vmatmul.bf16.gmra.mxu3 %v3329_v6  ;;  %1750 = vmatmul.bf16.gmra.mxu0 %v4645_v41 }
 0x4c8   : > { %v4668_v26 = vpop.f32.mrf.mxu3 }
 0x4d0   : > { %v4672_v27 = vpop.f32.mrf.mxu3 }
 0x4d5   : > { %1706 = vmatmul.bf16.gmra.mxu3 %v3330_v15  ;;  %1755 = vmatmul.bf16.gmra.mxu0 %v3322_v51 }
 0x4d8   : > { %v4687_v20 = vpop.f32.mrf.mxu3 }
 0x4e0   : > { %v4693_v3 = vpop.f32.mrf.mxu3 }
 0x4e5   : > { %1711 = vmatmul.bf16.gmra.mxu3 %v3331_v13  ;;  %1760 = vmatmul.bf16.gmra.mxu0 %v3323_v42 }
 0x4e8   : > { %v4699_v31 = vpop.f32.mrf.mxu3 }
 0x4f0   : > { %v4705_v37 = vpop.f32.mrf.mxu3 }
 0x4f5   : > { %1716 = vmatmul.bf16.gmra.mxu3 %v3332_v43  ;;  %1765 = vmatmul.bf16.gmra.mxu0 %v3324_v0 }
 0x4f8   : > { %v4715_v44 = vpop.f32.mrf.mxu3 }
 0x500   : > { %v4721_v22 = vpop.f32.mrf.mxu3 }
 0x505   : > { %1721 = vmatmul.bf16.gmra.mxu3 %v4670_v29  ;;  %1770 = vmatmul.bf16.gmra.mxu0 %v3325_v9 }
 0x508   : > { %v4727_v53 = vpop.f32.mrf.mxu3 }
 0x510   : > { %v4733_v56 = vpop.f32.mrf.mxu3 }
 0x512   : > { %v4675_v24 = vpop.f32.mrf.mxu0 }
 0x513   : > { %v1816_v11 = vmax.f32 %v4655_v4, %v4675_v24 }
 0x515   : > { %1775 = vmatmul.bf16.gmra.mxu0 %v3326_v21  ;;  %1817 = vmax.xlane.f32.xlu0 %v1816_v11 }
 0x518   : > { %v4743_v57 = vpop.f32.mrf.mxu3 }
 0x51a   : > { %v4679_v7 = vpop.f32.mrf.mxu0 }
 0x51b   : > { %v1819_v14 = vmax.f32 %v4658_v34, %v4679_v7 }
 0x51d   : > { %1820 = vmax.xlane.f32.xlu0 %v1819_v14 }
 0x520   : > { %v4749_v42 = vpop.f32.mrf.mxu3 }
 0x522   : > { %v4683_v35 = vpop.f32.mrf.mxu0 }
 0x523   : > { %v1822_v17 = vmax.f32 %v4660_v8, %v4683_v35 }
 0x525   : > { %1780 = vmatmul.bf16.gmra.mxu0 %v3327_v10  ;;  %1823 = vmax.xlane.f32.xlu1 %v1822_v17 }
 0x528   : > { %v4756_v1 = vpop.f32.mrf.mxu3 }
 0x52a   : > { %v4689_v58 = vpop.f32.mrf.mxu0 }
 0x52b   : > { %v1825_v23 = vmax.f32 %v4662_v55, %v4689_v58 }
 0x52d   : > { %1826 = vmax.xlane.f32.xlu1 %v1825_v23 }
 0x532   : > { %v4695_v28 = vpop.f32.mrf.mxu0 }
 0x533   : > { %v1828_v38 = vmax.f32 %v4664_v18, %v4695_v28 }
 0x535   : > { %1785 = vmatmul.bf16.gmra.mxu0 %v3328_v25  ;;  %1829 = vmax.xlane.f32.xlu2 %v1828_v38 }
 0x53a   : > { %v4701_v33 = vpop.f32.mrf.mxu0 }
 0x53b   : > { %v1831_v36 = vmax.f32 %v4666_v39, %v4701_v33 }
 0x53d   : > { %1832 = vmax.xlane.f32.xlu2 %v1831_v36 }
 0x542   : > { %v4707_v40 = vpop.f32.mrf.mxu0 }
 0x543   : > { %v1834_v45 = vmax.f32 %v4668_v26, %v4707_v40 }
 0x545   : > { %1790 = vmatmul.bf16.gmra.mxu0 %v3329_v6  ;;  %1835 = vmax.xlane.f32.xlu0 %v1834_v45  ;;  %v4766_v6 = vpop.f32.mrf.mxu3 }
 0x54a   : > { %v4711_v46 = vpop.f32.mrf.mxu0 }
 0x54b   : > { %v1837_v41 = vmax.f32 %v4672_v27, %v4711_v46 }
 0x54d   : > { %1838 = vmax.xlane.f32.xlu1 %v1837_v41  ;;  %v4777_v38 = vpop.f32.mrf.mxu3 }
 0x552   : > { %v4717_v47 = vpop.f32.mrf.mxu0 }
 0x553   : > { %v1840_v48 = vmax.f32 %v4687_v20, %v4717_v47 }
 0x555   : > { %1795 = vmatmul.bf16.gmra.mxu0 %v3330_v15  ;;  %1841 = vmax.xlane.f32.xlu2 %v1840_v48 }
 0x55a   : > { %v4723_v30 = vpop.f32.mrf.mxu0 }
 0x55b   : > { %v1843_v50 = vmax.f32 %v4693_v3, %v4723_v30 }
 0x55d   : > { %1844 = vmax.xlane.f32.xlu0 %v1843_v50 }
 0x562   : > { %v4729_v49 = vpop.f32.mrf.mxu0 }
 0x563   : > { %v1846_v61 = vmax.f32 %v4699_v31, %v4729_v49 }
 0x565   : > { %1800 = vmatmul.bf16.gmra.mxu0 %v3331_v13  ;;  %1847 = vmax.xlane.f32.xlu1 %v1846_v61 }
 0x56a   : > { %v4735_v51 = vpop.f32.mrf.mxu0 }
 0x56b   : > { %v1849_v52 = vmax.f32 %v4705_v37, %v4735_v51 }
 0x56d   : > { %1850 = vmax.xlane.f32.xlu2 %v1849_v52 }
 0x572   : > { %v4739_v32 = vpop.f32.mrf.mxu0 }
 0x573   : > { %v1852_v54 = vmax.f32 %v4715_v44, %v4739_v32 }
 0x575   : > { %1805 = vmatmul.bf16.gmra.mxu0 %v3332_v43  ;;  %1853 = vmax.xlane.f32.xlu0 %v1852_v54 }
 0x57a   : > { %v4745_v62 = vpop.f32.mrf.mxu0 }
 0x57b   : > { %v1855_v60 = vmax.f32 %v4721_v22, %v4745_v62 }
 0x57d   : > { %1856 = vmax.xlane.f32.xlu1 %v1855_v60 }
 0x582   : > { %v4751_v63 = vpop.f32.mrf.mxu0 }
 0x583   : > { %v1858_v59 = vmax.f32 %v4727_v53, %v4751_v63 }
 0x585   : > { %1810 = vmatmul.bf16.gmra.mxu0 %v4670_v29  ;;  %1859 = vmax.xlane.f32.xlu2 %v1858_v59 }
 0x588   : > { %v1818_v5 = vpop.xlane.xlu0 %1817 }
 0x589   : > { %v1912_v2 = vsub.f32 %v4655_v4, %v1818_v5  ;;  %v1913_v9 = vsub.f32 %v4675_v24, %v1818_v5 }
 0x58a   : > { %v4758_v0 = vpop.f32.mrf.mxu0 }
 0x58b   : > { %v1861_v12 = vmax.f32 %v4733_v56, %v4758_v0  ;;  %v1976_v19 = vmul.f32 1.442695, %v1912_v2  ;;  %v1978_v16 = vmul.f32 1.442695, %v1913_v9 }
 0x58d   : > { %1862 = vmax.xlane.f32.xlu0 %v1861_v12  ;;  %3709 = vpow2.f32 %v1976_v19 }
 0x58e   : > { %3711 = vpow2.f32 %v1978_v16 }
 0x590   : > { %v1821_v21 = vpop.xlane.xlu0 %1820 }
 0x591   : > { %v1914_v10 = vsub.f32 %v4658_v34, %v1821_v21  ;;  %v1915_v25 = vsub.f32 %v4679_v7, %v1821_v21 }
 0x592   : > { %v4768_v15 = vpop.f32.mrf.mxu0 }
 0x593   : > { %v1980_v13 = vmul.f32 1.442695, %v1914_v10  ;;  %v1982_v4 = vmul.f32 1.442695, %v1915_v25  ;;  %v1864_v43 = vmax.f32 %v4743_v57, %v4768_v15  ;;  %v3710_v24 = vpop.eup %3709 }
 0x594   : > { %v3712_v11 = vpop.eup %3711 }
 0x595   : > { %3713 = vpow2.f32 %v1980_v13  ;;  %1865 = vmax.xlane.f32.xlu1 %v1864_v43 }
 0x596   : > { %3715 = vpow2.f32 %v1982_v4 }
 0x598   : > { %v1824_v29 = vpop.xlane.xlu1 %1823 }
 0x599   : > { %v1916_v14 = vsub.f32 %v4660_v8, %v1824_v29  ;;  %v1917_v45 = vsub.f32 %v4683_v35, %v1824_v29  ;;  %v4786_v35 = vpop.f32.mrf.mxu3 }
 0x59a   : > { %v4772_v34 = vpop.f32.mrf.mxu0 }
 0x59b   : > { %v3714_v7 = vpop.eup %3713  ;;  %v1867_v17 = vmax.f32 %v4749_v42, %v4772_v34  ;;  %v1984_v48 = vmul.f32 1.442695, %v1916_v14  ;;  %v1986_v50 = vmul.f32 1.442695, %v1917_v45 }
 0x59c   : > { %v3716_v23 = vpop.eup %3715  ;;  %v2104_v36 = vpack.c.bf16 %v3714_v7, %v3710_v24 }
 0x59d   : > { %v2105_v41 = vpack.c.bf16 %v3716_v23, %v3712_v11  ;;  %1868 = vmax.xlane.f32.xlu2 %v1867_v17  ;;  %3717 = vpow2.f32 %v1984_v48 }
 0x59e   : > { %2272 = vmatmul.bf16.vlgmr.msra.gmra.mxu2 %v2104_v36  ;;  %3719 = vpow2.f32 %v1986_v50 }
 0x59f   : > { %2361 = vmatmul.bf16.vlgmr.msrb.gmra.mxu1 %v2105_v41 }
 0x5a0   : > { %v1827_v61 = vpop.xlane.xlu1 %1826 }
 0x5a1   : > { %v1918_v52 = vsub.f32 %v4662_v55, %v1827_v61  ;;  %v1919_v8 = vsub.f32 %v4689_v58, %v1827_v61  ;;  %v4794_v43 = vpop.f32.mrf.mxu3 }
 0x5a2   : > { %v4782_v54 = vpop.f32.mrf.mxu0 }
 0x5a3   : > { %v1988_v60 = vmul.f32 1.442695, %v1918_v52  ;;  %v1990_v59 = vmul.f32 1.442695, %v1919_v8  ;;  %v1870_v5 = vmax.f32 %v4756_v1, %v4782_v54  ;;  %v3718_v12 = vpop.eup %3717 }
 0x5a4   : > { %v3720_v9 = vpop.eup %3719 }
 0x5a5   : > { %3721 = vpow2.f32 %v1988_v60  ;;  %1871 = vmax.xlane.f32.xlu0 %v1870_v5 }
 0x5a6   : > { %3723 = vpow2.f32 %v1990_v59 }
 0x5a8   : > { %v1830_v2 = vpop.xlane.xlu2 %1829 }
 0x5a9   : > { %v1920_v19 = vsub.f32 %v4664_v18, %v1830_v2  ;;  %v1921_v10 = vsub.f32 %v4695_v28, %v1830_v2  ;;  %v4802_v41 = vpop.f32.mrf.mxu3 }
 0x5aa   : > { %v4788_v55 = vpop.f32.mrf.mxu0 }
 0x5ab   : > { %v3722_v58 = vpop.eup %3721  ;;  %v1873_v16 = vmax.f32 %v4766_v6, %v4788_v55  ;;  %v1992_v4 = vmul.f32 1.442695, %v1920_v19  ;;  %v1994_v29 = vmul.f32 1.442695, %v1921_v10 }
 0x5ac   : > { %v3724_v21 = vpop.eup %3723  ;;  %v2106_v25 = vpack.c.bf16 %v3722_v58, %v3718_v12 }
 0x5ad   : > { %1874 = vmax.xlane.f32.xlu1 %v1873_v16  ;;  %v2107_v13 = vpack.c.bf16 %v3724_v21, %v3720_v9  ;;  %3725 = vpow2.f32 %v1992_v4 }
 0x5ae   : > { %2277 = vmatmul.bf16.gmra.mxu2 %v2106_v25  ;;  %3727 = vpow2.f32 %v1994_v29 }
 0x5af   : > { %2366 = vmatmul.bf16.gmra.mxu1 %v2107_v13 }
 0x5b0   : > { %v1833_v24 = vpop.xlane.xlu2 %1832 }
 0x5b1   : > { %v1922_v11 = vsub.f32 %v4666_v39, %v1833_v24  ;;  %v1923_v18 = vsub.f32 %v4701_v33, %v1833_v24  ;;  %v4816_v16 = vpop.f32.mrf.mxu3 }
 0x5b2   : > { %v4798_v7 = vpop.f32.mrf.mxu0 }
 0x5b3   : > { %v1996_v14 = vmul.f32 1.442695, %v1922_v11  ;;  %v1998_v17 = vmul.f32 1.442695, %v1923_v18  ;;  %v1876_v28 = vmax.f32 %v4777_v38, %v4798_v7  ;;  %v3726_v36 = vpop.eup %3725 }
 0x5b4   : > { %v3728_v45 = vpop.eup %3727 }
 0x5b5   : > { %3729 = vpow2.f32 %v1996_v14  ;;  %1877 = vmax.xlane.f32.xlu2 %v1876_v28 }
 0x5b6   : > { %3731 = vpow2.f32 %v1998_v17 }
 0x5b8   : > { %v1836_v23 = vpop.xlane.xlu0 %1835 }
 0x5b9   : > { %v1924_v48 = vsub.f32 %v4668_v26, %v1836_v23  ;;  %v1925_v52 = vsub.f32 %v4707_v40, %v1836_v23  ;;  %v4824_v14 = vpop.f32.mrf.mxu3 }
 0x5ba   : > { %v4804_v39 = vpop.f32.mrf.mxu0 }
 0x5bb   : > { %v3730_v33 = vpop.eup %3729  ;;  %v1879_v50 = vmax.f32 %v4786_v35, %v4804_v39  ;;  %v2000_v59 = vmul.f32 1.442695, %v1924_v48  ;;  %v2002_v5 = vmul.f32 1.442695, %v1925_v52 }
 0x5bc   : > { %v3732_v61 = vpop.eup %3731  ;;  %v2108_v8 = vpack.c.bf16 %v3730_v33, %v3726_v36 }
 0x5bd   : > { %1880 = vmax.xlane.f32.xlu0 %v1879_v50  ;;  %v2109_v60 = vpack.c.bf16 %v3732_v61, %v3728_v45  ;;  %3733 = vpow2.f32 %v2000_v59 }
 0x5be   : > { %2282 = vmatmul.bf16.gmra.mxu2 %v2108_v8  ;;  %3735 = vpow2.f32 %v2002_v5 }
 0x5bf   : > { %2371 = vmatmul.bf16.gmra.mxu1 %v2109_v60 }
 0x5c0   : > { %v1839_v2 = vpop.xlane.xlu1 %1838 }
 0x5c1   : > { %v1926_v12 = vsub.f32 %v4672_v27, %v1839_v2  ;;  %v1927_v9 = vsub.f32 %v4711_v46, %v1839_v2  ;;  %v4832_v50 = vpop.f32.mrf.mxu3 }
 0x5c2   : > { %v4812_v58 = vpop.f32.mrf.mxu0 }
 0x5c3   : > { %v2004_v26 = vmul.f32 1.442695, %v1926_v12  ;;  %v2006_v19 = vmul.f32 1.442695, %v1927_v9  ;;  %v1882_v40 = vmax.f32 %v4794_v43, %v4812_v58  ;;  %v3734_v10 = vpop.eup %3733 }
 0x5c4   : > { %v3736_v25 = vpop.eup %3735 }
 0x5c5   : > { %3737 = vpow2.f32 %v2004_v26  ;;  %1883 = vmax.xlane.f32.xlu1 %v1882_v40 }
 0x5c6   : > { %3739 = vpow2.f32 %v2006_v19 }
 0x5c8   : > { %v1842_v21 = vpop.xlane.xlu2 %1841 }
 0x5c9   : > { %v1928_v13 = vsub.f32 %v4687_v20, %v1842_v21  ;;  %v1929_v24 = vsub.f32 %v4717_v47, %v1842_v21 }
 0x5ca   : > { %v4818_v27 = vpop.f32.mrf.mxu0 }
 0x5cb   : > { %v3738_v46 = vpop.eup %3737  ;;  %v1885_v4 = vmax.f32 %v4802_v41, %v4818_v27  ;;  %v2008_v17 = vmul.f32 1.442695, %v1928_v13  ;;  %v2010_v28 = vmul.f32 1.442695, %v1929_v24 }
 0x5cc   : > { %v3740_v29 = vpop.eup %3739  ;;  %v2110_v11 = vpack.c.bf16 %v3738_v46, %v3734_v10 }
 0x5cd   : > { %1886 = vmax.xlane.f32.xlu2 %v1885_v4  ;;  %v2111_v18 = vpack.c.bf16 %v3740_v29, %v3736_v25  ;;  %3741 = vpow2.f32 %v2008_v17  ;;  %v4842_v25 = vpop.f32.mrf.mxu3 }
 0x5ce   : > { %2287 = vmatmul.bf16.gmra.mxu2 %v2110_v11  ;;  %3743 = vpow2.f32 %v2010_v28 }
 0x5cf   : > { %2376 = vmatmul.bf16.gmra.mxu1 %v2111_v18 }
 0x5d0   : > { %v1845_v23 = vpop.xlane.xlu0 %1844 }
 0x5d1   : > { %v1930_v36 = vsub.f32 %v4693_v3, %v1845_v23  ;;  %v1931_v20 = vsub.f32 %v4723_v30, %v1845_v23 }
 0x5d2   : > { %v4828_v45 = vpop.f32.mrf.mxu0 }
 0x5d3   : > { %v2012_v33 = vmul.f32 1.442695, %v1930_v36  ;;  %v2014_v48 = vmul.f32 1.442695, %v1931_v20  ;;  %v1888_v47 = vmax.f32 %v4816_v16, %v4828_v45  ;;  %v3742_v52 = vpop.eup %3741 }
 0x5d4   : > { %v3744_v8 = vpop.eup %3743 }
 0x5d5   : > { %3745 = vpow2.f32 %v2012_v33  ;;  %1889 = vmax.xlane.f32.xlu0 %v1888_v47  ;;  %v4853_v28 = vpop.f32.mrf.mxu3 }
 0x5d6   : > { %3747 = vpow2.f32 %v2014_v48 }
 0x5d8   : > { %v1848_v61 = vpop.xlane.xlu1 %1847 }
 0x5d9   : > { %v1932_v60 = vsub.f32 %v4699_v31, %v1848_v61  ;;  %v1933_v2 = vsub.f32 %v4729_v49, %v1848_v61 }
 0x5da   : > { %v4834_v3 = vpop.f32.mrf.mxu0 }
 0x5db   : > { %v3746_v30 = vpop.eup %3745  ;;  %v1891_v59 = vmax.f32 %v4824_v14, %v4834_v3  ;;  %v2016_v26 = vmul.f32 1.442695, %v1932_v60  ;;  %v2018_v19 = vmul.f32 1.442695, %v1933_v2 }
 0x5dc   : > { %v3748_v5 = vpop.eup %3747  ;;  %v2112_v12 = vpack.c.bf16 %v3746_v30, %v3742_v52 }
 0x5dd   : > { %1892 = vmax.xlane.f32.xlu1 %v1891_v59  ;;  %v2113_v9 = vpack.c.bf16 %v3748_v5, %v3744_v8  ;;  %3749 = vpow2.f32 %v2016_v26  ;;  %v4862_v60 = vpop.f32.mrf.mxu3 }
 0x5de   : > { %2292 = vmatmul.bf16.gmra.mxu2 %v2112_v12  ;;  %3751 = vpow2.f32 %v2018_v19 }
 0x5df   : > { %2381 = vmatmul.bf16.gmra.mxu1 %v2113_v9 }
 0x5e0   : > { %v1851_v40 = vpop.xlane.xlu2 %1850 }
 0x5e1   : > { %v1934_v21 = vsub.f32 %v4705_v37, %v1851_v40  ;;  %v1935_v10 = vsub.f32 %v4735_v51, %v1851_v40 }
 0x5e2   : > { %v4844_v31 = vpop.f32.mrf.mxu0 }
 0x5e3   : > { %v2020_v46 = vmul.f32 1.442695, %v1934_v21  ;;  %v2022_v13 = vmul.f32 1.442695, %v1935_v10  ;;  %v1894_v49 = vmax.f32 %v4832_v50, %v4844_v31  ;;  %v3750_v29 = vpop.eup %3749 }
 0x5e4   : > { %v3752_v24 = vpop.eup %3751 }
 0x5e5   : > { %3753 = vpow2.f32 %v2020_v46  ;;  %1895 = vmax.xlane.f32.xlu2 %v1894_v49  ;;  %v4870_v46 = vpop.f32.mrf.mxu3 }
 0x5e6   : > { %3755 = vpow2.f32 %v2022_v13 }
 0x5e8   : > { %v1854_v4 = vpop.xlane.xlu0 %1853 }
 0x5e9   : > { %v1936_v11 = vsub.f32 %v4715_v44, %v1854_v4  ;;  %v1937_v23 = vsub.f32 %v4739_v32, %v1854_v4 }
 0x5ea   : > { %v4848_v37 = vpop.f32.mrf.mxu0 }
 0x5eb   : > { %v3754_v51 = vpop.eup %3753  ;;  %v1897_v18 = vmax.f32 %v4842_v25, %v4848_v37  ;;  %v2024_v33 = vmul.f32 1.442695, %v1936_v11  ;;  %v2026_v48 = vmul.f32 1.442695, %v1937_v23 }
 0x5ec   : > { %v3756_v17 = vpop.eup %3755  ;;  %v2114_v36 = vpack.c.bf16 %v3754_v51, %v3750_v29 }
 0x5ed   : > { %1898 = vmax.xlane.f32.xlu0 %v1897_v18  ;;  %v2115_v20 = vpack.c.bf16 %v3756_v17, %v3752_v24  ;;  %3757 = vpow2.f32 %v2024_v33  ;;  %v4878_v23 = vpop.f32.mrf.mxu3 }
 0x5ee   : > { %2297 = vmatmul.bf16.gmra.mxu2 %v2114_v36  ;;  %3759 = vpow2.f32 %v2026_v48 }
 0x5ef   : > { %2386 = vmatmul.bf16.gmra.mxu1 %v2115_v20 }
 0x5f0   : > { %v1857_v47 = vpop.xlane.xlu1 %1856 }
 0x5f1   : > { %v1938_v61 = vsub.f32 %v4721_v22, %v1857_v47  ;;  %v1939_v44 = vsub.f32 %v4745_v62, %v1857_v47 }
 0x5f2   : > { %v4858_v52 = vpop.f32.mrf.mxu0 }
 0x5f3   : > { %v2028_v8 = vmul.f32 1.442695, %v1938_v61  ;;  %v2030_v30 = vmul.f32 1.442695, %v1939_v44  ;;  %v1900_v32 = vmax.f32 %v4853_v28, %v4858_v52  ;;  %v3758_v5 = vpop.eup %3757 }
 0x5f4   : > { %v3760_v2 = vpop.eup %3759 }
 0x5f5   : > { %3761 = vpow2.f32 %v2028_v8  ;;  %1901 = vmax.xlane.f32.xlu1 %v1900_v32 }
 0x5f6   : > { %3763 = vpow2.f32 %v2030_v30 }
 0x5f8   : > { %v1860_v59 = vpop.xlane.xlu2 %1859 }
 0x5f9   : > { %v1940_v12 = vsub.f32 %v4727_v53, %v1860_v59  ;;  %v1941_v19 = vsub.f32 %v4751_v63, %v1860_v59 }
 0x5fa   : > { %v4864_v22 = vpop.f32.mrf.mxu0 }
 0x5fb   : > { %v3762_v62 = vpop.eup %3761  ;;  %v1903_v9 = vmax.f32 %v4862_v60, %v4864_v22  ;;  %v2032_v10 = vmul.f32 1.442695, %v1940_v12  ;;  %v2034_v13 = vmul.f32 1.442695, %v1941_v19 }
 0x5fc   : > { %v3764_v26 = vpop.eup %3763  ;;  %v2116_v40 = vpack.c.bf16 %v3762_v62, %v3758_v5 }
 0x5fd   : > { %1904 = vmax.xlane.f32.xlu2 %v1903_v9  ;;  %v2117_v21 = vpack.c.bf16 %v3764_v26, %v3760_v2  ;;  %3765 = vpow2.f32 %v2032_v10 }
 0x5fe   : > { %2302 = vmatmul.bf16.gmra.mxu2 %v2116_v40  ;;  %3767 = vpow2.f32 %v2034_v13 }
 0x5ff   : > { %2391 = vmatmul.bf16.gmra.mxu1 %v2117_v21 }
 0x600   : > { %v1863_v49 = vpop.xlane.xlu0 %1862 }
 0x601   : > { %v1942_v4 = vsub.f32 %v4733_v56, %v1863_v49  ;;  %v1943_v53 = vsub.f32 %v4758_v0, %v1863_v49 }
 0x602   : > { %v4874_v29 = vpop.f32.mrf.mxu0 }
 0x603   : > { %v2036_v24 = vmul.f32 1.442695, %v1942_v4  ;;  %v2038_v51 = vmul.f32 1.442695, %v1943_v53  ;;  %v1906_v63 = vmax.f32 %v4870_v46, %v4874_v29  ;;  %v3766_v18 = vpop.eup %3765 }
 0x604   : > { %v3768_v17 = vpop.eup %3767 }
 0x605   : > { %3769 = vpow2.f32 %v2036_v24  ;;  %1907 = vmax.xlane.f32.xlu2 %v1906_v63 }
 0x606   : > { %3771 = vpow2.f32 %v2038_v51 }
 0x608   : > { %v1866_v11 = vpop.xlane.xlu1 %1865 }
 0x609   : > { %v1944_v36 = vsub.f32 %v4743_v57, %v1866_v11  ;;  %v1945_v48 = vsub.f32 %v4768_v15, %v1866_v11 }
 0x60a   : > { %v4880_v56 = vpop.f32.mrf.mxu0 }
 0x60b   : > { %v3770_v0 = vpop.eup %3769  ;;  %v1909_v20 = vmax.f32 %v4878_v23, %v4880_v56  ;;  %v2040_v44 = vmul.f32 1.442695, %v1944_v36  ;;  %v2042_v8 = vmul.f32 1.442695, %v1945_v48 }
 0x60c   : > { %v3772_v33 = vpop.eup %3771  ;;  %v2118_v47 = vpack.c.bf16 %v3770_v0, %v3766_v18 }
 0x60d   : > { %1910 = vmax.xlane.f32.xlu2 %v1909_v20  ;;  %v2119_v61 = vpack.c.bf16 %v3772_v33, %v3768_v17  ;;  %3773 = vpow2.f32 %v2040_v44  ;;  %v3926_v44 = vmov 32  }
 0x60e   : > { %2307 = vmatmul.bf16.gmra.mxu2 %v2118_v47  ;;  %3775 = vpow2.f32 %v2042_v8  ;;  %3701 = vset.pattern.permute.xlu0 %v3926_v44 }
 0x60f   : > { %2396 = vmatmul.bf16.gmra.mxu1 %v2119_v61  ;;  %3702 = vset.pattern.permute.xlu1 %v3926_v44 }
 0x610   : > { %v1869_v30 = vpop.xlane.xlu2 %1868  ;;  %3703 = vset.pattern.permute.xlu2 %v3926_v44 }
 0x611   : > { %v1946_v32 = vsub.f32 %v4749_v42, %v1869_v30  ;;  %v1947_v59 = vsub.f32 %v4772_v34, %v1869_v30 }
 0x613   : > { %v2044_v57 = vmul.f32 1.442695, %v1946_v32  ;;  %v2046_v5 = vmul.f32 1.442695, %v1947_v59  ;;  %v3774_v15 = vpop.eup %3773 }
 0x614   : > { %v3776_v62 = vpop.eup %3775 }
 0x615   : > { %3777 = vpow2.f32 %v2044_v57 }
 0x616   : > { %3779 = vpow2.f32 %v2046_v5 }
 0x618   : > { %v1872_v2 = vpop.xlane.xlu0 %1871 }
 0x619   : > { %v1948_v9 = vsub.f32 %v4756_v1, %v1872_v2  ;;  %v1949_v19 = vsub.f32 %v4782_v54, %v1872_v2 }
 0x61b   : > { %v3778_v12 = vpop.eup %3777  ;;  %v2048_v34 = vmul.f32 1.442695, %v1948_v9  ;;  %v2050_v10 = vmul.f32 1.442695, %v1949_v19 }
 0x61c   : > { %v3780_v26 = vpop.eup %3779  ;;  %v2362_v40 = vpop.f32.mrf.mxu1  ;;  %v2120_v21 = vpack.c.bf16 %v3778_v12, %v3774_v15 }
 0x61d   : > { %v2121_v42 = vpack.c.bf16 %v3780_v26, %v3776_v62  ;;  %3781 = vpow2.f32 %v2048_v34 }
 0x61e   : > { %2312 = vmatmul.bf16.gmra.mxu2 %v2120_v21  ;;  %3783 = vpow2.f32 %v2050_v10 }
 0x61f   : > { %2401 = vmatmul.bf16.gmra.mxu1 %v2121_v42 }
 0x620   : > { %v1875_v13 = vpop.xlane.xlu1 %1874 }
 0x621   : > { %v1950_v49 = vsub.f32 %v4766_v6, %v1875_v13  ;;  %v1951_v4 = vsub.f32 %v4788_v55, %v1875_v13  ;;  %v2273_v53 = vpop.f32.mrf.mxu2 }
 0x622   : > { %v4892_v24 = vadd.f32 %v2362_v40, %v2273_v53 }
 0x623   : > { %v2052_v1 = vmul.f32 1.442695, %v1950_v49  ;;  %v2054_v51 = vmul.f32 1.442695, %v1951_v4  ;;  %v3782_v11 = vpop.eup %3781 }
 0x624   : > { %v2364_v54 = vpop.f32.mrf.mxu1  ;;  %v3784_v17 = vpop.eup %3783 }
 0x625   : > { %3785 = vpow2.f32 %v2052_v1 }
 0x626   : > { %3787 = vpow2.f32 %v2054_v51 }
 0x628   : > { %v1878_v63 = vpop.xlane.xlu2 %1877 }
 0x629   : > { %v2275_v18 = vpop.f32.mrf.mxu2  ;;  %v1952_v6 = vsub.f32 %v4777_v38, %v1878_v63  ;;  %v1953_v20 = vsub.f32 %v4798_v7, %v1878_v63 }
 0x62a   : > { %v4894_v0 = vadd.f32 %v2364_v54, %v2275_v18 }
 0x62b   : > { %v3786_v36 = vpop.eup %3785  ;;  %v2056_v61 = vmul.f32 1.442695, %v1952_v6  ;;  %v2058_v8 = vmul.f32 1.442695, %v1953_v20 }
 0x62c   : > { %v3788_v55 = vpop.eup %3787  ;;  %v2367_v33 = vpop.f32.mrf.mxu1  ;;  %v2122_v48 = vpack.c.bf16 %v3786_v36, %v3782_v11 }
 0x62d   : > { %v2123_v47 = vpack.c.bf16 %v3788_v55, %v3784_v17  ;;  %3789 = vpow2.f32 %v2056_v61 }
 0x62e   : > { %2317 = vmatmul.bf16.gmra.mxu2 %v2122_v48  ;;  %3791 = vpow2.f32 %v2058_v8 }
 0x62f   : > { %2406 = vmatmul.bf16.gmra.mxu1 %v2123_v47 }
 0x630   : > { %v1881_v30 = vpop.xlane.xlu0 %1880 }
 0x631   : > { %v1954_v32 = vsub.f32 %v4786_v35, %v1881_v30  ;;  %v1955_v59 = vsub.f32 %v4804_v39, %v1881_v30  ;;  %v2278_v38 = vpop.f32.mrf.mxu2 }
 0x632   : > { %v4900_v57 = vadd.f32 %v2367_v33, %v2278_v38 }
 0x633   : > { %v2060_v7 = vmul.f32 1.442695, %v1954_v32  ;;  %v2062_v5 = vmul.f32 1.442695, %v1955_v59  ;;  %v3790_v62 = vpop.eup %3789 }
 0x634   : > { %v2369_v2 = vpop.f32.mrf.mxu1  ;;  %v3792_v9 = vpop.eup %3791 }
 0x635   : > { %3793 = vpow2.f32 %v2060_v7 }
 0x636   : > { %3795 = vpow2.f32 %v2062_v5 }
 0x638   : > { %v1884_v15 = vpop.xlane.xlu1 %1883 }
 0x639   : > { %v2280_v12 = vpop.f32.mrf.mxu2  ;;  %v1956_v26 = vsub.f32 %v4794_v43, %v1884_v15  ;;  %v1957_v39 = vsub.f32 %v4812_v58, %v1884_v15 }
 0x63a   : > { %v4903_v19 = vadd.f32 %v2369_v2, %v2280_v12 }
 0x63b   : > { %v3794_v35 = vpop.eup %3793  ;;  %v2064_v10 = vmul.f32 1.442695, %v1956_v26  ;;  %v2066_v13 = vmul.f32 1.442695, %v1957_v39 }
 0x63c   : > { %v3796_v40 = vpop.eup %3795  ;;  %v2372_v21 = vpop.f32.mrf.mxu1  ;;  %v2124_v42 = vpack.c.bf16 %v3794_v35, %v3790_v62 }
 0x63d   : > { %v2125_v34 = vpack.c.bf16 %v3796_v40, %v3792_v9  ;;  %3797 = vpow2.f32 %v2064_v10 }
 0x63e   : > { %2322 = vmatmul.bf16.gmra.mxu2 %v2124_v42  ;;  %3799 = vpow2.f32 %v2066_v13 }
 0x63f   : > { %2411 = vmatmul.bf16.gmra.mxu1 %v2125_v34 }
 0x640   : > { %v1887_v49 = vpop.xlane.xlu2 %1886 }
 0x641   : > { %v1958_v4 = vsub.f32 %v4802_v41, %v1887_v49  ;;  %v1959_v53 = vsub.f32 %v4818_v27, %v1887_v49  ;;  %v2283_v1 = vpop.f32.mrf.mxu2 }
 0x642   : > { %v4908_v43 = vadd.f32 %v2372_v21, %v2283_v1 }
 0x643   : > { %v2068_v51 = vmul.f32 1.442695, %v1958_v4  ;;  %v2070_v58 = vmul.f32 1.442695, %v1959_v53  ;;  %v3798_v63 = vpop.eup %3797 }
 0x644   : > { %3801 = vrcp.f32 %v4908_v43  ;;  %v2374_v54 = vpop.f32.mrf.mxu1  ;;  %v3800_v18 = vpop.eup %3799 }
 0x645   : > { %3803 = vpow2.f32 %v2068_v51 }
 0x646   : > { %3805 = vpow2.f32 %v2070_v58 }
 0x648   : > { %v1890_v11 = vpop.xlane.xlu0 %1889 }
 0x649   : > { %v2285_v17 = vpop.f32.mrf.mxu2  ;;  %v1960_v41 = vsub.f32 %v4816_v16, %v1890_v11  ;;  %v1961_v55 = vsub.f32 %v4828_v45, %v1890_v11 }
 0x64a   : > { %v3802_v36 = vpop.eup %3801  ;;  %v4912_v27 = vadd.f32 %v2374_v54, %v2285_v17 }
 0x64b   : > { %v3804_v6 = vpop.eup %3803  ;;  %2496 = vperm.xlu0 %3701, %v3802_v36   ;;  %v2072_v61 = vmul.f32 1.442695, %v1960_v41  ;;  %v2074_v44 = vmul.f32 1.442695, %v1961_v55 }
 0x64c   : > { %v3806_v20 = vpop.eup %3805  ;;  %3807 = vrcp.f32 %v4912_v27  ;;  %v2377_v33 = vpop.f32.mrf.mxu1  ;;  %v2126_v48 = vpack.c.bf16 %v3804_v6, %v3798_v63 }
 0x64d   : > { %v2127_v47 = vpack.c.bf16 %v3806_v20, %v3800_v18  ;;  %3809 = vpow2.f32 %v2072_v61 }
 0x64e   : > { %2327 = vmatmul.bf16.gmra.mxu2 %v2126_v48  ;;  %3811 = vpow2.f32 %v2074_v44 }
 0x64f   : > { %2416 = vmatmul.bf16.gmra.mxu1 %v2127_v47 }
 0x650   : > { %v1893_v8 = vpop.xlane.xlu1 %1892 }
 0x651   : > { %v1962_v30 = vsub.f32 %v4824_v14, %v1893_v8  ;;  %v1963_v16 = vsub.f32 %v4834_v3, %v1893_v8  ;;  %v2288_v32 = vpop.f32.mrf.mxu2 }
 0x652   : > { %v3808_v59 = vpop.eup %3807  ;;  %v4918_v45 = vadd.f32 %v2377_v33, %v2288_v32  ;;  %v3373_v33 = vld [vmem:[%s5223_s6 + $0x38] sm:$0xff] }
 0x653   : > { %v2076_v38 = vmul.f32 1.442695, %v1962_v30  ;;  %v2078_v7 = vmul.f32 1.442695, %v1963_v16  ;;  %2501 = vperm.xlu1 %3702, %v3808_v59   ;;  %v3810_v2 = vpop.eup %3809  ;;  %3660 = vmatpush.bf16.msrb.mxu3 %v3373_v33 }
 0x654   : > { %3813 = vrcp.f32 %v4918_v45  ;;  %v2379_v5 = vpop.f32.mrf.mxu1  ;;  %v3812_v62 = vpop.eup %3811  ;;  %3659 = vmatpush.bf16.msrb.mxu2 %v3373_v33  ;;  %2750 = vmatpush.bf16.msrb.mxu0 %v3373_v33 }
 0x655   : > { %3815 = vpow2.f32 %v2076_v38 }
 0x656   : > { %3817 = vpow2.f32 %v2078_v7 }
 0x658   : > { %v1896_v15 = vpop.xlane.xlu2 %1895 }
 0x659   : > { %v2290_v14 = vpop.f32.mrf.mxu2  ;;  %v1964_v3 = vsub.f32 %v4832_v50, %v1896_v15  ;;  %v1965_v35 = vsub.f32 %v4844_v31, %v1896_v15 }
 0x65a   : > { %v3814_v12 = vpop.eup %3813  ;;  %v4922_v9 = vadd.f32 %v2379_v5, %v2290_v14 }
 0x65b   : > { %v3816_v26 = vpop.eup %3815  ;;  %2506 = vperm.xlu2 %3703, %v3814_v12   ;;  %v2080_v34 = vmul.f32 1.442695, %v1964_v3  ;;  %v2082_v10 = vmul.f32 1.442695, %v1965_v35 }
 0x65c   : > { %v3818_v39 = vpop.eup %3817  ;;  %3819 = vrcp.f32 %v4922_v9  ;;  %v2382_v40 = vpop.f32.mrf.mxu1  ;;  %v2128_v21 = vpack.c.bf16 %v3816_v26, %v3810_v2 }
 0x65d   : > { %v2129_v42 = vpack.c.bf16 %v3818_v39, %v3812_v62  ;;  %3821 = vpow2.f32 %v2080_v34 }
 0x65e   : > { %2332 = vmatmul.bf16.gmra.mxu2 %v2128_v21  ;;  %3823 = vpow2.f32 %v2082_v10 }
 0x65f   : > { %2421 = vmatmul.bf16.gmra.mxu1 %v2129_v42 }
 0x660   : > { %v1899_v13 = vpop.xlane.xlu0 %1898 }
 0x661   : > { %v1966_v49 = vsub.f32 %v4842_v25, %v1899_v13  ;;  %v1967_v50 = vsub.f32 %v4848_v37, %v1899_v13  ;;  %v2293_v4 = vpop.f32.mrf.mxu2 }
 0x662   : > { %v3820_v53 = vpop.eup %3819  ;;  %v4928_v31 = vadd.f32 %v2382_v40, %v2293_v4 }
 0x663   : > { %v2084_v1 = vmul.f32 1.442695, %v1966_v49  ;;  %v2086_v51 = vmul.f32 1.442695, %v1967_v50  ;;  %2511 = vperm.xlu1 %3702, %v3820_v53   ;;  %v3822_v54 = vpop.eup %3821 }
 0x664   : > { %3825 = vrcp.f32 %v4928_v31  ;;  %v2384_v58 = vpop.f32.mrf.mxu1  ;;  %v3824_v11 = vpop.eup %3823 }
 0x665   : > { %3827 = vpow2.f32 %v2084_v1 }
 0x666   : > { %3829 = vpow2.f32 %v2086_v51 }
 0x668   : > { %v1902_v63 = vpop.xlane.xlu1 %1901 }
 0x669   : > { %v2295_v25 = vpop.f32.mrf.mxu2  ;;  %v1968_v37 = vsub.f32 %v4853_v28, %v1902_v63  ;;  %v1969_v41 = vsub.f32 %v4858_v52, %v1902_v63 }
 0x66a   : > { %v3826_v18 = vpop.eup %3825  ;;  %v4932_v17 = vadd.f32 %v2384_v58, %v2295_v25  ;;  %v3372_v25 = vld [vmem:[%s5223_s6 + $0x30] sm:$0xff] }
 0x66b   : > { %v3828_v36 = vpop.eup %3827  ;;  %2516 = vperm.xlu1 %3702, %v3826_v18   ;;  %v2088_v47 = vmul.f32 1.442695, %v1968_v37  ;;  %v2090_v28 = vmul.f32 1.442695, %v1969_v41  ;;  %3662 = vmatpush.bf16.msrb.mxu3 %v3372_v25 }
 0x66c   : > { %v3830_v6 = vpop.eup %3829  ;;  %3831 = vrcp.f32 %v4932_v17  ;;  %v2387_v55 = vpop.f32.mrf.mxu1  ;;  %v2130_v20 = vpack.c.bf16 %v3828_v36, %v3822_v54  ;;  %3661 = vmatpush.bf16.msrb.mxu2 %v3372_v25  ;;  %2751 = vmatpush.bf16.msrb.mxu0 %v3372_v25 }
 0x66d   : > { %v2131_v48 = vpack.c.bf16 %v3830_v6, %v3824_v11  ;;  %3833 = vpow2.f32 %v2088_v47 }
 0x66e   : > { %2337 = vmatmul.bf16.gmra.mxu2 %v2130_v20  ;;  %3835 = vpow2.f32 %v2090_v28  ;;  %v3370_v20 = vld [vmem:[%s5223_s6 + $0x20] sm:$0xff] }
 0x66f   : > { %2426 = vmatmul.bf16.gmra.mxu1 %v2131_v48 }
 0x670   : > { %v1905_v61 = vpop.xlane.xlu2 %1904 }
 0x671   : > { %v1970_v52 = vsub.f32 %v4862_v60, %v1905_v61  ;;  %v1971_v44 = vsub.f32 %v4864_v22, %v1905_v61  ;;  %v2298_v8 = vpop.f32.mrf.mxu2  ;;  %v3369_v61 = vld [vmem:[%s5223_s6 + $0x18] sm:$0xff] }
 0x672   : > { %v3832_v30 = vpop.eup %3831  ;;  %v4941_v16 = vadd.f32 %v2387_v55, %v2298_v8  ;;  %v3371_v55 = vld [vmem:[%s5223_s6 + $0x28] sm:$0xff] }
 0x673   : > { %v2092_v32 = vmul.f32 1.442695, %v1970_v52  ;;  %v2094_v59 = vmul.f32 1.442695, %v1971_v44  ;;  %2521 = vperm.xlu0 %3701, %v3832_v30   ;;  %v3834_v7 = vpop.eup %3833  ;;  %3664 = vmatpush.bf16.msrb.mxu3 %v3371_v55  ;;  %v3368_v52 = vld [vmem:[%s5223_s6 + $0x10] sm:$0xff] }
 0x674   : > { %3837 = vrcp.f32 %v4941_v16  ;;  %v2389_v38 = vpop.f32.mrf.mxu1  ;;  %v3836_v2 = vpop.eup %3835  ;;  %3663 = vmatpush.bf16.msrb.mxu2 %v3371_v55  ;;  %2752 = vmatpush.bf16.msrb.mxu0 %v3371_v55 }
 0x675   : > { %3839 = vpow2.f32 %v2092_v32 }
 0x676   : > { %3841 = vpow2.f32 %v2094_v59  ;;  %v3367_v59 = vld [vmem:[%s5223_s6 + $0x8] sm:$0xff] }
 0x677   : > { %3666 = vmatpush.bf16.msrb.mxu3 %v3370_v20 }
 0x678   : > { %v1908_v5 = vpop.xlane.xlu2 %1907  ;;  %3665 = vmatpush.bf16.msrb.mxu2 %v3370_v20  ;;  %2753 = vmatpush.bf16.msrb.mxu0 %v3370_v20 }
 0x679   : > { %v2300_v60 = vpop.f32.mrf.mxu2  ;;  %v1972_v22 = vsub.f32 %v4870_v46, %v1908_v5  ;;  %v1973_v12 = vsub.f32 %v4874_v29, %v1908_v5 }
 0x67a   : > { %v3838_v15 = vpop.eup %3837  ;;  %v4945_v62 = vadd.f32 %v2389_v38, %v2300_v60  ;;  %v3366_v38 = vld [vmem:[%s5223_s6] sm:$0xff] }
 0x67b   : > { %v3840_v14 = vpop.eup %3839  ;;  %2526 = vperm.xlu2 %3703, %v3838_v15   ;;  %v2096_v40 = vmul.f32 1.442695, %v1972_v22  ;;  %v2098_v21 = vmul.f32 1.442695, %v1973_v12  ;;  %3668 = vmatpush.bf16.msrb.mxu3 %v3369_v61 }
 0x67c   : > { %v3842_v3 = vpop.eup %3841  ;;  %3843 = vrcp.f32 %v4945_v62  ;;  %v2392_v26 = vpop.f32.mrf.mxu1  ;;  %v2132_v35 = vpack.c.bf16 %v3840_v14, %v3834_v7  ;;  %3667 = vmatpush.bf16.msrb.mxu2 %v3369_v61  ;;  %2754 = vmatpush.bf16.msrb.mxu0 %v3369_v61 }
 0x67d   : > { %v2133_v39 = vpack.c.bf16 %v3842_v3, %v3836_v2  ;;  %3845 = vpow2.f32 %v2096_v40 }
 0x67e   : > { %2342 = vmatmul.bf16.gmra.mxu2 %v2132_v35  ;;  %3847 = vpow2.f32 %v2098_v21 }
 0x67f   : > { %2431 = vmatmul.bf16.gmra.mxu1 %v2133_v39  ;;  %3670 = vmatpush.bf16.msrb.mxu3 %v3368_v52 }
 0x680   : > { %v1911_v42 = vpop.xlane.xlu2 %1910  ;;  %3669 = vmatpush.bf16.msrb.mxu2 %v3368_v52  ;;  %2755 = vmatpush.bf16.msrb.mxu0 %v3368_v52 }
 0x681   : > { %v1974_v34 = vsub.f32 %v4878_v23, %v1911_v42  ;;  %v1975_v46 = vsub.f32 %v4880_v56, %v1911_v42  ;;  %v2303_v10 = vpop.f32.mrf.mxu2 }
 0x682   : > { %v3844_v13 = vpop.eup %3843  ;;  %v4951_v29 = vadd.f32 %v2392_v26, %v2303_v10 }
 0x683   : > { %v2100_v49 = vmul.f32 1.442695, %v1974_v34  ;;  %v2102_v50 = vmul.f32 1.442695, %v1975_v46  ;;  %2531 = vperm.xlu1 %3702, %v3844_v13   ;;  %v3846_v53 = vpop.eup %3845  ;;  %3672 = vmatpush.bf16.msrb.mxu3 %v3367_v59 }
 0x684   : > { %3849 = vrcp.f32 %v4951_v29  ;;  %v2394_v4 = vpop.f32.mrf.mxu1  ;;  %v3848_v1 = vpop.eup %3847  ;;  %3671 = vmatpush.bf16.msrb.mxu2 %v3367_v59  ;;  %2756 = vmatpush.bf16.msrb.mxu0 %v3367_v59 }
 0x685   : > { %3851 = vpow2.f32 %v2100_v49 }
 0x686   : > { %3853 = vpow2.f32 %v2102_v50 }
 0x687   : > { %3674 = vmatpush.bf16.msrb.mxu3 %v3366_v38 }
 0x688   : > { %3673 = vmatpush.bf16.msrb.mxu2 %v3366_v38  ;;  %2757 = vmatpush.bf16.msrb.mxu0 %v3366_v38 }
 0x689   : > { %v2305_v51 = vpop.f32.mrf.mxu2 }
 0x68a   : > { %v3850_v23 = vpop.eup %3849  ;;  %v4954_v58 = vadd.f32 %v2394_v4, %v2305_v51 }
 0x68b   : > { %v3852_v56 = vpop.eup %3851  ;;  %2536 = vperm.xlu0 %3701, %v3850_v23  }
 0x68c   : > { %v3854_v54 = vpop.eup %3853  ;;  %3855 = vrcp.f32 %v4954_v58  ;;  %v2397_v63 = vpop.f32.mrf.mxu1  ;;  %v2134_v11 = vpack.c.bf16 %v3852_v56, %v3846_v53 }
 0x68d   : > { %v2135_v18 = vpack.c.bf16 %v3854_v54, %v3848_v1 }
 0x68e   : > { %2347 = vmatmul.bf16.gmra.mxu2 %v2134_v11 }
 0x68f   : > { %2436 = vmatmul.bf16.gmra.mxu1 %v2135_v18 }
 0x691   : > { %v2308_v37 = vpop.f32.mrf.mxu2 }
 0x692   : > { %v3856_v36 = vpop.eup %3855  ;;  %v4960_v41 = vadd.f32 %v2397_v63, %v2308_v37 }
 0x693   : > { %2541 = vperm.xlu2 %3703, %v3856_v36  }
 0x694   : > { %3857 = vrcp.f32 %v4960_v41  ;;  %v2399_v6 = vpop.f32.mrf.mxu1 }
 0x699   : > { %v2310_v33 = vpop.f32.mrf.mxu2 }
 0x69a   : > { %v3858_v48 = vpop.eup %3857  ;;  %v4969_v47 = vadd.f32 %v2399_v6, %v2310_v33 }
 0x69b   : > { %2546 = vperm.xlu1 %3702, %v3858_v48  }
 0x69c   : > { %3859 = vrcp.f32 %v4969_v47  ;;  %v2402_v28 = vpop.f32.mrf.mxu1 }
 0x6a1   : > { %v2313_v44 = vpop.f32.mrf.mxu2 }
 0x6a2   : > { %v3860_v8 = vpop.eup %3859  ;;  %v4978_v30 = vadd.f32 %v2402_v28, %v2313_v44 }
 0x6a3   : > { %2551 = vperm.xlu0 %3701, %v3860_v8  }
 0x6a4   : > { %3861 = vrcp.f32 %v4978_v30  ;;  %v2404_v32 = vpop.f32.mrf.mxu1 }
 0x6a9   : > { %v2315_v7 = vpop.f32.mrf.mxu2 }
 0x6aa   : > { %v3862_v5 = vpop.eup %3861  ;;  %v4987_v2 = vadd.f32 %v2404_v32, %v2315_v7 }
 0x6ab   : > { %2556 = vperm.xlu2 %3703, %v3862_v5  }
 0x6ac   : > { %3863 = vrcp.f32 %v4987_v2  ;;  %v2407_v60 = vpop.f32.mrf.mxu1 }
 0x6b1   : > { %v2318_v15 = vpop.f32.mrf.mxu2 }
 0x6b2   : > { %v3864_v22 = vpop.eup %3863  ;;  %v4990_v14 = vadd.f32 %v2407_v60, %v2318_v15 }
 0x6b3   : > { %2561 = vperm.xlu1 %3702, %v3864_v22  }
 0x6b4   : > { %3865 = vrcp.f32 %v4990_v14  ;;  %v2409_v12 = vpop.f32.mrf.mxu1 }
 0x6b5   : > { %v2507_v63 = vpop.permute.xlu2 %2506 }
 0x6b6   : > { %v2640_v11 = vmul.f32 %v2507_v63, %v4918_v45 }
 0x6b9   : > { %v2320_v3 = vpop.f32.mrf.mxu2 }
 0x6ba   : > { %v3866_v26 = vpop.eup %3865  ;;  %v4993_v35 = vadd.f32 %v2409_v12, %v2320_v3 }
 0x6bb   : > { %2566 = vperm.xlu0 %3701, %v3866_v26  }
 0x6bc   : > { %3867 = vrcp.f32 %v4993_v35  ;;  %v2412_v39 = vpop.f32.mrf.mxu1 }
 0x6bd   : > { %v2497_v34 = vpop.permute.xlu0 %2496 }
 0x6be   : > { %v2638_v13 = vmul.f32 %v2497_v34, %v4908_v43 }
 0x6c1   : > { %v2323_v40 = vpop.f32.mrf.mxu2 }
 0x6c2   : > { %v3868_v21 = vpop.eup %3867  ;;  %v4996_v42 = vadd.f32 %v2412_v39, %v2323_v40 }
 0x6c3   : > { %2571 = vperm.xlu2 %3703, %v3868_v21  }
 0x6c4   : > { %3869 = vrcp.f32 %v4996_v42  ;;  %v2414_v46 = vpop.f32.mrf.mxu1 }
 0x6c5   : > { %v2502_v10 = vpop.permute.xlu1 %2501 }
 0x6c6   : > { %v2639_v49 = vmul.f32 %v2502_v10, %v4912_v27 }
 0x6c8   : > { %v2668_v50 = vpack.c.bf16 %v2639_v49, %v2638_v13 }
 0x6c9   : > { %v2325_v4 = vpop.f32.mrf.mxu2 }
 0x6ca   : > { %v3870_v53 = vpop.eup %3869  ;;  %v5001_v1 = vadd.f32 %v2414_v46, %v2325_v4  ;;  %2768 = vmatmul.bf16.vlgmr.msrb.gmra.mxu3 %v2668_v50 }
 0x6cb   : > { %2576 = vperm.xlu1 %3702, %v3870_v53  }
 0x6cc   : > { %3871 = vrcp.f32 %v5001_v1  ;;  %v2417_v51 = vpop.f32.mrf.mxu1 }
 0x6d1   : > { %v2328_v23 = vpop.f32.mrf.mxu2 }
 0x6d2   : > { %v3872_v56 = vpop.eup %3871  ;;  %v5004_v54 = vadd.f32 %v2417_v51, %v2328_v23 }
 0x6d3   : > { %2581 = vperm.xlu0 %3701, %v3872_v56  }
 0x6d4   : > { %3873 = vrcp.f32 %v5004_v54  ;;  %v2419_v43 = vpop.f32.mrf.mxu1 }
 0x6d5   : > { %v2512_v27 = vpop.permute.xlu1 %2511  ;;  %v2527_v15 = vpop.permute.xlu2 %2526 }
 0x6d6   : > { %v2641_v25 = vmul.f32 %v2512_v27, %v4922_v9  ;;  %v2644_v22 = vmul.f32 %v2527_v15, %v4941_v16 }
 0x6d8   : > { %v2669_v18 = vpack.c.bf16 %v2641_v25, %v2640_v11 }
 0x6d9   : > { %v2330_v37 = vpop.f32.mrf.mxu2 }
 0x6da   : > { %v3874_v36 = vpop.eup %3873  ;;  %v5009_v6 = vadd.f32 %v2419_v43, %v2330_v37  ;;  %2773 = vmatmul.bf16.gmra.mxu3 %v2669_v18 }
 0x6db   : > { %2586 = vperm.xlu2 %3703, %v3874_v36  }
 0x6dc   : > { %3875 = vrcp.f32 %v5009_v6  ;;  %v2422_v55 = vpop.f32.mrf.mxu1 }
 0x6dd   : > { %v2517_v28 = vpop.permute.xlu1 %2516 }
 0x6de   : > { %v2642_v61 = vmul.f32 %v2517_v28, %v4928_v31 }
 0x6e1   : > { %v2333_v20 = vpop.f32.mrf.mxu2 }
 0x6e2   : > { %v3876_v33 = vpop.eup %3875  ;;  %v5012_v48 = vadd.f32 %v2422_v55, %v2333_v20 }
 0x6e3   : > { %2591 = vperm.xlu1 %3702, %v3876_v33  }
 0x6e4   : > { %3877 = vrcp.f32 %v5012_v48  ;;  %v2424_v45 = vpop.f32.mrf.mxu1 }
 0x6e5   : > { %v2522_v9 = vpop.permute.xlu0 %2521 }
 0x6e6   : > { %v2643_v52 = vmul.f32 %v2522_v9, %v4932_v17 }
 0x6e8   : > { %v2670_v44 = vpack.c.bf16 %v2643_v52, %v2642_v61 }
 0x6e9   : > { %v2335_v8 = vpop.f32.mrf.mxu2 }
 0x6ea   : > { %v3878_v32 = vpop.eup %3877  ;;  %v5017_v59 = vadd.f32 %v2424_v45, %v2335_v8  ;;  %2778 = vmatmul.bf16.gmra.mxu3 %v2670_v44 }
 0x6eb   : > { %2596 = vperm.xlu0 %3701, %v3878_v32  }
 0x6ec   : > { %3879 = vrcp.f32 %v5017_v59  ;;  %v2427_v38 = vpop.f32.mrf.mxu1 }
 0x6ed   : > { %v2542_v16 = vpop.permute.xlu2 %2541 }
 0x6ee   : > { %v2647_v50 = vmul.f32 %v2542_v16, %v4954_v58 }
 0x6f1   : > { %v2338_v7 = vpop.f32.mrf.mxu2 }
 0x6f2   : > { %v3880_v5 = vpop.eup %3879  ;;  %v5020_v60 = vadd.f32 %v2427_v38, %v2338_v7 }
 0x6f3   : > { %2601 = vperm.xlu2 %3703, %v3880_v5  }
 0x6f4   : > { %3881 = vrcp.f32 %v5020_v60  ;;  %v2429_v31 = vpop.f32.mrf.mxu1 }
 0x6f5   : > { %v2532_v17 = vpop.permute.xlu1 %2531 }
 0x6f6   : > { %v2645_v12 = vmul.f32 %v2532_v17, %v4945_v62 }
 0x6f8   : > { %v2671_v3 = vpack.c.bf16 %v2645_v12, %v2644_v22  ;;  %v5057_v12 = vld [vmem:[%s5224_s7] ss:$0 sm:$0xff] }
 0x6f9   : > { %v2340_v26 = vpop.f32.mrf.mxu2 }
 0x6fa   : > { %v3882_v39 = vpop.eup %3881  ;;  %v5025_v40 = vadd.f32 %v2429_v31, %v2340_v26  ;;  %2783 = vmatmul.bf16.gmra.mxu3 %v2671_v3  ;;  %v1386_v3 = vld [vmem:[%s4011_s20 + $0x20] sm:$0xff] }
 0x6fb   : > { %2606 = vperm.xlu1 %3702, %v3882_v39   ;;  %v1387_v39 = vld [vmem:[%s4011_s20 + $0x28] sm:$0xff] }
 0x6fc   : > { %3883 = vrcp.f32 %v5025_v40  ;;  %v2432_v21 = vpop.f32.mrf.mxu1 }
 0x6fd   : > { %v2537_v34 = vpop.permute.xlu0 %2536  ;;  %3885 = vrcp.f32 %v4900_v57 }
 0x6fe   : > { %v2646_v62 = vmul.f32 %v2537_v34, %v4951_v29 }
 0x700   : > { %v2672_v4 = vpack.c.bf16 %v2647_v50, %v2646_v62 }
 0x701   : > { %v2343_v46 = vpop.f32.mrf.mxu2 }
 0x702   : > { %v3884_v10 = vpop.eup %3883  ;;  %v5028_v13 = vadd.f32 %v2432_v21, %v2343_v46 }
 0x703   : > { %2611 = vperm.xlu0 %3701, %v3884_v10   ;;  %v3886_v53 = vpop.eup %3885 }
 0x704   : > { %3887 = vrcp.f32 %v5028_v13  ;;  %v2434_v49 = vpop.f32.mrf.mxu1 }
 0x705   : > { %3889 = vrcp.f32 %v4903_v19  ;;  %v2557_v52 = vpop.permute.xlu2 %2556 }
 0x709   : > { %v2345_v51 = vpop.f32.mrf.mxu2 }
 0x70a   : > { %v3888_v23 = vpop.eup %3887  ;;  %v5034_v56 = vadd.f32 %v2434_v49, %v2345_v51  ;;  %2788 = vmatmul.bf16.gmra.mxu3 %v2672_v4  ;;  %v1388_v49 = vld [vmem:[%s4011_s20 + $0x30] sm:$0xff] }
 0x70b   : > { %2486 = vperm.xlu0 %3701, %v3886_v53   ;;  %2616 = vperm.xlu2 %3703, %v3888_v23   ;;  %v3890_v29 = vpop.eup %3889  ;;  %v1389_v23 = vld [vmem:[%s4011_s20 + $0x38] sm:$0xff] }
 0x70c   : > { %3891 = vrcp.f32 %v5034_v56  ;;  %v2437_v63 = vpop.f32.mrf.mxu1 }
 0x70d   : > { %3893 = vrcp.f32 %v4892_v24  ;;  %v2547_v58 = vpop.permute.xlu1 %2546 }
 0x70e   : > { %v2648_v18 = vmul.f32 %v2547_v58, %v4960_v41 }
 0x711   : > { %v2348_v43 = vpop.f32.mrf.mxu2 }
 0x712   : > { %v3892_v27 = vpop.eup %3891  ;;  %v5038_v11 = vadd.f32 %v2437_v63, %v2348_v43 }
 0x713   : > { %2621 = vperm.xlu1 %3702, %v3892_v27   ;;  %2491 = vperm.xlu2 %3703, %v3890_v29   ;;  %v3894_v55 = vpop.eup %3893 }
 0x714   : > { %3895 = vrcp.f32 %v5038_v11  ;;  %v2439_v20 = vpop.f32.mrf.mxu1 }
 0x715   : > { %v2552_v25 = vpop.permute.xlu0 %2551  ;;  %3897 = vrcp.f32 %v4894_v0 }
 0x716   : > { %v2649_v37 = vmul.f32 %v2552_v25, %v4969_v47  ;;  %v2650_v47 = vmul.f32 %v2557_v52, %v4978_v30  ;;  %v1390_v25 = vld [vmem:[%s4011_s20 + $0x40] sm:$0xff] }
 0x718   : > { %v2673_v36 = vpack.c.bf16 %v2649_v37, %v2648_v18 }
 0x719   : > { %v2350_v33 = vpop.f32.mrf.mxu2 }
 0x71a   : > { %v3896_v28 = vpop.eup %3895  ;;  %v5044_v45 = vadd.f32 %v2439_v20, %v2350_v33  ;;  %2793 = vmatmul.bf16.gmra.mxu3 %v2673_v36 }
 0x71b   : > { %2476 = vperm.xlu2 %3703, %v3894_v55   ;;  %2626 = vperm.xlu1 %3702, %v3896_v28   ;;  %v3898_v9 = vpop.eup %3897 }
 0x71c   : > { %3899 = vrcp.f32 %v5044_v45 }
 0x71d   : > { %v2572_v38 = vpop.permute.xlu2 %2571 }
 0x71e   : > { %v2653_v5 = vmul.f32 %v2572_v38, %v4993_v35 }
 0x722   : > { %v3900_v61 = vpop.eup %3899 }
 0x723   : > { %2481 = vperm.xlu1 %3702, %v3898_v9   ;;  %2631 = vperm.xlu0 %3701, %v3900_v61  }
 0x725   : > { %v2562_v41 = vpop.permute.xlu1 %2561 }
 0x726   : > { %v2651_v44 = vmul.f32 %v2562_v41, %v4987_v2 }
 0x728   : > { %v2674_v8 = vpack.c.bf16 %v2651_v44, %v2650_v47 }
 0x72a   : > { %2798 = vmatmul.bf16.gmra.mxu3 %v2674_v8  ;;  %v1392_v8 = vld [vmem:[%s4011_s20 + $0x50] sm:$0xff] }
 0x72d   : > { %v2567_v32 = vpop.permute.xlu0 %2566 }
 0x72e   : > { %v2652_v7 = vmul.f32 %v2567_v32, %v4990_v14 }
 0x730   : > { %v2675_v15 = vpack.c.bf16 %v2653_v5, %v2652_v7 }
 0x73a   : > { %2803 = vmatmul.bf16.gmra.mxu3 %v2675_v15 }
 0x73d   : > { %v2577_v31 = vpop.permute.xlu1 %2576 }
 0x73e   : > { %v2654_v22 = vmul.f32 %v2577_v31, %v4996_v42  ;;  %v1393_v31 = vld [vmem:[%s4011_s20 + $0x58] sm:$0xff] }
 0x745   : > { %v2582_v17 = vpop.permute.xlu0 %2581 }
 0x746   : > { %v2655_v30 = vmul.f32 %v2582_v17, %v5001_v1  ;;  %v2587_v1 = vpop.permute.xlu2 %2586 }
 0x747   : > { %v2656_v34 = vmul.f32 %v2587_v1, %v5004_v54 }
 0x748   : > { %v2676_v2 = vpack.c.bf16 %v2655_v30, %v2654_v22 }
 0x74a   : > { %2808 = vmatmul.bf16.gmra.mxu3 %v2676_v2 }
 0x74d   : > { %v2769_v14 = vpop.f32.mrf.mxu3 }
 0x74e   : > { %v2770_v35 = vadd.f32 %v5057_v12, %v2769_v14  ;;  %v2602_v54 = vpop.permute.xlu2 %2601  ;;  %v1394_v14 = vld [vmem:[%s4011_s20 + $0x60] sm:$0xff] }
 0x74f   : > { %v2659_v29 = vmul.f32 %v2602_v54, %v5017_v59  ;;  %v1391_v59 = vld [vmem:[%s4011_s20 + $0x48] sm:$0xff] }
 0x750   : > { %v2843_v42 = vadd.f32 %v2770_v35, %v1386_v3 }
 0x752   : > { %2876 = vst.msk [vmem:[%s5066_s23 + $0x20] sm:$0xff] %vm370_vm0, %v2843_v42 }
 0x755   : > { %v2592_v26 = vpop.permute.xlu1 %2591  ;;  %v2771_v21 = vpop.f32.mrf.mxu3 }
 0x756   : > { %v2657_v46 = vmul.f32 %v2592_v26, %v5009_v6  ;;  %v2772_v10 = vadd.f32 %v5057_v12, %v2771_v21 }
 0x758   : > { %v2677_v16 = vpack.c.bf16 %v2657_v46, %v2656_v34  ;;  %v2844_v62 = vadd.f32 %v2772_v10, %v1387_v39  ;;  %v1395_v10 = vld [vmem:[%s4011_s20 + $0x68] sm:$0xff] }
 0x75a   : > { %2877 = vst.msk [vmem:[%s5066_s23 + $0x28] sm:$0xff] %vm370_vm0, %v2844_v62  ;;  %2813 = vmatmul.bf16.gmra.mxu3 %v2677_v16 }
 0x75d   : > { %v2774_v50 = vpop.f32.mrf.mxu3  ;;  %v2597_v51 = vpop.permute.xlu0 %2596 }
 0x75e   : > { %v2775_v4 = vadd.f32 %v5057_v12, %v2774_v50  ;;  %v2658_v6 = vmul.f32 %v2597_v51, %v5012_v48 }
 0x760   : > { %v2845_v53 = vadd.f32 %v2775_v4, %v1388_v49  ;;  %v2678_v27 = vpack.c.bf16 %v2659_v29, %v2658_v6 }
 0x762   : > { %2878 = vst.msk [vmem:[%s5066_s23 + $0x30] sm:$0xff] %vm370_vm0, %v2845_v53  ;;  %v1397_v53 = vld [vmem:[%s4011_s20 + $0x78] sm:$0xff] }
 0x765   : > { %v2776_v63 = vpop.f32.mrf.mxu3  ;;  %v2617_v48 = vpop.permute.xlu2 %2616 }
 0x766   : > { %v2777_v43 = vadd.f32 %v5057_v12, %v2776_v63  ;;  %v2662_v22 = vmul.f32 %v2617_v48, %v5028_v13 }
 0x768   : > { %v2846_v58 = vadd.f32 %v2777_v43, %v1389_v23  ;;  %v1398_v23 = vld [vmem:[%s4011_s20 + $0x80] sm:$0xff] }
 0x76a   : > { %2879 = vst.msk [vmem:[%s5066_s23 + $0x38] sm:$0xff] %vm370_vm0, %v2846_v58  ;;  %2818 = vmatmul.bf16.gmra.mxu3 %v2678_v27  ;;  %v1399_v27 = vld [vmem:[%s4011_s20 + $0x88] sm:$0xff] }
 0x76d   : > { %v2779_v18 = vpop.f32.mrf.mxu3  ;;  %v2607_v55 = vpop.permute.xlu1 %2606 }
 0x76e   : > { %v2780_v37 = vadd.f32 %v5057_v12, %v2779_v18  ;;  %v2660_v28 = vmul.f32 %v2607_v55, %v5020_v60  ;;  %v2492_v47 = vpop.permute.xlu2 %2491 }
 0x76f   : > { %v2637_v38 = vmul.f32 %v2492_v47, %v4903_v19  ;;  %v1403_v47 = vld [vmem:[%s4011_s20 + $0xa8] sm:$0xff] }
 0x770   : > { %v2847_v36 = vadd.f32 %v2780_v37, %v1390_v25  ;;  %v1400_v37 = vld [vmem:[%s4011_s20 + $0x90] sm:$0xff] }
 0x772   : > { %2880 = vst.msk [vmem:[%s5066_s23 + $0x40] sm:$0xff] %vm370_vm0, %v2847_v36 }
 0x775   : > { %v2612_v20 = vpop.permute.xlu0 %2611  ;;  %v2781_v33 = vpop.f32.mrf.mxu3 }
 0x776   : > { %v2661_v9 = vmul.f32 %v2612_v20, %v5025_v40  ;;  %v2782_v61 = vadd.f32 %v5057_v12, %v2781_v33  ;;  %v2477_v13 = vpop.permute.xlu2 %2476  ;;  %v1401_v20 = vld [vmem:[%s4011_s20 + $0x98] sm:$0xff] }
 0x777   : > { %v2634_v39 = vmul.f32 %v2477_v13, %v4892_v24  ;;  %v1396_v24 = vld [vmem:[%s4011_s20 + $0x70] sm:$0xff] }
 0x778   : > { %v2679_v52 = vpack.c.bf16 %v2661_v9, %v2660_v28  ;;  %v2848_v41 = vadd.f32 %v2782_v61, %v1391_v59  ;;  %v1402_v9 = vld [vmem:[%s4011_s20 + $0xa0] sm:$0xff] }
 0x77a   : > { %2881 = vst.msk [vmem:[%s5066_s23 + $0x48] sm:$0xff] %vm370_vm0, %v2848_v41  ;;  %2823 = vmatmul.bf16.gmra.mxu3 %v2679_v52 }
 0x77d   : > { %v2487_v44 = vpop.permute.xlu0 %2486  ;;  %v2784_v32 = vpop.f32.mrf.mxu3 }
 0x77e   : > { %v2636_v60 = vmul.f32 %v2487_v44, %v4900_v57  ;;  %v2785_v7 = vadd.f32 %v5057_v12, %v2784_v32 }
 0x780   : > { %v2667_v40 = vpack.c.bf16 %v2637_v38, %v2636_v60  ;;  %v2849_v5 = vadd.f32 %v2785_v7, %v1392_v8  ;;  %v1404_v38 = vld [vmem:[%s4011_s20 + $0xb0] sm:$0xff] }
 0x782   : > { %2882 = vst.msk [vmem:[%s5066_s23 + $0x50] sm:$0xff] %vm370_vm0, %v2849_v5  ;;  %2763 = vmatmul.bf16.vlgmr.msrb.gmra.mxu2 %v2667_v40  ;;  %v1405_v5 = vld [vmem:[%s4011_s20 + $0xb8] sm:$0xff] }
 0x785   : > { %v2622_v15 = vpop.permute.xlu1 %2621  ;;  %v2786_v17 = vpop.f32.mrf.mxu3 }
 0x786   : > { %v2663_v30 = vmul.f32 %v2622_v15, %v5034_v56  ;;  %v2787_v19 = vadd.f32 %v5057_v12, %v2786_v17 }
 0x788   : > { %v2680_v2 = vpack.c.bf16 %v2663_v30, %v2662_v22  ;;  %v2850_v57 = vadd.f32 %v2787_v19, %v1393_v31  ;;  %v1406_v22 = vld [vmem:[%s4011_s20 + $0xc0] sm:$0xff] }
 0x78a   : > { %2883 = vst.msk [vmem:[%s5066_s23 + $0x58] sm:$0xff] %vm370_vm0, %v2850_v57  ;;  %2828 = vmatmul.bf16.gmra.mxu3 %v2680_v2  ;;  %v1407_v57 = vld [vmem:[%s4011_s20 + $0xc8] sm:$0xff] }
 0x78d   : > { %v2627_v3 = vpop.permute.xlu1 %2626  ;;  %v2789_v35 = vpop.f32.mrf.mxu3 }
 0x78e   : > { %v2790_v42 = vadd.f32 %v5057_v12, %v2789_v35  ;;  %v2664_v21 = vmul.f32 %v2627_v3, %v5038_v11 }
 0x790   : > { %v2851_v1 = vadd.f32 %v2790_v42, %v1394_v14  ;;  %v1408_v42 = vld [vmem:[%s4011_s20 + $0xd0] sm:$0xff] }
 0x792   : > { %2884 = vst.msk [vmem:[%s5066_s23 + $0x60] sm:$0xff] %vm370_vm0, %v2851_v1 }
 0x795   : > { %v2482_v56 = vpop.permute.xlu1 %2481  ;;  %v2632_v26 = vpop.permute.xlu0 %2631 }
 0x796   : > { %v2635_v34 = vmul.f32 %v2482_v56, %v4894_v0  ;;  %v2665_v46 = vmul.f32 %v2632_v26, %v5044_v45  ;;  %v2791_v16 = vpop.f32.mrf.mxu3  ;;  %v1384_v26 = vld [vmem:[%s4011_s20 + $0x10] sm:$0xff] }
 0x797   : > { %v2792_v62 = vadd.f32 %v5057_v12, %v2791_v16 }
 0x798   : > { %v2666_v49 = vpack.c.bf16 %v2635_v34, %v2634_v39  ;;  %v2681_v50 = vpack.c.bf16 %v2665_v46, %v2664_v21  ;;  %v1409_v34 = vld [vmem:[%s4011_s20 + $0xd8] sm:$0xff] }
 0x799   : > { %v2852_v4 = vadd.f32 %v2792_v62, %v1395_v10 }
 0x79a   : > { %2758 = vmatmul.bf16.vlgmr.msrb.gmra.mxu0 %v2666_v49  ;;  %2833 = vmatmul.bf16.gmra.mxu3 %v2681_v50  ;;  %v1385_v49 = vld [vmem:[%s4011_s20 + $0x18] sm:$0xff] }
 0x79b   : > { %2885 = vst.msk [vmem:[%s5066_s23 + $0x68] sm:$0xff] %vm370_vm0, %v2852_v4 }
 0x79e   : > { %v2794_v0 = vpop.f32.mrf.mxu3 }
 0x79f   : > { %v2795_v11 = vadd.f32 %v5057_v12, %v2794_v0 }
 0x7a1   : > { %v2853_v45 = vadd.f32 %v2795_v11, %v1396_v24  ;;  %v1410_v24 = vld [vmem:[%s4011_s20 + $0xe0] sm:$0xff] }
 0x7a3   : > { %2886 = vst.msk [vmem:[%s5066_s23 + $0x70] sm:$0xff] %vm370_vm0, %v2853_v45 }
 0x7a6   : > { %v2796_v51 = vpop.f32.mrf.mxu3 }
 0x7a7   : > { %v2797_v54 = vadd.f32 %v5057_v12, %v2796_v51  ;;  %v1411_v51 = vld [vmem:[%s4011_s20 + $0xe8] sm:$0xff] }
 0x7a9   : > { %v2854_v6 = vadd.f32 %v2797_v54, %v1397_v53 }
 0x7ab   : > { %2887 = vst.msk [vmem:[%s5066_s23 + $0x78] sm:$0xff] %vm370_vm0, %v2854_v6 }
 0x7ae   : > { %v2799_v63 = vpop.f32.mrf.mxu3 }
 0x7af   : > { %v2800_v29 = vadd.f32 %v5057_v12, %v2799_v63 }
 0x7b1   : > { %v2855_v43 = vadd.f32 %v2800_v29, %v1398_v23  ;;  %v1382_v23 = vld [vmem:[%s4011_s20] sm:$0xff] }
 0x7b3   : > { %2888 = vst.msk [vmem:[%s5066_s23 + $0x80] sm:$0xff] %vm370_vm0, %v2855_v43 }
 0x7b6   : > { %v2801_v58 = vpop.f32.mrf.mxu3 }
 0x7b7   : > { %v2802_v25 = vadd.f32 %v5057_v12, %v2801_v58  ;;  %v1412_v58 = vld [vmem:[%s4011_s20 + $0xf0] sm:$0xff] }
 0x7b9   : > { %v2856_v18 = vadd.f32 %v2802_v25, %v1399_v27 }
 0x7bb   : > { %2889 = vst.msk [vmem:[%s5066_s23 + $0x88] sm:$0xff] %vm370_vm0, %v2856_v18 }
 0x7be   : > { %v2804_v36 = vpop.f32.mrf.mxu3 }
 0x7bf   : > { %v2805_v48 = vadd.f32 %v5057_v12, %v2804_v36 }
 0x7c1   : > { %v2857_v55 = vadd.f32 %v2805_v48, %v1400_v37  ;;  %v1383_v37 = vld [vmem:[%s4011_s20 + $0x8] sm:$0xff] }
 0x7c3   : > { %2890 = vst.msk [vmem:[%s5066_s23 + $0x90] sm:$0xff] %vm370_vm0, %v2857_v55 }
 0x7c6   : > { %v2806_v59 = vpop.f32.mrf.mxu3 }
 0x7c7   : > { %v2807_v33 = vadd.f32 %v5057_v12, %v2806_v59  ;;  %v1413_v59 = vld [vmem:[%s4011_s20 + $0xf8] sm:$0xff] }
 0x7c9   : > { %v2858_v28 = vadd.f32 %v2807_v33, %v1401_v20 }
 0x7cb   : > { %2891 = vst.msk [vmem:[%s5066_s23 + $0x98] sm:$0xff] %vm370_vm0, %v2858_v28 }
 0x7ce   : > { %v2809_v61 = vpop.f32.mrf.mxu3 }
 0x7cf   : > { %v2810_v52 = vadd.f32 %v5057_v12, %v2809_v61 }
 0x7d1   : > { %v2859_v41 = vadd.f32 %v2810_v52, %v1402_v9 }
 0x7d3   : > { %2892 = vst.msk [vmem:[%s5066_s23 + $0xa0] sm:$0xff] %vm370_vm0, %v2859_v41 }
 0x7d6   : > { %v2811_v44 = vpop.f32.mrf.mxu3 }
 0x7d7   : > { %v2812_v8 = vadd.f32 %v5057_v12, %v2811_v44 }
 0x7d9   : > { %v2860_v32 = vadd.f32 %v2812_v8, %v1403_v47 }
 0x7db   : > { %2893 = vst.msk [vmem:[%s5066_s23 + $0xa8] sm:$0xff] %vm370_vm0, %v2860_v32 }
 0x7de   : > { %v2814_v60 = vpop.f32.mrf.mxu3 }
 0x7df   : > { %v2815_v7 = vadd.f32 %v5057_v12, %v2814_v60 }
 0x7e1   : > { %v2861_v40 = vadd.f32 %v2815_v7, %v1404_v38 }
 0x7e3   : > { %2894 = vst.msk [vmem:[%s5066_s23 + $0xb0] sm:$0xff] %vm370_vm0, %v2861_v40 }
 0x7e6   : > { %v2816_v15 = vpop.f32.mrf.mxu3 }
 0x7e7   : > { %v2817_v31 = vadd.f32 %v5057_v12, %v2816_v15 }
 0x7e9   : > { %v2862_v17 = vadd.f32 %v2817_v31, %v1405_v5 }
 0x7eb   : > { %2895 = vst.msk [vmem:[%s5066_s23 + $0xb8] sm:$0xff] %vm370_vm0, %v2862_v17 }
 0x7ee   : > { %v2819_v30 = vpop.f32.mrf.mxu3 }
 0x7ef   : > { %v2820_v19 = vadd.f32 %v5057_v12, %v2819_v30 }
 0x7f1   : > { %v2863_v2 = vadd.f32 %v2820_v19, %v1406_v22 }
 0x7f3   : > { %2896 = vst.msk [vmem:[%s5066_s23 + $0xc0] sm:$0xff] %vm370_vm0, %v2863_v2 }
 0x7f6   : > { %v2821_v3 = vpop.f32.mrf.mxu3 }
 0x7f7   : > { %v2822_v14 = vadd.f32 %v5057_v12, %v2821_v3 }
 0x7f9   : > { %v2864_v35 = vadd.f32 %v2822_v14, %v1407_v57 }
 0x7fb   : > { %2897 = vst.msk [vmem:[%s5066_s23 + $0xc8] sm:$0xff] %vm370_vm0, %v2864_v35 }
 0x7fe   : > { %v2824_v1 = vpop.f32.mrf.mxu3 }
 0x7ff   : > { %v2825_v13 = vadd.f32 %v5057_v12, %v2824_v1 }
 0x801   : > { %v2865_v56 = vadd.f32 %v2825_v13, %v1408_v42 }
 0x803   : > { %2898 = vst.msk [vmem:[%s5066_s23 + $0xd0] sm:$0xff] %vm370_vm0, %v2865_v56 }
 0x805   : > { %v2764_v39 = vpop.f32.mrf.mxu2 }
 0x806   : > { %v2765_v21 = vadd.f32 %v5057_v12, %v2764_v39  ;;  %v2826_v46 = vpop.f32.mrf.mxu3 }
 0x807   : > { %v2827_v10 = vadd.f32 %v5057_v12, %v2826_v46 }
 0x808   : > { %v2841_v16 = vadd.f32 %v2765_v21, %v1384_v26 }
 0x809   : > { %v2866_v62 = vadd.f32 %v2827_v10, %v1409_v34 }
 0x80a   : > { %2874 = vst.msk [vmem:[%s5066_s23 + $0x10] sm:$0xff] %vm370_vm0, %v2841_v16 }
 0x80b   : > { %2899 = vst.msk [vmem:[%s5066_s23 + $0xd8] sm:$0xff] %vm370_vm0, %v2866_v62 }
 0x80d   : > { %v2766_v50 = vpop.f32.mrf.mxu2 }
 0x80e   : > { %v2767_v4 = vadd.f32 %v5057_v12, %v2766_v50  ;;  %v2829_v0 = vpop.f32.mrf.mxu3 }
 0x80f   : > { %v2830_v11 = vadd.f32 %v5057_v12, %v2829_v0 }
 0x810   : > { %v2842_v45 = vadd.f32 %v2767_v4, %v1385_v49 }
 0x811   : > { %v2867_v53 = vadd.f32 %v2830_v11, %v1410_v24 }
 0x812   : > { %2875 = vst.msk [vmem:[%s5066_s23 + $0x18] sm:$0xff] %vm370_vm0, %v2842_v45 }
 0x813   : > { %2900 = vst.msk [vmem:[%s5066_s23 + $0xe0] sm:$0xff] %vm370_vm0, %v2867_v53 }
 0x816   : > { %v2831_v54 = vpop.f32.mrf.mxu3 }
 0x817   : > { %v2832_v6 = vadd.f32 %v5057_v12, %v2831_v54  ;;  %v2759_v63 = vpop.f32.mrf.mxu0 }
 0x818   : > { %v2760_v29 = vadd.f32 %v5057_v12, %v2759_v63 }
 0x819   : > { %v2868_v43 = vadd.f32 %v2832_v6, %v1411_v51 }
 0x81a   : > { %v2839_v27 = vadd.f32 %v2760_v29, %v1382_v23 }
 0x81b   : > { %2901 = vst.msk [vmem:[%s5066_s23 + $0xe8] sm:$0xff] %vm370_vm0, %v2868_v43 }
 0x81c   : > { %2872 = vst.msk [vmem:[%s5066_s23] sm:$0xff] %vm370_vm0, %v2839_v27 }
 0x81e   : > { %v2834_v25 = vpop.f32.mrf.mxu3 }
 0x81f   : > { %v2835_v18 = vadd.f32 %v5057_v12, %v2834_v25  ;;  %v2761_v36 = vpop.f32.mrf.mxu0 }
 0x820   : > { %v2762_v48 = vadd.f32 %v5057_v12, %v2761_v36 }
 0x821   : > { %v2869_v55 = vadd.f32 %v2835_v18, %v1412_v58 }
 0x822   : > { %v2840_v20 = vadd.f32 %v2762_v48, %v1383_v37 }
 0x823   : > { %2902 = vst.msk [vmem:[%s5066_s23 + $0xf0] sm:$0xff] %vm370_vm0, %v2869_v55 }
 0x824   : > { %2873 = vst.msk [vmem:[%s5066_s23 + $0x8] sm:$0xff] %vm370_vm0, %v2840_v20 }
 0x826   : > { %v2836_v33 = vpop.f32.mrf.mxu3 }
 0x827   : > { %v2837_v28 = vadd.f32 %v5057_v12, %v2836_v33 }
 0x829   : > { %v2870_v9 = vadd.f32 %v2837_v28, %v1413_v59 }
 0x82b   : > { %2903 = vst.msk [vmem:[%s5066_s23 + $0xf8] sm:$0xff] %vm370_vm0, %v2870_v9 }
 0x82c PF: > { %s18_s29 = sadd.s32 1, %s3923_s29   ;;  %s5226_s27 = smov %s3919_s28 }
 0x82d   : > { %p15_p5 = scmp.ge.s32.totalorder %s18_s29, 4   ;;  %s5227_s28 = smov %s5229_s30 }
 0x82f   :  { %17 = sbr.rel (!%p15_p5) target bundleno = 2 (0x2), region = 88 }

// kernel: tpu_custom_call.1
= control target key start
LH: loop header
LB: loop body
LE: loop exit
PB: predicated region body
PF: predicated region fallthrough
CT: control target
= control target key end

     0   :  { %s3970_s27 = smov 0   ;;  %s3972_s28 = smov 0   ;;  %s5215_s0 = inlined_call_operand.vmem [shape: f32[2,256,32], index: 0, kind: input, shape index: {}]   ;;  %s5216_s1 = inlined_call_operand.vmem [shape: f32[32,32], index: 1, kind: input, shape index: {}]   ;;  %s5217_s2 = inlined_call_operand.vmem [shape: f32[1,32], index: 2, kind: input, shape index: {}]   ;;  %s5218_s3 = inlined_call_operand.vmem [shape: f32[1,32], index: 3, kind: input, shape index: {}]   ;;  %s5219_s4 = inlined_call_operand.vmem [shape: bf16[32,384], index: 4, kind: input, shape index: {}]   ;;  %s5220_s5 = inlined_call_operand.vmem [shape: f32[1,384], index: 5, kind: input, shape index: {}]   ;;  %s5221_s6 = inlined_call_operand.vmem [shape: bf16[128,32], index: 6, kind: input, shape index: {}]   ;;  %s5222_s7 = inlined_call_operand.vmem [shape: f32[1,32], index: 7, kind: input, shape index: {}]   ;;  %s5223_s8 = inlined_call_operand.vmem [shape: f32[2,256,32], index: 8, kind: output, shape index: {}]  }
   0x1   :  { %s3974_s29 = smov 0  }
   0x2 LB: > { %s30_s30 = sadd.s32 1, %s3917_s28  ;;  %p2993_p0 = scmp.ge.s32.totalorder %s3921_s29, 1  ;;  %s3921_s29 = sphi %s3974_s29, %s18_s29   ;;  %s3917_s28 = sphi %s3972_s28, %s5225_s28   ;;  %s3913_s27 = sphi %s3970_s27, %s5224_s27  }
   0x3   : > { %p32_p1 = scmp.ge.s32.totalorder %s30_s30, 2  ;;  %p276_p2 = scmp.lt.s32.totalorder %s3921_s29, 3 }
   0x5   : > { %s5227_s30 = smov (%p32_p1, %s30_s30), 0  ;;  %p277_p3 = pnand %p2993_p0, %p276_p2 }
   0x6   : > { %p314_p4 = scmp.lt.s32.totalorder (!%p277_p3), %s3913_s27, 1 }
   0x7   : > { %280 = sbr.rel (%p277_p3) target bundleno = 2092 (0x82c), region = 52 }
   0xc   : > { %v337_v0 = vld [vmem:[%s5216_s1 + $0x18] sm:$0xff]  ;;  %v336_v1 = vld [vmem:[%s5216_s1 + $0x10] sm:$0xff]  ;;  %vm370_vm0 = vcmask 261120   ;;  %v335_v2 = vld [vmem:[%s5216_s1 + $0x8] sm:$0xff]  ;;  %s5229_s27 = smov (!%p314_p4, %s3913_s27), 1 }
   0xd   : > { %456 = vmatpush.msra.mxu0 %v337_v0  ;;  %2999 = vmatpush.xpose.msk.msra.mxu1 %vm370_vm0, %v337_v0  ;;  %v334_v3 = vld [vmem:[%s5216_s1] sm:$0xff]  ;;  %s3308_s17 = sshll.u32 %s5229_s27, 8 }
   0xe   : > { %657 = vmatpush.msra.mxu2 %v337_v0  ;;  %s4009_s20 = scalar_lea.vmem %s5215_s0, %s3308_s17  ;;  %s5064_s23 = scalar_lea.vmem %s5223_s8, %s3308_s17 }
   0xf   : > { %457 = vmatpush.msra.mxu0 %v336_v1  ;;  %v4013_v4 = vld [vmem:[%s4009_s20] sm:$0xff]  ;;  %v4016_v5 = vld [vmem:[%s4009_s20 + $0x8] sm:$0xff]  ;;  %v4019_v6 = vld [vmem:[%s4009_s20 + $0x10] sm:$0xff] }
  0x10   : > { %658 = vmatpush.msra.mxu2 %v336_v1  ;;  %v4022_v7 = vld [vmem:[%s4009_s20 + $0x18] sm:$0xff]  ;;  %v371_v8 = vsel %vm370_vm0, %v4013_v4, 0.0  ;;  %v372_v9 = vsel %vm370_vm0, %v4016_v5, 0.0  ;;  %v374_v10 = vsel %vm370_vm0, %v4019_v6, 0.0  ;;  %v4031_v11 = vld [vmem:[%s4009_s20 + $0x20] sm:$0xff]  ;;  %v4037_v14 = vld [vmem:[%s4009_s20 + $0x28] sm:$0xff] }
  0x11   : > { %458 = vmatpush.msra.mxu0 %v335_v2  ;;  %3000 = vmatpush.xpose.msk.msra.mxu1 %vm370_vm0, %v336_v1  ;;  %v373_v12 = vadd.f32 %v372_v9, %v371_v8  ;;  %v376_v13 = vsel %vm370_vm0, %v4022_v7, 0.0  ;;  %v378_v16 = vsel %vm370_vm0, %v4031_v11, 0.0  ;;  %v4042_v17 = vld [vmem:[%s4009_s20 + $0x30] sm:$0xff]  ;;  %v380_v19 = vsel %vm370_vm0, %v4037_v14, 0.0  ;;  %v4048_v20 = vld [vmem:[%s4009_s20 + $0x38] sm:$0xff]  ;;  %v4054_v23 = vld [vmem:[%s4009_s20 + $0x40] sm:$0xff] }
  0x12   : > { %659 = vmatpush.msra.mxu2 %v335_v2  ;;  %v382_v22 = vsel %vm370_vm0, %v4042_v17, 0.0  ;;  %v384_v25 = vsel %vm370_vm0, %v4048_v20, 0.0  ;;  %v4059_v26 = vld [vmem:[%s4009_s20 + $0x48] sm:$0xff]  ;;  %v386_v28 = vsel %vm370_vm0, %v4054_v23, 0.0  ;;  %v4065_v29 = vld [vmem:[%s4009_s20 + $0x50] sm:$0xff]  ;;  %v4070_v32 = vld [vmem:[%s4009_s20 + $0x58] sm:$0xff] }
  0x13   : > { %459 = vmatpush.msra.mxu0 %v334_v3  ;;  %v375_v15 = vadd.f32 %v374_v10, %v373_v12  ;;  %v388_v31 = vsel %vm370_vm0, %v4059_v26, 0.0  ;;  %v390_v34 = vsel %vm370_vm0, %v4065_v29, 0.0  ;;  %v4076_v35 = vld [vmem:[%s4009_s20 + $0x60] sm:$0xff]  ;;  %v392_v37 = vsel %vm370_vm0, %v4070_v32, 0.0  ;;  %v4081_v38 = vld [vmem:[%s4009_s20 + $0x68] sm:$0xff]  ;;  %v4087_v41 = vld [vmem:[%s4009_s20 + $0x70] sm:$0xff] }
  0x14   : > { %660 = vmatpush.msra.mxu2 %v334_v3  ;;  %v394_v40 = vsel %vm370_vm0, %v4076_v35, 0.0  ;;  %v396_v43 = vsel %vm370_vm0, %v4081_v38, 0.0  ;;  %v4092_v44 = vld [vmem:[%s4009_s20 + $0x78] sm:$0xff]  ;;  %v398_v46 = vsel %vm370_vm0, %v4087_v41, 0.0  ;;  %v4097_v47 = vld [vmem:[%s4009_s20 + $0x80] sm:$0xff]  ;;  %v4102_v50 = vld [vmem:[%s4009_s20 + $0x88] sm:$0xff] }
  0x15   : > { %3001 = vmatpush.xpose.msk.msra.mxu1 %vm370_vm0, %v335_v2  ;;  %v377_v18 = vadd.f32 %v376_v13, %v375_v15  ;;  %v400_v49 = vsel %vm370_vm0, %v4092_v44, 0.0  ;;  %v402_v52 = vsel %vm370_vm0, %v4097_v47, 0.0  ;;  %v4107_v53 = vld [vmem:[%s4009_s20 + $0x90] sm:$0xff]  ;;  %v404_v55 = vsel %vm370_vm0, %v4102_v50, 0.0  ;;  %v4112_v56 = vld [vmem:[%s4009_s20 + $0x98] sm:$0xff]  ;;  %v4117_v59 = vld [vmem:[%s4009_s20 + $0xa0] sm:$0xff] }
  0x16   : > { %v406_v58 = vsel %vm370_vm0, %v4107_v53, 0.0  ;;  %v408_v61 = vsel %vm370_vm0, %v4112_v56, 0.0  ;;  %v4122_v62 = vld [vmem:[%s4009_s20 + $0xa8] sm:$0xff]  ;;  %v4132_v8 = vld [vmem:[%s4009_s20 + $0xb8] sm:$0xff]  ;;  %v4137_v12 = vld [vmem:[%s4009_s20 + $0xc0] sm:$0xff] }
  0x17   : > { %v379_v21 = vadd.f32 %v378_v16, %v377_v18  ;;  %v416_v15 = vsel %vm370_vm0, %v4132_v8, 0.0  ;;  %v4142_v16 = vld [vmem:[%s4009_s20 + $0xc8] sm:$0xff] }
  0x19   : > { %3002 = vmatpush.xpose.msk.msra.mxu1 %vm370_vm0, %v334_v3  ;;  %v381_v24 = vadd.f32 %v380_v19, %v379_v21  ;;  %v418_v19 = vsel %vm370_vm0, %v4137_v12, 0.0  ;;  %v4147_v21 = vld [vmem:[%s4009_s20 + $0xd0] sm:$0xff] }
  0x1b   : > { %v383_v27 = vadd.f32 %v382_v22, %v381_v24  ;;  %v420_v24 = vsel %vm370_vm0, %v4142_v16, 0.0 }
  0x1d   : > { %3005 = vmatpush.xpose.msk.msrb.mxu1 %vm370_vm0, %v337_v0  ;;  %v385_v30 = vadd.f32 %v384_v25, %v383_v27  ;;  %v410_v0 = vsel %vm370_vm0, %v4117_v59, 0.0  ;;  %v4152_v25 = vld [vmem:[%s4009_s20 + $0xd8] sm:$0xff] }
  0x1f   : > { %v387_v33 = vadd.f32 %v386_v28, %v385_v30  ;;  %v422_v28 = vsel %vm370_vm0, %v4147_v21, 0.0  ;;  %v4157_v30 = vld [vmem:[%s4009_s20 + $0xe0] sm:$0xff] }
  0x21   : > { %3006 = vmatpush.xpose.msk.msrb.mxu1 %vm370_vm0, %v336_v1  ;;  %v389_v36 = vadd.f32 %v388_v31, %v387_v33  ;;  %v4127_v1 = vld [vmem:[%s4009_s20 + $0xb0] sm:$0xff]  ;;  %v424_v33 = vsel %vm370_vm0, %v4152_v25, 0.0 }
  0x22   : > { %v414_v10 = vsel %vm370_vm0, %v4127_v1, 0.0 }
  0x23   : > { %v391_v39 = vadd.f32 %v390_v34, %v389_v36  ;;  %v4162_v34 = vld [vmem:[%s4009_s20 + $0xe8] sm:$0xff] }
  0x25   : > { %3007 = vmatpush.xpose.msk.msrb.mxu1 %vm370_vm0, %v335_v2  ;;  %v393_v42 = vadd.f32 %v392_v37, %v391_v39  ;;  %v426_v37 = vsel %vm370_vm0, %v4157_v30, 0.0  ;;  %v4167_v39 = vld [vmem:[%s4009_s20 + $0xf0] sm:$0xff] }
  0x27   : > { %v395_v45 = vadd.f32 %v394_v40, %v393_v42  ;;  %v428_v42 = vsel %vm370_vm0, %v4162_v34, 0.0 }
  0x29   : > { %3008 = vmatpush.xpose.msk.msrb.mxu1 %vm370_vm0, %v334_v3  ;;  %v397_v48 = vadd.f32 %v396_v43, %v395_v45  ;;  %v412_v3 = vsel %vm370_vm0, %v4122_v62, 0.0  ;;  %v4172_v43 = vld [vmem:[%s4009_s20 + $0xf8] sm:$0xff] }
  0x2b   : > { %v399_v51 = vadd.f32 %v398_v46, %v397_v48  ;;  %v430_v46 = vsel %vm370_vm0, %v4167_v39, 0.0 }
  0x2d   : > { %v401_v54 = vadd.f32 %v400_v49, %v399_v51  ;;  %v432_v49 = vsel %vm370_vm0, %v4172_v43, 0.0 }
  0x2f   : > { %v403_v57 = vadd.f32 %v402_v52, %v401_v54 }
  0x31   : > { %v405_v60 = vadd.f32 %v404_v55, %v403_v57 }
  0x33   : > { %v407_v63 = vadd.f32 %v406_v58, %v405_v60 }
  0x35   : > { %v409_v2 = vadd.f32 %v408_v61, %v407_v63  ;;  %v3923_v63 = vmov 256.0  }
  0x36   : > { %3703 = vrcp.f32 %v3923_v63 }
  0x37   : > { %v411_v9 = vadd.f32 %v410_v0, %v409_v2 }
  0x39   : > { %v413_v13 = vadd.f32 %v412_v3, %v411_v9 }
  0x3b   : > { %v415_v18 = vadd.f32 %v414_v10, %v413_v13 }
  0x3c   : > { %v3704_v0 = vpop.eup %3703 }
  0x3d   : > { %v417_v22 = vadd.f32 %v416_v15, %v415_v18  ;;  %v465_v2 = vmul.f32 256.0, %v3704_v0  ;;  %vm469_vm1 = vweird.f32 %v3704_v0 }
  0x3f   : > { %v419_v27 = vadd.f32 %v418_v19, %v417_v22  ;;  %v466_v3 = vsub.f32 1.0, %v465_v2 }
  0x41   : > { %v421_v31 = vadd.f32 %v420_v24, %v419_v27  ;;  %v467_v9 = vmul.f32 %v3704_v0, %v466_v3 }
  0x43   : > { %v423_v36 = vadd.f32 %v422_v28, %v421_v31  ;;  %v468_v10 = vadd.f32 %v3704_v0, %v467_v9 }
  0x45   : > { %v425_v40 = vadd.f32 %v424_v33, %v423_v36  ;;  %v4179_v13 = vsel %vm469_vm1, %v3704_v0, %v468_v10 }
  0x47   : > { %v427_v45 = vadd.f32 %v426_v37, %v425_v40 }
  0x49   : > { %v429_v48 = vadd.f32 %v428_v42, %v427_v45 }
  0x4b   : > { %v431_v51 = vadd.f32 %v430_v46, %v429_v48 }
  0x4d   : > { %v433_v52 = vadd.f32 %v432_v49, %v431_v51 }
  0x4f   : > { %v434_v54 = vrot.slane %v433_v52, 4 }
  0x51   : > { %v435_v55 = vadd.f32 %v434_v54, %v433_v52 }
  0x53   : > { %v436_v57 = vrot.slane %v435_v55, 2 }
  0x55   : > { %v437_v58 = vadd.f32 %v436_v57, %v435_v55 }
  0x57   : > { %v438_v60 = vrot.slane %v437_v58, 1 }
  0x59   : > { %v439_v61 = vadd.f32 %v438_v60, %v437_v58 }
  0x5b   : > { %2998 = vmatmul.msk.f32.vlgmr.msra.gmra.mxu0 %vm370_vm0, %v439_v61 }
  0xd8   : > { %v461_v15 = vpop.f32.mrf.mxu0 }
  0xd9   : > { %v471_v18 = vmul.f32 %v4179_v13, %v461_v15 }
  0xdb   : > { %3003 = vmatmul.msk.f32.vlgmr.msra.gmra.mxu1 %vm370_vm0, %v471_v18 }
 0x158   : > { %v4183_v19 = vpop.f32.mrf.mxu1 }
 0x159   : > { %v4186_v22 = vperm.slane %v4183_v19, 0 }
 0x15b   : > { %v508_v24 = vsub.f32 %v4013_v4, %v4186_v22  ;;  %v509_v27 = vsub.f32 %v4016_v5, %v4186_v22  ;;  %v510_v28 = vsub.f32 %v4019_v6, %v4186_v22  ;;  %v511_v31 = vsub.f32 %v4022_v7, %v4186_v22 }
 0x15c   : > { %v512_v37 = vsub.f32 %v4031_v11, %v4186_v22  ;;  %v513_v42 = vsub.f32 %v4037_v14, %v4186_v22  ;;  %v514_v51 = vsub.f32 %v4042_v17, %v4186_v22  ;;  %v515_v57 = vsub.f32 %v4048_v20, %v4186_v22 }
 0x15d   : > { %v540_v33 = vmul.f32 %v508_v24, %v508_v24  ;;  %v541_v36 = vmul.f32 %v509_v27, %v509_v27  ;;  %v542_v40 = vmul.f32 %v510_v28, %v510_v28  ;;  %v543_v45 = vmul.f32 %v511_v31, %v511_v31 }
 0x15e   : > { %v544_v52 = vmul.f32 %v512_v37, %v512_v37  ;;  %v545_v58 = vmul.f32 %v513_v42, %v513_v42  ;;  %v516_v63 = vsub.f32 %v4054_v23, %v4186_v22  ;;  %v546_v0 = vmul.f32 %v514_v51, %v514_v51 }
 0x15f   : > { %v572_v46 = vsel %vm370_vm0, %v540_v33, 0.0  ;;  %v573_v48 = vsel %vm370_vm0, %v541_v36, 0.0  ;;  %v575_v54 = vsel %vm370_vm0, %v542_v40, 0.0  ;;  %v577_v60 = vsel %vm370_vm0, %v543_v45, 0.0 }
 0x160   : > { %v574_v49 = vadd.f32 %v573_v48, %v572_v46  ;;  %v579_v2 = vsel %vm370_vm0, %v544_v52, 0.0  ;;  %v517_v9 = vsub.f32 %v4059_v26, %v4186_v22  ;;  %v547_v10 = vmul.f32 %v515_v57, %v515_v57 }
 0x161   : > { %v581_v15 = vsel %vm370_vm0, %v545_v58, 0.0  ;;  %v518_v24 = vsub.f32 %v4065_v29, %v4186_v22  ;;  %v548_v27 = vmul.f32 %v516_v63, %v516_v63  ;;  %v583_v28 = vsel %vm370_vm0, %v546_v0, 0.0 }
 0x162   : > { %v576_v55 = vadd.f32 %v575_v54, %v574_v49  ;;  %v519_v33 = vsub.f32 %v4070_v32, %v4186_v22  ;;  %v549_v36 = vmul.f32 %v517_v9, %v517_v9  ;;  %v585_v37 = vsel %vm370_vm0, %v547_v10, 0.0 }
 0x163   : > { %v520_v42 = vsub.f32 %v4076_v35, %v4186_v22  ;;  %v550_v45 = vmul.f32 %v518_v24, %v518_v24  ;;  %v587_v46 = vsel %vm370_vm0, %v548_v27, 0.0  ;;  %v521_v49 = vsub.f32 %v4081_v38, %v4186_v22 }
 0x164   : > { %v578_v61 = vadd.f32 %v577_v60, %v576_v55  ;;  %v551_v51 = vmul.f32 %v519_v33, %v519_v33  ;;  %v589_v52 = vsel %vm370_vm0, %v549_v36, 0.0  ;;  %v522_v55 = vsub.f32 %v4087_v41, %v4186_v22 }
 0x165   : > { %v552_v57 = vmul.f32 %v520_v42, %v520_v42  ;;  %v591_v58 = vsel %vm370_vm0, %v550_v45, 0.0  ;;  %v553_v63 = vmul.f32 %v521_v49, %v521_v49 }
 0x166   : > { %v580_v3 = vadd.f32 %v579_v2, %v578_v61  ;;  %v523_v61 = vsub.f32 %v4092_v44, %v4186_v22  ;;  %v593_v0 = vsel %vm370_vm0, %v551_v51, 0.0  ;;  %v554_v9 = vmul.f32 %v522_v55, %v522_v55 }
 0x167   : > { %v595_v10 = vsel %vm370_vm0, %v552_v57, 0.0  ;;  %v597_v27 = vsel %vm370_vm0, %v553_v63, 0.0 }
 0x168   : > { %v582_v18 = vadd.f32 %v581_v15, %v580_v3  ;;  %v524_v3 = vsub.f32 %v4097_v47, %v4186_v22  ;;  %v555_v24 = vmul.f32 %v523_v61, %v523_v61  ;;  %v599_v36 = vsel %vm370_vm0, %v554_v9, 0.0 }
 0x16a   : > { %v584_v31 = vadd.f32 %v583_v28, %v582_v18  ;;  %v525_v18 = vsub.f32 %v4102_v50, %v4186_v22  ;;  %v556_v33 = vmul.f32 %v524_v3, %v524_v3  ;;  %v601_v45 = vsel %vm370_vm0, %v555_v24, 0.0 }
 0x16c   : > { %v586_v40 = vadd.f32 %v585_v37, %v584_v31  ;;  %v526_v31 = vsub.f32 %v4107_v53, %v4186_v22  ;;  %v557_v42 = vmul.f32 %v525_v18, %v525_v18  ;;  %v603_v51 = vsel %vm370_vm0, %v556_v33, 0.0 }
 0x16e   : > { %v588_v48 = vadd.f32 %v587_v46, %v586_v40  ;;  %v527_v40 = vsub.f32 %v4112_v56, %v4186_v22  ;;  %v558_v49 = vmul.f32 %v526_v31, %v526_v31  ;;  %v605_v57 = vsel %vm370_vm0, %v557_v42, 0.0 }
 0x170   : > { %v590_v54 = vadd.f32 %v589_v52, %v588_v48  ;;  %v528_v48 = vsub.f32 %v4117_v59, %v4186_v22  ;;  %v559_v55 = vmul.f32 %v527_v40, %v527_v40  ;;  %v607_v63 = vsel %vm370_vm0, %v558_v49, 0.0 }
 0x172   : > { %v592_v60 = vadd.f32 %v591_v58, %v590_v54  ;;  %v529_v54 = vsub.f32 %v4122_v62, %v4186_v22  ;;  %v560_v61 = vmul.f32 %v528_v48, %v528_v48  ;;  %v609_v9 = vsel %vm370_vm0, %v559_v55, 0.0 }
 0x174   : > { %v594_v2 = vadd.f32 %v593_v0, %v592_v60  ;;  %v530_v60 = vsub.f32 %v4127_v1, %v4186_v22  ;;  %v561_v3 = vmul.f32 %v529_v54, %v529_v54  ;;  %v611_v24 = vsel %vm370_vm0, %v560_v61, 0.0 }
 0x176   : > { %v596_v15 = vadd.f32 %v595_v10, %v594_v2  ;;  %v531_v2 = vsub.f32 %v4132_v8, %v4186_v22  ;;  %v562_v18 = vmul.f32 %v530_v60, %v530_v60  ;;  %v613_v33 = vsel %vm370_vm0, %v561_v3, 0.0 }
 0x178   : > { %v598_v28 = vadd.f32 %v597_v27, %v596_v15  ;;  %v532_v15 = vsub.f32 %v4137_v12, %v4186_v22  ;;  %v563_v31 = vmul.f32 %v531_v2, %v531_v2  ;;  %v615_v42 = vsel %vm370_vm0, %v562_v18, 0.0 }
 0x17a   : > { %v600_v37 = vadd.f32 %v599_v36, %v598_v28  ;;  %v533_v28 = vsub.f32 %v4142_v16, %v4186_v22  ;;  %v564_v40 = vmul.f32 %v532_v15, %v532_v15  ;;  %v617_v49 = vsel %vm370_vm0, %v563_v31, 0.0 }
 0x17c   : > { %v602_v46 = vadd.f32 %v601_v45, %v600_v37  ;;  %v534_v37 = vsub.f32 %v4147_v21, %v4186_v22  ;;  %v565_v48 = vmul.f32 %v533_v28, %v533_v28  ;;  %v619_v55 = vsel %vm370_vm0, %v564_v40, 0.0 }
 0x17e   : > { %v604_v52 = vadd.f32 %v603_v51, %v602_v46  ;;  %v535_v46 = vsub.f32 %v4152_v25, %v4186_v22  ;;  %v566_v54 = vmul.f32 %v534_v37, %v534_v37  ;;  %v621_v61 = vsel %vm370_vm0, %v565_v48, 0.0 }
 0x180   : > { %v606_v58 = vadd.f32 %v605_v57, %v604_v52  ;;  %v536_v52 = vsub.f32 %v4157_v30, %v4186_v22  ;;  %v567_v60 = vmul.f32 %v535_v46, %v535_v46  ;;  %v623_v3 = vsel %vm370_vm0, %v566_v54, 0.0 }
 0x182   : > { %v608_v0 = vadd.f32 %v607_v63, %v606_v58  ;;  %v537_v58 = vsub.f32 %v4162_v34, %v4186_v22  ;;  %v568_v2 = vmul.f32 %v536_v52, %v536_v52  ;;  %v625_v18 = vsel %vm370_vm0, %v567_v60, 0.0 }
 0x184   : > { %v610_v10 = vadd.f32 %v609_v9, %v608_v0  ;;  %v538_v0 = vsub.f32 %v4167_v39, %v4186_v22  ;;  %v569_v15 = vmul.f32 %v537_v58, %v537_v58  ;;  %v627_v28 = vsel %vm370_vm0, %v568_v2, 0.0 }
 0x186   : > { %v612_v27 = vadd.f32 %v611_v24, %v610_v10  ;;  %v539_v10 = vsub.f32 %v4172_v43, %v4186_v22 }
 0x188   : > { %v614_v36 = vadd.f32 %v613_v33, %v612_v27  ;;  %v570_v27 = vmul.f32 %v538_v0, %v538_v0  ;;  %v571_v33 = vmul.f32 %v539_v10, %v539_v10  ;;  %v3024_v10 = vld [vmem:[%s5219_s4 + $0x18] sm:$0xf] }
 0x18a   : > { %v616_v45 = vadd.f32 %v615_v42, %v614_v36  ;;  %v629_v36 = vsel %vm370_vm0, %v569_v15, 0.0  ;;  %v631_v40 = vsel %vm370_vm0, %v570_v27, 0.0  ;;  %v3313_v15 = vld [vmem:[%s5219_s4 + $0x1c] sm:$0xf]  ;;  %v3032_v27 = vld [vmem:[%s5219_s4 + $0x20] sm:$0xf] }
 0x18c   : > { %v618_v51 = vadd.f32 %v617_v49, %v616_v45  ;;  %v633_v45 = vsel %vm370_vm0, %v571_v33, 0.0 }
 0x18e   : > { %v620_v57 = vadd.f32 %v619_v55, %v618_v51 }
 0x190   : > { %v622_v63 = vadd.f32 %v621_v61, %v620_v57 }
 0x192   : > { %v624_v9 = vadd.f32 %v623_v3, %v622_v63 }
 0x194   : > { %v626_v24 = vadd.f32 %v625_v18, %v624_v9 }
 0x196   : > { %v628_v31 = vadd.f32 %v627_v28, %v626_v24  ;;  %v3026_v24 = vld [vmem:[%s5219_s4 + $0x24] sm:$0xf0]  ;;  %v3315_v28 = vld [vmem:[%s5219_s4 + $0x28] sm:$0xf0] }
 0x197   : > { %v3033_v33 = vor.u32 %v3315_v28, %v3032_v27 }
 0x198   : > { %v630_v37 = vadd.f32 %v629_v36, %v628_v31  ;;  %v3029_v31 = vor.u32 %v3313_v15, %v3026_v24  ;;  %v3012_v36 = vld [vmem:[%s5219_s4] sm:$0xf] }
 0x199   : > { %1069 = vmatpush.bf16.msra.mxu1 %v3033_v33 }
 0x19a   : > { %v632_v42 = vadd.f32 %v631_v40, %v630_v37  ;;  %v3311_v37 = vld [vmem:[%s5219_s4 + $0x8] sm:$0xf0]  ;;  %v3310_v40 = vld [vmem:[%s5219_s4 + $0x4] sm:$0xf]  ;;  %980 = vmatpush.bf16.msrb.mxu2 %v3029_v31 }
 0x19c   : > { %v634_v46 = vadd.f32 %v633_v45, %v632_v42  ;;  %v3013_v42 = vor.u32 %v3311_v37, %v3012_v36  ;;  %v3014_v45 = vld [vmem:[%s5219_s4 + $0xc] sm:$0xf0] }
 0x19e   : > { %v635_v48 = vrot.slane %v634_v46, 4 }
 0x1a0   : > { %v636_v22 = vadd.f32 %v635_v48, %v634_v46  ;;  %v3020_v46 = vld [vmem:[%s5219_s4 + $0x8] sm:$0xf]  ;;  %v3312_v48 = vld [vmem:[%s5219_s4 + $0x10] sm:$0xf0] }
 0x1a2   : > { %v637_v49 = vrot.slane %v636_v22, 2 }
 0x1a4   : > { %v638_v51 = vadd.f32 %v637_v49, %v636_v22  ;;  %v3017_v22 = vor.u32 %v3310_v40, %v3014_v45  ;;  %v3021_v49 = vor.u32 %v3312_v48, %v3020_v46 }
 0x1a6   : > { %v639_v52 = vrot.slane %v638_v51, 1  ;;  %981 = vmatpush.bf16.msrb.mxu2 %v3017_v22  ;;  %1070 = vmatpush.bf16.msra.mxu1 %v3021_v49 }
 0x1a8   : > { %v640_v54 = vadd.f32 %v639_v52, %v638_v51  ;;  %v700_v51 = vld [vmem:[%s5217_s2] sm:$0x1] }
 0x1aa   : > { %3004 = vmatmul.msk.f32.vlgmr.msra.gmra.mxu2 %vm370_vm0, %v640_v54 }
 0x22d   : > { %v662_v55 = vpop.f32.mrf.mxu2 }
 0x22e   : > { %v665_v57 = vmul.f32 %v662_v55, %v4179_v13  ;;  %v3314_v13 = vld [vmem:[%s5219_s4 + $0x20] sm:$0xf0]  ;;  %v702_v55 = vld [vmem:[%s5218_s3] sm:$0x1] }
 0x22f   : > { %v3025_v18 = vor.u32 %v3314_v13, %v3024_v10 }
 0x230   : > { %v666_v58 = vadd.f32 1e-06, %v665_v57 }
 0x231   : > { %891 = vmatpush.bf16.msrb.mxu0 %v3025_v18 }
 0x232   : > { %3705 = vrsqrt.f32 %v666_v58  ;;  %vm673_vm3 = vweird.f32 %v666_v58 }
 0x235   : > { %892 = vmatpush.bf16.msrb.mxu0 %v3013_v42 }
 0x238   : > { %v3706_v60 = vpop.eup %3705 }
 0x239   : > { %v668_v61 = vmul.f32 %v3706_v60, %v666_v58  ;;  %vm674_vm2 = vweird.f32 %v3706_v60 }
 0x23a   : > { %vm675_vm4 = vmor %vm673_vm3, %vm674_vm2 }
 0x23b   : > { %v669_v63 = vmul.f32 %v3706_v60, %v668_v61 }
 0x23d   : > { %v670_v0 = vmul.f32 0.5, %v669_v63 }
 0x23f   : > { %v671_v2 = vsub.f32 1.5, %v670_v0 }
 0x241   : > { %v672_v3 = vmul.f32 %v3706_v60, %v671_v2 }
 0x243   : > { %v676_v9 = vsel %vm675_vm4, %v3706_v60, %v672_v3 }
 0x244   : > { %3009 = vmatmul.msk.f32.vlgmr.msrb.gmra.mxu1 %vm370_vm0, %v676_v9 }
 0x2c1   : > { %v697_v52 = vpop.f32.mrf.mxu1 }
 0x2c2   : > { %v701_v54 = vmul.f32 %v700_v51, %v697_v52 }
 0x2c4   : > { %v703_v57 = vmul.f32 %v701_v54, %v4183_v19  ;;  %v4330_v58 = vperm.slane %v701_v54, 0 }
 0x2c6   : > { %v704_v60 = vsub.f32 %v702_v55, %v703_v57  ;;  %v715_v63 = vmul.f32 %v4330_v58, %v4013_v4  ;;  %v716_v0 = vmul.f32 %v4330_v58, %v4016_v5  ;;  %v717_v2 = vmul.f32 %v4330_v58, %v4019_v6 }
 0x2c7   : > { %v723_v19 = vmul.f32 %v4330_v58, %v4054_v23  ;;  %v724_v10 = vmul.f32 %v4330_v58, %v4059_v26  ;;  %v718_v13 = vmul.f32 %v4330_v58, %v4022_v7  ;;  %v725_v4 = vmul.f32 %v4330_v58, %v4065_v29 }
 0x2c8   : > { %v4332_v61 = vperm.slane %v704_v60, 0  ;;  %v726_v5 = vmul.f32 %v4330_v58, %v4070_v32  ;;  %v727_v6 = vmul.f32 %v4330_v58, %v4076_v35  ;;  %v728_v26 = vmul.f32 %v4330_v58, %v4081_v38 }
 0x2c9   : > { %v729_v31 = vmul.f32 %v4330_v58, %v4087_v41  ;;  %v730_v33 = vmul.f32 %v4330_v58, %v4092_v44  ;;  %v731_v36 = vmul.f32 %v4330_v58, %v4097_v47  ;;  %v732_v40 = vmul.f32 %v4330_v58, %v4102_v50 }
 0x2ca   : > { %v750_v3 = vadd.f32 %v4332_v61, %v715_v63  ;;  %v751_v9 = vadd.f32 %v4332_v61, %v716_v0  ;;  %v758_v18 = vadd.f32 %v4332_v61, %v723_v19  ;;  %v759_v23 = vadd.f32 %v4332_v61, %v724_v10 }
 0x2cb   : > { %v752_v24 = vadd.f32 %v4332_v61, %v717_v2  ;;  %v753_v7 = vadd.f32 %v4332_v61, %v718_v13  ;;  %v760_v29 = vadd.f32 %v4332_v61, %v725_v4  ;;  %v761_v27 = vadd.f32 %v4332_v61, %v726_v5 }
 0x2cc   : > { %v782_v15 = vpack.c.bf16 %v751_v9, %v750_v3  ;;  %v4364_v32 = vpack.c.bf16 %v759_v23, %v758_v18  ;;  %v762_v35 = vadd.f32 %v4332_v61, %v727_v6  ;;  %v763_v28 = vadd.f32 %v4332_v61, %v728_v26 }
 0x2cd   : > { %v4369_v38 = vpack.c.bf16 %v761_v27, %v760_v29  ;;  %v733_v42 = vmul.f32 %v4330_v58, %v4107_v53  ;;  %v734_v45 = vmul.f32 %v4330_v58, %v4112_v56  ;;  %v764_v46 = vadd.f32 %v4332_v61, %v729_v31 }
 0x2ce   : > { %3034 = vmatmul.msk.bf16.vlgmr.msrb.gmra.mxu0 %vm370_vm0, %v782_v15  ;;  %3050 = vmatmul.msk.bf16.vlgmr.msrb.gmra.mxu2 %vm370_vm0, %v782_v15  ;;  %v4377_v37 = vpack.c.bf16 %v763_v28, %v762_v35  ;;  %v765_v41 = vadd.f32 %v4332_v61, %v730_v33  ;;  %v766_v44 = vadd.f32 %v4332_v61, %v731_v36 }
 0x2cf   : > { %3066 = vmatmul.msk.bf16.vlgmr.msra.gmra.mxu1 %vm370_vm0, %v782_v15  ;;  %v735_v47 = vmul.f32 %v4330_v58, %v4117_v59  ;;  %v767_v48 = vadd.f32 %v4332_v61, %v732_v40  ;;  %v768_v22 = vadd.f32 %v4332_v61, %v733_v42  ;;  %v769_v50 = vadd.f32 %v4332_v61, %v734_v45 }
 0x2d0   : > { %v736_v53 = vmul.f32 %v4330_v58, %v4122_v62  ;;  %v789_v49 = vpack.c.bf16 %v765_v41, %v764_v46  ;;  %v737_v51 = vmul.f32 %v4330_v58, %v4127_v1  ;;  %v738_v52 = vmul.f32 %v4330_v58, %v4132_v8 }
 0x2d1   : > { %v770_v56 = vadd.f32 %v4332_v61, %v735_v47  ;;  %v4400_v54 = vpack.c.bf16 %v767_v48, %v766_v44  ;;  %v4402_v59 = vpack.c.bf16 %v769_v50, %v768_v22  ;;  %v739_v57 = vmul.f32 %v4330_v58, %v4137_v12 }
 0x2d2   : > { %v771_v55 = vadd.f32 %v4332_v61, %v736_v53  ;;  %v772_v62 = vadd.f32 %v4332_v61, %v737_v51  ;;  %v773_v60 = vadd.f32 %v4332_v61, %v738_v52  ;;  %v740_v63 = vmul.f32 %v4330_v58, %v4142_v16 }
 0x2d3   : > { %v741_v1 = vmul.f32 %v4330_v58, %v4147_v21  ;;  %v774_v0 = vadd.f32 %v4332_v61, %v739_v57  ;;  %v742_v2 = vmul.f32 %v4330_v58, %v4152_v25  ;;  %v743_v12 = vmul.f32 %v4330_v58, %v4157_v30 }
 0x2d4   : > { %v4413_v8 = vpack.c.bf16 %v771_v55, %v770_v56  ;;  %v4420_v3 = vpack.c.bf16 %v773_v60, %v772_v62  ;;  %v775_v9 = vadd.f32 %v4332_v61, %v740_v63  ;;  %v744_v16 = vmul.f32 %v4330_v58, %v4162_v34 }
 0x2d5   : > { %v776_v19 = vadd.f32 %v4332_v61, %v741_v1  ;;  %v777_v21 = vadd.f32 %v4332_v61, %v742_v2  ;;  %v778_v10 = vadd.f32 %v4332_v61, %v743_v12  ;;  %v745_v13 = vmul.f32 %v4330_v58, %v4167_v39 }
 0x2d6   : > { %v746_v25 = vmul.f32 %v4330_v58, %v4172_v43  ;;  %v4432_v30 = vpack.c.bf16 %v775_v9, %v774_v0  ;;  %v779_v4 = vadd.f32 %v4332_v61, %v744_v16  ;;  %v783_v18 = vpack.c.bf16 %v753_v7, %v752_v24 }
 0x2d7   : > { %v4435_v5 = vpack.c.bf16 %v777_v21, %v776_v19  ;;  %v780_v6 = vadd.f32 %v4332_v61, %v745_v13  ;;  %v719_v39 = vmul.f32 %v4330_v58, %v4031_v11  ;;  %v720_v43 = vmul.f32 %v4330_v58, %v4037_v14 }
 0x2d8   : > { %v781_v34 = vadd.f32 %v4332_v61, %v746_v25  ;;  %v4439_v15 = vpack.c.bf16 %v779_v4, %v778_v10  ;;  %v721_v24 = vmul.f32 %v4330_v58, %v4042_v17  ;;  %v722_v11 = vmul.f32 %v4330_v58, %v4048_v20  ;;  %v713_v58 = vld [vmem:[%s5220_s5] sm:$0x7] }
 0x2d9   : > { %v754_v26 = vadd.f32 %v4332_v61, %v719_v39  ;;  %v755_v29 = vadd.f32 %v4332_v61, %v720_v43  ;;  %v4502_v42 = vperm.slane %v713_v58, 1 }
 0x2da   : > { %v4441_v23 = vpack.c.bf16 %v781_v34, %v780_v6  ;;  %v756_v7 = vadd.f32 %v4332_v61, %v721_v24  ;;  %v757_v14 = vadd.f32 %v4332_v61, %v722_v11  ;;  %v4494_v61 = vperm.slane %v713_v58, 0 }
 0x2db   : > { %v784_v27 = vpack.c.bf16 %v755_v29, %v754_v26 }
 0x2dc   : > { %v785_v35 = vpack.c.bf16 %v757_v14, %v756_v7 }
 0x2de   : > { %3035 = vmatmul.msk.bf16.gmra.mxu0 %vm370_vm0, %v783_v18  ;;  %3051 = vmatmul.msk.bf16.gmra.mxu2 %vm370_vm0, %v783_v18 }
 0x2df   : > { %3067 = vmatmul.msk.bf16.gmra.mxu1 %vm370_vm0, %v783_v18 }
 0x2ee   : > { %3036 = vmatmul.msk.bf16.gmra.mxu0 %vm370_vm0, %v784_v27  ;;  %3052 = vmatmul.msk.bf16.gmra.mxu2 %vm370_vm0, %v784_v27 }
 0x2ef   : > { %3068 = vmatmul.msk.bf16.gmra.mxu1 %vm370_vm0, %v784_v27 }
 0x2fe   : > { %3037 = vmatmul.msk.bf16.gmra.mxu0 %vm370_vm0, %v785_v35  ;;  %3053 = vmatmul.msk.bf16.gmra.mxu2 %vm370_vm0, %v785_v35 }
 0x2ff   : > { %3069 = vmatmul.msk.bf16.gmra.mxu1 %vm370_vm0, %v785_v35 }
 0x30e   : > { %3038 = vmatmul.msk.bf16.gmra.mxu0 %vm370_vm0, %v4364_v32  ;;  %3054 = vmatmul.msk.bf16.gmra.mxu2 %vm370_vm0, %v4364_v32 }
 0x30f   : > { %3070 = vmatmul.msk.bf16.gmra.mxu1 %vm370_vm0, %v4364_v32  ;;  %v4496_v32 = vperm.slane %v713_v58, 2 }
 0x31e   : > { %3039 = vmatmul.msk.bf16.gmra.mxu0 %vm370_vm0, %v4369_v38  ;;  %3055 = vmatmul.msk.bf16.gmra.mxu2 %vm370_vm0, %v4369_v38 }
 0x31f   : > { %3071 = vmatmul.msk.bf16.gmra.mxu1 %vm370_vm0, %v4369_v38 }
 0x32e   : > { %3040 = vmatmul.msk.bf16.gmra.mxu0 %vm370_vm0, %v4377_v37  ;;  %3056 = vmatmul.msk.bf16.gmra.mxu2 %vm370_vm0, %v4377_v37 }
 0x32f   : > { %3072 = vmatmul.msk.bf16.gmra.mxu1 %vm370_vm0, %v4377_v37 }
 0x33e   : > { %3041 = vmatmul.msk.bf16.gmra.mxu0 %vm370_vm0, %v789_v49  ;;  %3057 = vmatmul.msk.bf16.gmra.mxu2 %vm370_vm0, %v789_v49 }
 0x33f   : > { %3073 = vmatmul.msk.bf16.gmra.mxu1 %vm370_vm0, %v789_v49 }
 0x34b   : > { %v894_v17 = vpop.f32.mrf.mxu0 }
 0x34c   : > { %v1072_v20 = vpop.f32.mrf.mxu1  ;;  %v895_v31 = vadd.f32 %v894_v17, %v4494_v61 }
 0x34d   : > { %v1073_v37 = vadd.f32 %v1072_v20, %v4496_v32 }
 0x34e   : > { %3042 = vmatmul.msk.bf16.gmra.mxu0 %vm370_vm0, %v4400_v54  ;;  %3058 = vmatmul.msk.bf16.gmra.mxu2 %vm370_vm0, %v4400_v54 }
 0x34f   : > { %3074 = vmatmul.msk.bf16.gmra.mxu1 %vm370_vm0, %v4400_v54 }
 0x351   : > { %v983_v28 = vpop.f32.mrf.mxu2 }
 0x352   : > { %v984_v44 = vadd.f32 %v983_v28, %v4502_v42 }
 0x353   : > { %v896_v38 = vpop.f32.mrf.mxu0 }
 0x354   : > { %v897_v33 = vadd.f32 %v896_v38, %v4494_v61  ;;  %v1074_v36 = vpop.f32.mrf.mxu1 }
 0x355   : > { %v1075_v40 = vadd.f32 %v1074_v36, %v4496_v32 }
 0x356   : > { %v3375_v45 = vpack.c.bf16 %v897_v33, %v895_v31 }
 0x357   : > { %v3535_v46 = vpack.c.bf16 %v1075_v40, %v1073_v37 }
 0x358   : > { %3376 = vst [vmem:[#allocation2 + $0x30] sm:$0xff] %v3375_v45  }
 0x359   : > { %3536 = vst [vmem:[#allocation4 + $0x8] sm:$0xff] %v3535_v46   ;;  %v985_v41 = vpop.f32.mrf.mxu2 }
 0x35a   : > { %v986_v47 = vadd.f32 %v985_v41, %v4502_v42 }
 0x35b   : > { %v899_v48 = vpop.f32.mrf.mxu0 }
 0x35c   : > { %v3455_v22 = vpack.c.bf16 %v986_v47, %v984_v44  ;;  %v1077_v50 = vpop.f32.mrf.mxu1  ;;  %v900_v56 = vadd.f32 %v899_v48, %v4494_v61 }
 0x35d   : > { %v1078_v54 = vadd.f32 %v1077_v50, %v4496_v32 }
 0x35e   : > { %3456 = vst [vmem:[#allocation3 + $0x28] sm:$0xff] %v3455_v22   ;;  %3043 = vmatmul.msk.bf16.gmra.mxu0 %vm370_vm0, %v4402_v59  ;;  %3059 = vmatmul.msk.bf16.gmra.mxu2 %vm370_vm0, %v4402_v59 }
 0x35f   : > { %3075 = vmatmul.msk.bf16.gmra.mxu1 %vm370_vm0, %v4402_v59 }
 0x361   : > { %v988_v53 = vpop.f32.mrf.mxu2 }
 0x362   : > { %v989_v63 = vadd.f32 %v988_v53, %v4502_v42 }
 0x363   : > { %v901_v49 = vpop.f32.mrf.mxu0 }
 0x364   : > { %v902_v51 = vadd.f32 %v901_v49, %v4494_v61  ;;  %v1079_v52 = vpop.f32.mrf.mxu1 }
 0x365   : > { %v1080_v55 = vadd.f32 %v1079_v52, %v4496_v32 }
 0x366   : > { %v3380_v57 = vpack.c.bf16 %v902_v51, %v900_v56 }
 0x367   : > { %v3540_v62 = vpack.c.bf16 %v1080_v55, %v1078_v54 }
 0x368   : > { %3612 = vst [vmem:[#allocation2] sm:$0xff] %v3380_v57  }
 0x369   : > { %3642 = vst [vmem:[#allocation4] sm:$0xff] %v3540_v62   ;;  %v990_v60 = vpop.f32.mrf.mxu2 }
 0x36a   : > { %v991_v59 = vadd.f32 %v990_v60, %v4502_v42 }
 0x36b   : > { %v904_v1 = vpop.f32.mrf.mxu0 }
 0x36c   : > { %v3460_v0 = vpack.c.bf16 %v991_v59, %v989_v63  ;;  %v1082_v2 = vpop.f32.mrf.mxu1  ;;  %v905_v19 = vadd.f32 %v904_v1, %v4494_v61 }
 0x36d   : > { %v1083_v10 = vadd.f32 %v1082_v2, %v4496_v32 }
 0x36e   : > { %3627 = vst [vmem:[#allocation3 + $0x68] sm:$0xff] %v3460_v0   ;;  %3044 = vmatmul.msk.bf16.gmra.mxu0 %vm370_vm0, %v4413_v8  ;;  %3060 = vmatmul.msk.bf16.gmra.mxu2 %vm370_vm0, %v4413_v8 }
 0x36f   : > { %3076 = vmatmul.msk.bf16.gmra.mxu1 %vm370_vm0, %v4413_v8 }
 0x371   : > { %v993_v12 = vpop.f32.mrf.mxu2 }
 0x372   : > { %v994_v34 = vadd.f32 %v993_v12, %v4502_v42 }
 0x373   : > { %v906_v9 = vpop.f32.mrf.mxu0 }
 0x374   : > { %v907_v16 = vadd.f32 %v906_v9, %v4494_v61  ;;  %v1084_v21 = vpop.f32.mrf.mxu1 }
 0x375   : > { %v1085_v13 = vadd.f32 %v1084_v21, %v4496_v32 }
 0x376   : > { %v3385_v25 = vpack.c.bf16 %v907_v16, %v905_v19 }
 0x377   : > { %v3545_v4 = vpack.c.bf16 %v1085_v13, %v1083_v10 }
 0x378   : > { %3613 = vst [vmem:[#allocation2 + $0x58] sm:$0xff] %v3385_v25  }
 0x379   : > { %3643 = vst [vmem:[#allocation4 + $0x48] sm:$0xff] %v3545_v4   ;;  %v995_v6 = vpop.f32.mrf.mxu2 }
 0x37a   : > { %v996_v8 = vadd.f32 %v995_v6, %v4502_v42 }
 0x37b   : > { %v909_v18 = vpop.f32.mrf.mxu0 }
 0x37c   : > { %v3465_v39 = vpack.c.bf16 %v996_v8, %v994_v34  ;;  %v1087_v43 = vpop.f32.mrf.mxu1  ;;  %v910_v27 = vadd.f32 %v909_v18, %v4494_v61 }
 0x37d   : > { %v1088_v7 = vadd.f32 %v1087_v43, %v4496_v32 }
 0x37e   : > { %3628 = vst [vmem:[#allocation3 + $0x10] sm:$0xff] %v3465_v39   ;;  %3045 = vmatmul.msk.bf16.gmra.mxu0 %vm370_vm0, %v4420_v3  ;;  %3061 = vmatmul.msk.bf16.gmra.mxu2 %vm370_vm0, %v4420_v3 }
 0x37f   : > { %3077 = vmatmul.msk.bf16.gmra.mxu1 %vm370_vm0, %v4420_v3 }
 0x381   : > { %v998_v26 = vpop.f32.mrf.mxu2 }
 0x382   : > { %v999_v58 = vadd.f32 %v998_v26, %v4502_v42 }
 0x383   : > { %v911_v29 = vpop.f32.mrf.mxu0 }
 0x384   : > { %v912_v24 = vadd.f32 %v911_v29, %v4494_v61  ;;  %v1089_v11 = vpop.f32.mrf.mxu1 }
 0x385   : > { %v1090_v14 = vadd.f32 %v1089_v11, %v4496_v32 }
 0x386   : > { %v3390_v35 = vpack.c.bf16 %v912_v24, %v910_v27 }
 0x387   : > { %v3550_v17 = vpack.c.bf16 %v1090_v14, %v1088_v7 }
 0x388   : > { %3614 = vst [vmem:[#allocation2 + $0x18] sm:$0xff] %v3390_v35  }
 0x389   : > { %3644 = vst [vmem:[#allocation4 + $0x60] sm:$0xff] %v3550_v17   ;;  %v1000_v20 = vpop.f32.mrf.mxu2 }
 0x38a   : > { %v1001_v3 = vadd.f32 %v1000_v20, %v4502_v42 }
 0x38b   : > { %v914_v28 = vpop.f32.mrf.mxu0 }
 0x38c   : > { %v3470_v38 = vpack.c.bf16 %v1001_v3, %v999_v58  ;;  %v1092_v31 = vpop.f32.mrf.mxu1  ;;  %v915_v37 = vadd.f32 %v914_v28, %v4494_v61 }
 0x38d   : > { %v1093_v46 = vadd.f32 %v1092_v31, %v4496_v32 }
 0x38e   : > { %3629 = vst [vmem:[#allocation3 + $0x40] sm:$0xff] %v3470_v38   ;;  %3046 = vmatmul.msk.bf16.gmra.mxu0 %vm370_vm0, %v4432_v30  ;;  %3062 = vmatmul.msk.bf16.gmra.mxu2 %vm370_vm0, %v4432_v30 }
 0x38f   : > { %3078 = vmatmul.msk.bf16.gmra.mxu1 %vm370_vm0, %v4432_v30 }
 0x391   : > { %v1003_v33 = vpop.f32.mrf.mxu2 }
 0x392   : > { %v1004_v22 = vadd.f32 %v1003_v33, %v4502_v42 }
 0x393   : > { %v916_v36 = vpop.f32.mrf.mxu0 }
 0x394   : > { %v917_v40 = vadd.f32 %v916_v36, %v4494_v61  ;;  %v1094_v45 = vpop.f32.mrf.mxu1 }
 0x395   : > { %v1095_v41 = vadd.f32 %v1094_v45, %v4496_v32 }
 0x396   : > { %v3395_v44 = vpack.c.bf16 %v917_v40, %v915_v37 }
 0x397   : > { %v3555_v47 = vpack.c.bf16 %v1095_v41, %v1093_v46 }
 0x398   : > { %3615 = vst [vmem:[#allocation2 + $0x50] sm:$0xff] %v3395_v44  }
 0x399   : > { %3645 = vst [vmem:[#allocation4 + $0x68] sm:$0xff] %v3555_v47   ;;  %v1005_v48 = vpop.f32.mrf.mxu2 }
 0x39a   : > { %v1006_v30 = vadd.f32 %v1005_v48, %v4502_v42 }
 0x39b   : > { %v919_v50 = vpop.f32.mrf.mxu0 }
 0x39c   : > { %v3475_v53 = vpack.c.bf16 %v1006_v30, %v1004_v22  ;;  %v1097_v49 = vpop.f32.mrf.mxu1  ;;  %v920_v52 = vadd.f32 %v919_v50, %v4494_v61 }
 0x39d   : > { %v1098_v57 = vadd.f32 %v1097_v49, %v4496_v32 }
 0x39e   : > { %3630 = vst [vmem:[#allocation3 + $0x48] sm:$0xff] %v3475_v53   ;;  %3047 = vmatmul.msk.bf16.gmra.mxu0 %vm370_vm0, %v4435_v5  ;;  %3063 = vmatmul.msk.bf16.gmra.mxu2 %vm370_vm0, %v4435_v5 }
 0x39f   : > { %3079 = vmatmul.msk.bf16.gmra.mxu1 %vm370_vm0, %v4435_v5 }
 0x3a1   : > { %v1008_v56 = vpop.f32.mrf.mxu2 }
 0x3a2   : > { %v1009_v1 = vadd.f32 %v1008_v56, %v4502_v42 }
 0x3a3   : > { %v921_v51 = vpop.f32.mrf.mxu0 }
 0x3a4   : > { %v922_v54 = vadd.f32 %v921_v51, %v4494_v61  ;;  %v1099_v55 = vpop.f32.mrf.mxu1 }
 0x3a5   : > { %v1100_v62 = vadd.f32 %v1099_v55, %v4496_v32 }
 0x3a6   : > { %v3400_v60 = vpack.c.bf16 %v922_v54, %v920_v52  ;;  %v3352_v54 = vld [vmem:[#allocation4 + $0x68] sm:$0xff] }
 0x3a7   : > { %v3560_v63 = vpack.c.bf16 %v1100_v62, %v1098_v57  ;;  %v3351_v57 = vld [vmem:[#allocation4 + $0x60] sm:$0xff] }
 0x3a8   : > { %3616 = vst [vmem:[#allocation2 + $0x68] sm:$0xff] %v3400_v60  }
 0x3a9   : > { %3646 = vst [vmem:[#allocation4 + $0x18] sm:$0xff] %v3560_v63   ;;  %v1010_v59 = vpop.f32.mrf.mxu2 }
 0x3aa   : > { %v1011_v5 = vadd.f32 %v1010_v59, %v4502_v42 }
 0x3ab   : > { %v924_v0 = vpop.f32.mrf.mxu0 }
 0x3ac   : > { %v3480_v2 = vpack.c.bf16 %v1011_v5, %v1009_v1  ;;  %v1102_v12 = vpop.f32.mrf.mxu1  ;;  %v925_v16 = vadd.f32 %v924_v0, %v4494_v61  ;;  %v3350_v5 = vld [vmem:[#allocation4 + $0x48] sm:$0xff] }
 0x3ad   : > { %v1103_v13 = vadd.f32 %v1102_v12, %v4496_v32 }
 0x3ae   : > { %3631 = vst [vmem:[#allocation3 + $0x30] sm:$0xff] %v3480_v2   ;;  %3048 = vmatmul.msk.bf16.gmra.mxu0 %vm370_vm0, %v4439_v15  ;;  %3064 = vmatmul.msk.bf16.gmra.mxu2 %vm370_vm0, %v4439_v15 }
 0x3af   : > { %3080 = vmatmul.msk.bf16.gmra.mxu1 %vm370_vm0, %v4439_v15 }
 0x3b0   : > { %v3353_v30 = vld [vmem:[#allocation4 + $0x18] sm:$0xff] }
 0x3b1   : > { %v1013_v9 = vpop.f32.mrf.mxu2 }
 0x3b2   : > { %v1014_v8 = vadd.f32 %v1013_v9, %v4502_v42 }
 0x3b3   : > { %v926_v19 = vpop.f32.mrf.mxu0 }
 0x3b4   : > { %v927_v21 = vadd.f32 %v926_v19, %v4494_v61  ;;  %v1104_v10 = vpop.f32.mrf.mxu1 }
 0x3b5   : > { %v1105_v25 = vadd.f32 %v1104_v10, %v4496_v32  ;;  %v3337_v12 = vld [vmem:[#allocation3 + $0x30] sm:$0xff] }
 0x3b6   : > { %v3405_v4 = vpack.c.bf16 %v927_v21, %v925_v16  ;;  %v3349_v16 = vld [vmem:[#allocation4] sm:$0xff] }
 0x3b7   : > { %v3565_v6 = vpack.c.bf16 %v1105_v25, %v1103_v13 }
 0x3b8   : > { %3617 = vst [vmem:[#allocation2 + $0x8] sm:$0xff] %v3405_v4  }
 0x3b9   : > { %3647 = vst [vmem:[#allocation4 + $0x10] sm:$0xff] %v3565_v6   ;;  %v1015_v34 = vpop.f32.mrf.mxu2 }
 0x3ba   : > { %v1016_v15 = vadd.f32 %v1015_v34, %v4502_v42  ;;  %v3348_v34 = vld [vmem:[#allocation4 + $0x8] sm:$0xff] }
 0x3bb   : > { %v929_v18 = vpop.f32.mrf.mxu0 }
 0x3bc   : > { %v3485_v39 = vpack.c.bf16 %v1016_v15, %v1014_v8  ;;  %v1107_v43 = vpop.f32.mrf.mxu1  ;;  %v930_v27 = vadd.f32 %v929_v18, %v4494_v61  ;;  %v3336_v8 = vld [vmem:[#allocation3 + $0x48] sm:$0xff] }
 0x3bd   : > { %v1108_v7 = vadd.f32 %v1107_v43, %v4496_v32 }
 0x3be   : > { %3632 = vst [vmem:[#allocation3 + $0x70] sm:$0xff] %v3485_v39   ;;  %3049 = vmatmul.msk.bf16.gmra.mxu0 %vm370_vm0, %v4441_v23  ;;  %3065 = vmatmul.msk.bf16.gmra.mxu2 %vm370_vm0, %v4441_v23 }
 0x3bf   : > { %3081 = vmatmul.msk.bf16.gmra.mxu1 %vm370_vm0, %v4441_v23 }
 0x3c0   : > { %v3354_v46 = vld [vmem:[#allocation4 + $0x10] sm:$0xff] }
 0x3c1   : > { %v1018_v26 = vpop.f32.mrf.mxu2 }
 0x3c2   : > { %v1019_v58 = vadd.f32 %v1018_v26, %v4502_v42 }
 0x3c3   : > { %v931_v29 = vpop.f32.mrf.mxu0 }
 0x3c4   : > { %v932_v24 = vadd.f32 %v931_v29, %v4494_v61  ;;  %v1109_v11 = vpop.f32.mrf.mxu1 }
 0x3c5   : > { %v1110_v14 = vadd.f32 %v1109_v11, %v4496_v32  ;;  %v3338_v55 = vld [vmem:[#allocation3 + $0x70] sm:$0xff] }
 0x3c6   : > { %v3410_v35 = vpack.c.bf16 %v932_v24, %v930_v27  ;;  %v3335_v24 = vld [vmem:[#allocation3 + $0x40] sm:$0xff] }
 0x3c7   : > { %v3570_v17 = vpack.c.bf16 %v1110_v14, %v1108_v7 }
 0x3c8   : > { %3618 = vst [vmem:[#allocation2 + $0x48] sm:$0xff] %v3410_v35  }
 0x3c9   : > { %3648 = vst [vmem:[#allocation4 + $0x38] sm:$0xff] %v3570_v17   ;;  %v1020_v20 = vpop.f32.mrf.mxu2 }
 0x3ca   : > { %v1021_v23 = vadd.f32 %v1020_v20, %v4502_v42 }
 0x3cb   : > { %v934_v3 = vpop.f32.mrf.mxu0 }
 0x3cc   : > { %v3490_v28 = vpack.c.bf16 %v1021_v23, %v1019_v58  ;;  %v1112_v38 = vpop.f32.mrf.mxu1  ;;  %v935_v37 = vadd.f32 %v934_v3, %v4494_v61  ;;  %v3334_v3 = vld [vmem:[#allocation3 + $0x10] sm:$0xff] }
 0x3cd   : > { %v1113_v41 = vadd.f32 %v1112_v38, %v4496_v32 }
 0x3ce   : > { %3633 = vst [vmem:[#allocation3 + $0x38] sm:$0xff] %v3490_v28  }
 0x3d0   : > { %v3355_v31 = vld [vmem:[#allocation4 + $0x38] sm:$0xff] }
 0x3d1   : > { %v1023_v33 = vpop.f32.mrf.mxu2  ;;  %2264 = vmatpush.bf16.msra.mxu2 %v3355_v31 }
 0x3d2   : > { %v1024_v53 = vadd.f32 %v1023_v33, %v4502_v42 }
 0x3d3   : > { %v936_v36 = vpop.f32.mrf.mxu0 }
 0x3d4   : > { %v937_v40 = vadd.f32 %v936_v36, %v4494_v61  ;;  %v1114_v45 = vpop.f32.mrf.mxu1 }
 0x3d5   : > { %v1115_v44 = vadd.f32 %v1114_v45, %v4496_v32  ;;  %v3339_v47 = vld [vmem:[#allocation3 + $0x38] sm:$0xff]  ;;  %2265 = vmatpush.bf16.msra.mxu2 %v3354_v46  ;;  %v3333_v45 = vld [vmem:[#allocation3 + $0x68] sm:$0xff] }
 0x3d6   : > { %v3415_v48 = vpack.c.bf16 %v937_v40, %v935_v37  ;;  %1638 = vmatpush.bf16.xpose.msra.mxu3 %v3339_v47 }
 0x3d7   : > { %v3575_v22 = vpack.c.bf16 %v1115_v44, %v1113_v41 }
 0x3d8   : > { %3619 = vst [vmem:[#allocation2 + $0x40] sm:$0xff] %v3415_v48  }
 0x3d9   : > { %3649 = vst [vmem:[#allocation4 + $0x40] sm:$0xff] %v3575_v22   ;;  %v1025_v50 = vpop.f32.mrf.mxu2  ;;  %2266 = vmatpush.bf16.msra.mxu2 %v3353_v30 }
 0x3da   : > { %v1026_v49 = vadd.f32 %v1025_v50, %v4502_v42 }
 0x3db   : > { %v939_v56 = vpop.f32.mrf.mxu0 }
 0x3dc   : > { %v3495_v51 = vpack.c.bf16 %v1026_v49, %v1024_v53  ;;  %v1117_v52 = vpop.f32.mrf.mxu1  ;;  %v940_v63 = vadd.f32 %v939_v56, %v4494_v61  ;;  %v3332_v53 = vld [vmem:[#allocation3 + $0x28] sm:$0xff] }
 0x3dd   : > { %2267 = vmatpush.bf16.msra.mxu2 %v3352_v54  ;;  %v1118_v0 = vadd.f32 %v1117_v52, %v4496_v32 }
 0x3de   : > { %3634 = vst [vmem:[#allocation3 + $0x20] sm:$0xff] %v3495_v51   ;;  %1639 = vmatpush.bf16.xpose.msra.mxu3 %v3338_v55  ;;  %v4616_v55 = vld [vmem:[#allocation2 + $0x30] sm:$0xff] }
 0x3e1   : > { %v1028_v62 = vpop.f32.mrf.mxu2  ;;  %2268 = vmatpush.bf16.msra.mxu2 %v3351_v57 }
 0x3e2   : > { %v1029_v10 = vadd.f32 %v1028_v62, %v4502_v42 }
 0x3e3   : > { %v941_v60 = vpop.f32.mrf.mxu0 }
 0x3e4   : > { %v942_v59 = vadd.f32 %v941_v60, %v4494_v61  ;;  %v1119_v1 = vpop.f32.mrf.mxu1 }
 0x3e5   : > { %v1120_v2 = vadd.f32 %v1119_v1, %v4496_v32  ;;  %2269 = vmatpush.bf16.msra.mxu2 %v3350_v5 }
 0x3e6   : > { %v3420_v9 = vpack.c.bf16 %v942_v59, %v940_v63  ;;  %1640 = vmatpush.bf16.xpose.msra.mxu3 %v3337_v12 }
 0x3e7   : > { %v3580_v19 = vpack.c.bf16 %v1120_v2, %v1118_v0 }
 0x3e8   : > { %3620 = vst [vmem:[#allocation2 + $0x20] sm:$0xff] %v3420_v9  }
 0x3e9   : > { %3650 = vst [vmem:[#allocation4 + $0x28] sm:$0xff] %v3580_v19   ;;  %v1030_v21 = vpop.f32.mrf.mxu2  ;;  %2270 = vmatpush.bf16.msra.mxu2 %v3349_v16 }
 0x3ea   : > { %v1031_v13 = vadd.f32 %v1030_v21, %v4502_v42 }
 0x3eb   : > { %v944_v25 = vpop.f32.mrf.mxu0 }
 0x3ec   : > { %v3500_v4 = vpack.c.bf16 %v1031_v13, %v1029_v10  ;;  %v1122_v6 = vpop.f32.mrf.mxu1  ;;  %v945_v39 = vadd.f32 %v944_v25, %v4494_v61  ;;  %v4625_v13 = vld [vmem:[#allocation2] sm:$0xff] }
 0x3ed   : > { %2271 = vmatpush.bf16.msra.mxu2 %v3348_v34  ;;  %v1123_v29 = vadd.f32 %v1122_v6, %v4496_v32 }
 0x3ee   : > { %3635 = vst [vmem:[#allocation3 + $0x78] sm:$0xff] %v3500_v4   ;;  %1641 = vmatpush.bf16.xpose.msra.mxu3 %v3336_v8 }
 0x3f1   : > { %v1033_v15 = vpop.f32.mrf.mxu2 }
 0x3f2   : > { %v1034_v35 = vadd.f32 %v1033_v15, %v4502_v42 }
 0x3f3   : > { %v946_v18 = vpop.f32.mrf.mxu0 }
 0x3f4   : > { %v947_v43 = vadd.f32 %v946_v18, %v4494_v61  ;;  %v1124_v26 = vpop.f32.mrf.mxu1 }
 0x3f5   : > { %v1125_v27 = vadd.f32 %v1124_v26, %v4496_v32 }
 0x3f6   : > { %v3425_v11 = vpack.c.bf16 %v947_v43, %v945_v39  ;;  %1642 = vmatpush.bf16.xpose.msra.mxu3 %v3335_v24 }
 0x3f7   : > { %v3585_v7 = vpack.c.bf16 %v1125_v27, %v1123_v29 }
 0x3f8   : > { %3621 = vst [vmem:[#allocation2 + $0x10] sm:$0xff] %v3425_v11  }
 0x3f9   : > { %3651 = vst [vmem:[#allocation4 + $0x70] sm:$0xff] %v3585_v7   ;;  %v1035_v14 = vpop.f32.mrf.mxu2 }
 0x3fa   : > { %v1036_v17 = vadd.f32 %v1035_v14, %v4502_v42  ;;  %v4634_v14 = vld [vmem:[#allocation2 + $0x58] sm:$0xff] }
 0x3fb   : > { %v949_v20 = vpop.f32.mrf.mxu0 }
 0x3fc   : > { %v3505_v58 = vpack.c.bf16 %v1036_v17, %v1034_v35  ;;  %v1127_v23 = vpop.f32.mrf.mxu1  ;;  %v950_v31 = vadd.f32 %v949_v20, %v4494_v61 }
 0x3fd   : > { %v1128_v37 = vadd.f32 %v1127_v23, %v4496_v32 }
 0x3fe   : > { %3636 = vst [vmem:[#allocation3 + $0x18] sm:$0xff] %v3505_v58   ;;  %1643 = vmatpush.bf16.xpose.msra.mxu3 %v3334_v3 }
 0x401   : > { %v1038_v28 = vpop.f32.mrf.mxu2 }
 0x402   : > { %v1039_v47 = vadd.f32 %v1038_v28, %v4502_v42 }
 0x403   : > { %v951_v38 = vpop.f32.mrf.mxu0 }
 0x404   : > { %v952_v33 = vadd.f32 %v951_v38, %v4494_v61  ;;  %v1129_v36 = vpop.f32.mrf.mxu1 }
 0x405   : > { %v1130_v40 = vadd.f32 %v1129_v36, %v4496_v32 }
 0x406   : > { %v3430_v46 = vpack.c.bf16 %v952_v33, %v950_v31  ;;  %1644 = vmatpush.bf16.xpose.msra.mxu3 %v3333_v45 }
 0x407   : > { %v3590_v41 = vpack.c.bf16 %v1130_v40, %v1128_v37 }
 0x408   : > { %3622 = vst [vmem:[#allocation2 + $0x38] sm:$0xff] %v3430_v46  }
 0x409   : > { %3652 = vst [vmem:[#allocation4 + $0x20] sm:$0xff] %v3590_v41   ;;  %v1040_v44 = vpop.f32.mrf.mxu2  ;;  %v4643_v41 = vld [vmem:[#allocation2 + $0x18] sm:$0xff] }
 0x40a   : > { %v1041_v48 = vadd.f32 %v1040_v44, %v4502_v42 }
 0x40b   : > { %v954_v22 = vpop.f32.mrf.mxu0 }
 0x40c   : > { %v3510_v30 = vpack.c.bf16 %v1041_v48, %v1039_v47  ;;  %v1132_v50 = vpop.f32.mrf.mxu1  ;;  %v955_v51 = vadd.f32 %v954_v22, %v4494_v61 }
 0x40d   : > { %v1133_v57 = vadd.f32 %v1132_v50, %v4496_v32 }
 0x40e   : > { %3637 = vst [vmem:[#allocation3 + $0x58] sm:$0xff] %v3510_v30   ;;  %1645 = vmatpush.bf16.xpose.msra.mxu3 %v3332_v53 }
 0x411   : > { %v1043_v49 = vpop.f32.mrf.mxu2 }
 0x412   : > { %v1044_v1 = vadd.f32 %v1043_v49, %v4502_v42 }
 0x413   : > { %v956_v56 = vpop.f32.mrf.mxu0 }
 0x414   : > { %v957_v52 = vadd.f32 %v956_v56, %v4494_v61  ;;  %v1134_v54 = vpop.f32.mrf.mxu1 }
 0x415   : > { %v1135_v62 = vadd.f32 %v1134_v54, %v4496_v32  ;;  %1646 = vmatmul.bf16.vlgmr.msra.gmra.mxu3 %v4616_v55 }
 0x416   : > { %v3435_v60 = vpack.c.bf16 %v957_v52, %v955_v51  ;;  %v3320_v51 = vld [vmem:[#allocation2 + $0x50] sm:$0xff] }
 0x417   : > { %v3595_v63 = vpack.c.bf16 %v1135_v62, %v1133_v57  ;;  %v3359_v62 = vld [vmem:[#allocation4 + $0x20] sm:$0xff] }
 0x418   : > { %3623 = vst [vmem:[#allocation2 + $0x60] sm:$0xff] %v3435_v60   ;;  %v3358_v60 = vld [vmem:[#allocation4 + $0x70] sm:$0xff] }
 0x419   : > { %3653 = vst [vmem:[#allocation4 + $0x58] sm:$0xff] %v3595_v63   ;;  %v1045_v59 = vpop.f32.mrf.mxu2 }
 0x41a   : > { %v1046_v5 = vadd.f32 %v1045_v59, %v4502_v42  ;;  %v3357_v59 = vld [vmem:[#allocation4 + $0x28] sm:$0xff] }
 0x41b   : > { %v959_v0 = vpop.f32.mrf.mxu0 }
 0x41c   : > { %v3515_v2 = vpack.c.bf16 %v1046_v5, %v1044_v1  ;;  %v1137_v12 = vpop.f32.mrf.mxu1  ;;  %v960_v16 = vadd.f32 %v959_v0, %v4494_v61  ;;  %v3356_v1 = vld [vmem:[#allocation4 + $0x40] sm:$0xff]  ;;  %v3322_v0 = vld [vmem:[#allocation2 + $0x8] sm:$0xff] }
 0x41d   : > { %v1138_v25 = vadd.f32 %v1137_v12, %v4496_v32  ;;  %v3342_v12 = vld [vmem:[#allocation3 + $0x18] sm:$0xff] }
 0x41e   : > { %3638 = vst [vmem:[#allocation3] sm:$0xff] %v3515_v2   ;;  %v3343_v2 = vld [vmem:[#allocation3 + $0x58] sm:$0xff] }
 0x420   : > { %v3360_v54 = vld [vmem:[#allocation4 + $0x58] sm:$0xff] }
 0x421   : > { %v1048_v9 = vpop.f32.mrf.mxu2 }
 0x422   : > { %v1049_v15 = vadd.f32 %v1048_v9, %v4502_v42  ;;  %v3323_v9 = vld [vmem:[#allocation2 + $0x48] sm:$0xff] }
 0x423   : > { %v961_v19 = vpop.f32.mrf.mxu0 }
 0x424   : > { %v962_v21 = vadd.f32 %v961_v19, %v4494_v61  ;;  %v1139_v10 = vpop.f32.mrf.mxu1  ;;  %v3341_v19 = vld [vmem:[#allocation3 + $0x78] sm:$0xff] }
 0x425   : > { %v1140_v4 = vadd.f32 %v1139_v10, %v4496_v32  ;;  %1651 = vmatmul.bf16.gmra.mxu3 %v4625_v13  ;;  %v3344_v5 = vld [vmem:[#allocation3] sm:$0xff] }
 0x426   : > { %v3440_v6 = vpack.c.bf16 %v962_v21, %v960_v16  ;;  %v3340_v16 = vld [vmem:[#allocation3 + $0x20] sm:$0xff] }
 0x427   : > { %v3600_v34 = vpack.c.bf16 %v1140_v4, %v1138_v25  ;;  %v3324_v21 = vld [vmem:[#allocation2 + $0x40] sm:$0xff]  ;;  %v3326_v25 = vld [vmem:[#allocation2 + $0x10] sm:$0xff] }
 0x428   : > { %3624 = vst [vmem:[#allocation2 + $0x70] sm:$0xff] %v3440_v6   ;;  %v3325_v10 = vld [vmem:[#allocation2 + $0x20] sm:$0xff]  ;;  %v3327_v6 = vld [vmem:[#allocation2 + $0x38] sm:$0xff] }
 0x429   : > { %3654 = vst [vmem:[#allocation4 + $0x30] sm:$0xff] %v3600_v34   ;;  %v1050_v8 = vpop.f32.mrf.mxu2 }
 0x42a   : > { %v1051_v18 = vadd.f32 %v1050_v8, %v4502_v42 }
 0x42b   : > { %v964_v39 = vpop.f32.mrf.mxu0 }
 0x42c   : > { %v3520_v43 = vpack.c.bf16 %v1051_v18, %v1049_v15  ;;  %v1142_v26 = vpop.f32.mrf.mxu1  ;;  %v965_v24 = vadd.f32 %v964_v39, %v4494_v61  ;;  %v3328_v15 = vld [vmem:[#allocation2 + $0x60] sm:$0xff] }
 0x42d   : > { %v1143_v35 = vadd.f32 %v1142_v26, %v4496_v32 }
 0x42e   : > { %3639 = vst [vmem:[#allocation3 + $0x8] sm:$0xff] %v3520_v43  }
 0x431   : > { %v1053_v29 = vpop.f32.mrf.mxu2 }
 0x432   : > { %v1054_v3 = vadd.f32 %v1053_v29, %v4502_v42 }
 0x433   : > { %v966_v27 = vpop.f32.mrf.mxu0 }
 0x434   : > { %v967_v11 = vadd.f32 %v966_v27, %v4494_v61  ;;  %v1144_v7 = vpop.f32.mrf.mxu1 }
 0x435   : > { %v1145_v17 = vadd.f32 %v1144_v7, %v4496_v32  ;;  %1656 = vmatmul.bf16.gmra.mxu3 %v4634_v14  ;;  %v3345_v63 = vld [vmem:[#allocation3 + $0x8] sm:$0xff] }
 0x436   : > { %v3445_v20 = vpack.c.bf16 %v967_v11, %v965_v24 }
 0x437   : > { %v3605_v58 = vpack.c.bf16 %v1145_v17, %v1143_v35 }
 0x438   : > { %3625 = vst [vmem:[#allocation2 + $0x78] sm:$0xff] %v3445_v20  }
 0x439   : > { %3655 = vst [vmem:[#allocation4 + $0x50] sm:$0xff] %v3605_v58   ;;  %v1055_v23 = vpop.f32.mrf.mxu2 }
 0x43a   : > { %v1056_v28 = vadd.f32 %v1055_v23, %v4502_v42 }
 0x43b   : > { %v969_v38 = vpop.f32.mrf.mxu0 }
 0x43c   : > { %v3525_v31 = vpack.c.bf16 %v1056_v28, %v1054_v3  ;;  %v1147_v33 = vpop.f32.mrf.mxu1  ;;  %v970_v40 = vadd.f32 %v969_v38, %v4494_v61 }
 0x43d   : > { %v1148_v44 = vadd.f32 %v1147_v33, %v4496_v32 }
 0x43e   : > { %3640 = vst [vmem:[#allocation3 + $0x60] sm:$0xff] %v3525_v31  }
 0x43f   : > { %v3330_v43 = vld [vmem:[#allocation2 + $0x78] sm:$0xff] }
 0x440   : > { %v3362_v56 = vld [vmem:[#allocation4 + $0x50] sm:$0xff] }
 0x441   : > { %v1058_v36 = vpop.f32.mrf.mxu2 }
 0x442   : > { %v1059_v50 = vadd.f32 %v1058_v36, %v4502_v42 }
 0x443   : > { %v971_v37 = vpop.f32.mrf.mxu0 }
 0x444   : > { %v972_v45 = vadd.f32 %v971_v37, %v4494_v61  ;;  %v1149_v46 = vpop.f32.mrf.mxu1 }
 0x445   : > { %v1150_v47 = vadd.f32 %v1149_v46, %v4496_v32  ;;  %1661 = vmatmul.bf16.gmra.mxu3 %v4643_v41  ;;  %v3361_v32 = vld [vmem:[#allocation4 + $0x30] sm:$0xff]  ;;  %v3346_v57 = vld [vmem:[#allocation3 + $0x60] sm:$0xff] }
 0x446   : > { %v3450_v48 = vpack.c.bf16 %v972_v45, %v970_v40 }
 0x447   : > { %v3610_v22 = vpack.c.bf16 %v1150_v47, %v1148_v44 }
 0x448   : > { %3626 = vst [vmem:[#allocation2 + $0x28] sm:$0xff] %v3450_v48  }
 0x449   : > { %3656 = vst [vmem:[#allocation4 + $0x78] sm:$0xff] %v3610_v22   ;;  %v1060_v30 = vpop.f32.mrf.mxu2 }
 0x44a   : > { %v1061_v53 = vadd.f32 %v1060_v30, %v4502_v42  ;;  %v3321_v42 = vld [vmem:[#allocation2 + $0x68] sm:$0xff] }
 0x44c   : > { %v3530_v49 = vpack.c.bf16 %v1061_v53, %v1059_v50 }
 0x44e   : > { %3641 = vst [vmem:[#allocation3 + $0x50] sm:$0xff] %v3530_v49  }
 0x44f   : > { %v4668_v29 = vld [vmem:[#allocation2 + $0x28] sm:$0xff] }
 0x450   : > { %v3363_v61 = vld [vmem:[#allocation4 + $0x78] sm:$0xff] }
 0x451   : > { %2353 = vmatpush.bf16.msrb.mxu1 %v3363_v61 }
 0x455   : > { %v3347_v52 = vld [vmem:[#allocation3 + $0x50] sm:$0xff]  ;;  %2354 = vmatpush.bf16.msrb.mxu1 %v3362_v56  ;;  %1666 = vmatmul.bf16.gmra.mxu3 %v3320_v51 }
 0x456   : > { %1727 = vmatpush.bf16.xpose.msra.mxu0 %v3347_v52 }
 0x459   : > { %2355 = vmatpush.bf16.msrb.mxu1 %v3361_v32 }
 0x45d   : > { %2356 = vmatpush.bf16.msrb.mxu1 %v3360_v54 }
 0x45e   : > { %1728 = vmatpush.bf16.xpose.msra.mxu0 %v3346_v57 }
 0x461   : > { %2357 = vmatpush.bf16.msrb.mxu1 %v3359_v62 }
 0x465   : > { %2358 = vmatpush.bf16.msrb.mxu1 %v3358_v60  ;;  %1671 = vmatmul.bf16.gmra.mxu3 %v3321_v42 }
 0x466   : > { %1729 = vmatpush.bf16.xpose.msra.mxu0 %v3345_v63 }
 0x469   : > { %2359 = vmatpush.bf16.msrb.mxu1 %v3357_v59 }
 0x46d   : > { %2360 = vmatpush.bf16.msrb.mxu1 %v3356_v1 }
 0x46e   : > { %1730 = vmatpush.bf16.xpose.msra.mxu0 %v3344_v5 }
 0x475   : > { %1676 = vmatmul.bf16.gmra.mxu3 %v3322_v0 }
 0x476   : > { %1731 = vmatpush.bf16.xpose.msra.mxu0 %v3343_v2 }
 0x47e   : > { %1732 = vmatpush.bf16.xpose.msra.mxu0 %v3342_v12 }
 0x485   : > { %1681 = vmatmul.bf16.gmra.mxu3 %v3323_v9 }
 0x486   : > { %1733 = vmatpush.bf16.xpose.msra.mxu0 %v3341_v19 }
 0x48e   : > { %1734 = vmatpush.bf16.xpose.msra.mxu0 %v3340_v16 }
 0x495   : > { %1686 = vmatmul.bf16.gmra.mxu3 %v3324_v21  ;;  %1735 = vmatmul.bf16.vlgmr.msra.gmra.mxu0 %v4616_v55 }
 0x498   : > { %v4653_v4 = vpop.f32.mrf.mxu3 }
 0x4a0   : > { %v4656_v34 = vpop.f32.mrf.mxu3 }
 0x4a5   : > { %1691 = vmatmul.bf16.gmra.mxu3 %v3325_v10  ;;  %1740 = vmatmul.bf16.gmra.mxu0 %v4625_v13  ;;  %v3329_v13 = vld [vmem:[#allocation2 + $0x70] sm:$0xff] }
 0x4a8   : > { %v4658_v8 = vpop.f32.mrf.mxu3 }
 0x4b0   : > { %v4660_v55 = vpop.f32.mrf.mxu3 }
 0x4b5   : > { %1696 = vmatmul.bf16.gmra.mxu3 %v3326_v25  ;;  %1745 = vmatmul.bf16.gmra.mxu0 %v4634_v14 }
 0x4b8   : > { %v4662_v18 = vpop.f32.mrf.mxu3 }
 0x4c0   : > { %v4664_v39 = vpop.f32.mrf.mxu3 }
 0x4c5   : > { %1701 = vmatmul.bf16.gmra.mxu3 %v3327_v6  ;;  %1750 = vmatmul.bf16.gmra.mxu0 %v4643_v41 }
 0x4c8   : > { %v4666_v26 = vpop.f32.mrf.mxu3 }
 0x4d0   : > { %v4670_v27 = vpop.f32.mrf.mxu3 }
 0x4d5   : > { %1706 = vmatmul.bf16.gmra.mxu3 %v3328_v15  ;;  %1755 = vmatmul.bf16.gmra.mxu0 %v3320_v51 }
 0x4d8   : > { %v4685_v20 = vpop.f32.mrf.mxu3 }
 0x4e0   : > { %v4691_v3 = vpop.f32.mrf.mxu3 }
 0x4e5   : > { %1711 = vmatmul.bf16.gmra.mxu3 %v3329_v13  ;;  %1760 = vmatmul.bf16.gmra.mxu0 %v3321_v42 }
 0x4e8   : > { %v4697_v31 = vpop.f32.mrf.mxu3 }
 0x4f0   : > { %v4703_v37 = vpop.f32.mrf.mxu3 }
 0x4f5   : > { %1716 = vmatmul.bf16.gmra.mxu3 %v3330_v43  ;;  %1765 = vmatmul.bf16.gmra.mxu0 %v3322_v0 }
 0x4f8   : > { %v4713_v44 = vpop.f32.mrf.mxu3 }
 0x500   : > { %v4719_v22 = vpop.f32.mrf.mxu3 }
 0x505   : > { %1721 = vmatmul.bf16.gmra.mxu3 %v4668_v29  ;;  %1770 = vmatmul.bf16.gmra.mxu0 %v3323_v9 }
 0x508   : > { %v4725_v53 = vpop.f32.mrf.mxu3 }
 0x510   : > { %v4731_v56 = vpop.f32.mrf.mxu3 }
 0x512   : > { %v4673_v24 = vpop.f32.mrf.mxu0 }
 0x513   : > { %v1816_v11 = vmax.f32 %v4653_v4, %v4673_v24 }
 0x515   : > { %1775 = vmatmul.bf16.gmra.mxu0 %v3324_v21  ;;  %1817 = vmax.xlane.f32.xlu0 %v1816_v11 }
 0x518   : > { %v4741_v57 = vpop.f32.mrf.mxu3 }
 0x51a   : > { %v4677_v7 = vpop.f32.mrf.mxu0 }
 0x51b   : > { %v1819_v14 = vmax.f32 %v4656_v34, %v4677_v7 }
 0x51d   : > { %1820 = vmax.xlane.f32.xlu0 %v1819_v14 }
 0x520   : > { %v4747_v42 = vpop.f32.mrf.mxu3 }
 0x522   : > { %v4681_v35 = vpop.f32.mrf.mxu0 }
 0x523   : > { %v1822_v17 = vmax.f32 %v4658_v8, %v4681_v35 }
 0x525   : > { %1780 = vmatmul.bf16.gmra.mxu0 %v3325_v10  ;;  %1823 = vmax.xlane.f32.xlu1 %v1822_v17 }
 0x528   : > { %v4754_v1 = vpop.f32.mrf.mxu3 }
 0x52a   : > { %v4687_v58 = vpop.f32.mrf.mxu0 }
 0x52b   : > { %v1825_v23 = vmax.f32 %v4660_v55, %v4687_v58 }
 0x52d   : > { %1826 = vmax.xlane.f32.xlu1 %v1825_v23 }
 0x532   : > { %v4693_v28 = vpop.f32.mrf.mxu0 }
 0x533   : > { %v1828_v38 = vmax.f32 %v4662_v18, %v4693_v28 }
 0x535   : > { %1785 = vmatmul.bf16.gmra.mxu0 %v3326_v25  ;;  %1829 = vmax.xlane.f32.xlu2 %v1828_v38 }
 0x53a   : > { %v4699_v33 = vpop.f32.mrf.mxu0 }
 0x53b   : > { %v1831_v36 = vmax.f32 %v4664_v39, %v4699_v33 }
 0x53d   : > { %1832 = vmax.xlane.f32.xlu2 %v1831_v36 }
 0x542   : > { %v4705_v40 = vpop.f32.mrf.mxu0 }
 0x543   : > { %v1834_v45 = vmax.f32 %v4666_v26, %v4705_v40 }
 0x545   : > { %1790 = vmatmul.bf16.gmra.mxu0 %v3327_v6  ;;  %1835 = vmax.xlane.f32.xlu0 %v1834_v45  ;;  %v4764_v6 = vpop.f32.mrf.mxu3 }
 0x54a   : > { %v4709_v46 = vpop.f32.mrf.mxu0 }
 0x54b   : > { %v1837_v41 = vmax.f32 %v4670_v27, %v4709_v46 }
 0x54d   : > { %1838 = vmax.xlane.f32.xlu1 %v1837_v41  ;;  %v4775_v38 = vpop.f32.mrf.mxu3 }
 0x552   : > { %v4715_v47 = vpop.f32.mrf.mxu0 }
 0x553   : > { %v1840_v48 = vmax.f32 %v4685_v20, %v4715_v47 }
 0x555   : > { %1795 = vmatmul.bf16.gmra.mxu0 %v3328_v15  ;;  %1841 = vmax.xlane.f32.xlu2 %v1840_v48 }
 0x55a   : > { %v4721_v30 = vpop.f32.mrf.mxu0 }
 0x55b   : > { %v1843_v50 = vmax.f32 %v4691_v3, %v4721_v30 }
 0x55d   : > { %1844 = vmax.xlane.f32.xlu0 %v1843_v50 }
 0x562   : > { %v4727_v49 = vpop.f32.mrf.mxu0 }
 0x563   : > { %v1846_v61 = vmax.f32 %v4697_v31, %v4727_v49 }
 0x565   : > { %1800 = vmatmul.bf16.gmra.mxu0 %v3329_v13  ;;  %1847 = vmax.xlane.f32.xlu1 %v1846_v61 }
 0x56a   : > { %v4733_v51 = vpop.f32.mrf.mxu0 }
 0x56b   : > { %v1849_v52 = vmax.f32 %v4703_v37, %v4733_v51 }
 0x56d   : > { %1850 = vmax.xlane.f32.xlu2 %v1849_v52 }
 0x572   : > { %v4737_v32 = vpop.f32.mrf.mxu0 }
 0x573   : > { %v1852_v54 = vmax.f32 %v4713_v44, %v4737_v32 }
 0x575   : > { %1805 = vmatmul.bf16.gmra.mxu0 %v3330_v43  ;;  %1853 = vmax.xlane.f32.xlu0 %v1852_v54 }
 0x57a   : > { %v4743_v62 = vpop.f32.mrf.mxu0 }
 0x57b   : > { %v1855_v60 = vmax.f32 %v4719_v22, %v4743_v62 }
 0x57d   : > { %1856 = vmax.xlane.f32.xlu1 %v1855_v60 }
 0x582   : > { %v4749_v63 = vpop.f32.mrf.mxu0 }
 0x583   : > { %v1858_v59 = vmax.f32 %v4725_v53, %v4749_v63 }
 0x585   : > { %1810 = vmatmul.bf16.gmra.mxu0 %v4668_v29  ;;  %1859 = vmax.xlane.f32.xlu2 %v1858_v59 }
 0x588   : > { %v1818_v5 = vpop.xlane.xlu0 %1817 }
 0x589   : > { %v1912_v2 = vsub.f32 %v4653_v4, %v1818_v5  ;;  %v1913_v9 = vsub.f32 %v4673_v24, %v1818_v5 }
 0x58a   : > { %v4756_v0 = vpop.f32.mrf.mxu0 }
 0x58b   : > { %v1861_v12 = vmax.f32 %v4731_v56, %v4756_v0  ;;  %v1976_v19 = vmul.f32 1.442695, %v1912_v2  ;;  %v1978_v16 = vmul.f32 1.442695, %v1913_v9 }
 0x58d   : > { %1862 = vmax.xlane.f32.xlu0 %v1861_v12  ;;  %3707 = vpow2.f32 %v1976_v19 }
 0x58e   : > { %3709 = vpow2.f32 %v1978_v16 }
 0x590   : > { %v1821_v21 = vpop.xlane.xlu0 %1820 }
 0x591   : > { %v1914_v10 = vsub.f32 %v4656_v34, %v1821_v21  ;;  %v1915_v25 = vsub.f32 %v4677_v7, %v1821_v21 }
 0x592   : > { %v4766_v15 = vpop.f32.mrf.mxu0 }
 0x593   : > { %v1980_v13 = vmul.f32 1.442695, %v1914_v10  ;;  %v1982_v4 = vmul.f32 1.442695, %v1915_v25  ;;  %v1864_v43 = vmax.f32 %v4741_v57, %v4766_v15  ;;  %v3708_v24 = vpop.eup %3707 }
 0x594   : > { %v3710_v11 = vpop.eup %3709 }
 0x595   : > { %3711 = vpow2.f32 %v1980_v13  ;;  %1865 = vmax.xlane.f32.xlu1 %v1864_v43 }
 0x596   : > { %3713 = vpow2.f32 %v1982_v4 }
 0x598   : > { %v1824_v29 = vpop.xlane.xlu1 %1823 }
 0x599   : > { %v1916_v14 = vsub.f32 %v4658_v8, %v1824_v29  ;;  %v1917_v45 = vsub.f32 %v4681_v35, %v1824_v29  ;;  %v4784_v35 = vpop.f32.mrf.mxu3 }
 0x59a   : > { %v4770_v34 = vpop.f32.mrf.mxu0 }
 0x59b   : > { %v3712_v7 = vpop.eup %3711  ;;  %v1867_v17 = vmax.f32 %v4747_v42, %v4770_v34  ;;  %v1984_v48 = vmul.f32 1.442695, %v1916_v14  ;;  %v1986_v50 = vmul.f32 1.442695, %v1917_v45 }
 0x59c   : > { %v3714_v23 = vpop.eup %3713  ;;  %v2104_v36 = vpack.c.bf16 %v3712_v7, %v3708_v24 }
 0x59d   : > { %v2105_v41 = vpack.c.bf16 %v3714_v23, %v3710_v11  ;;  %1868 = vmax.xlane.f32.xlu2 %v1867_v17  ;;  %3715 = vpow2.f32 %v1984_v48 }
 0x59e   : > { %2272 = vmatmul.bf16.vlgmr.msra.gmra.mxu2 %v2104_v36  ;;  %3717 = vpow2.f32 %v1986_v50 }
 0x59f   : > { %2361 = vmatmul.bf16.vlgmr.msrb.gmra.mxu1 %v2105_v41 }
 0x5a0   : > { %v1827_v61 = vpop.xlane.xlu1 %1826 }
 0x5a1   : > { %v1918_v52 = vsub.f32 %v4660_v55, %v1827_v61  ;;  %v1919_v8 = vsub.f32 %v4687_v58, %v1827_v61  ;;  %v4792_v43 = vpop.f32.mrf.mxu3 }
 0x5a2   : > { %v4780_v54 = vpop.f32.mrf.mxu0 }
 0x5a3   : > { %v1988_v60 = vmul.f32 1.442695, %v1918_v52  ;;  %v1990_v59 = vmul.f32 1.442695, %v1919_v8  ;;  %v1870_v5 = vmax.f32 %v4754_v1, %v4780_v54  ;;  %v3716_v12 = vpop.eup %3715 }
 0x5a4   : > { %v3718_v9 = vpop.eup %3717 }
 0x5a5   : > { %3719 = vpow2.f32 %v1988_v60  ;;  %1871 = vmax.xlane.f32.xlu0 %v1870_v5 }
 0x5a6   : > { %3721 = vpow2.f32 %v1990_v59 }
 0x5a8   : > { %v1830_v2 = vpop.xlane.xlu2 %1829 }
 0x5a9   : > { %v1920_v19 = vsub.f32 %v4662_v18, %v1830_v2  ;;  %v1921_v10 = vsub.f32 %v4693_v28, %v1830_v2  ;;  %v4800_v41 = vpop.f32.mrf.mxu3 }
 0x5aa   : > { %v4786_v55 = vpop.f32.mrf.mxu0 }
 0x5ab   : > { %v3720_v58 = vpop.eup %3719  ;;  %v1873_v16 = vmax.f32 %v4764_v6, %v4786_v55  ;;  %v1992_v4 = vmul.f32 1.442695, %v1920_v19  ;;  %v1994_v29 = vmul.f32 1.442695, %v1921_v10 }
 0x5ac   : > { %v3722_v21 = vpop.eup %3721  ;;  %v2106_v25 = vpack.c.bf16 %v3720_v58, %v3716_v12 }
 0x5ad   : > { %1874 = vmax.xlane.f32.xlu1 %v1873_v16  ;;  %v2107_v13 = vpack.c.bf16 %v3722_v21, %v3718_v9  ;;  %3723 = vpow2.f32 %v1992_v4 }
 0x5ae   : > { %2277 = vmatmul.bf16.gmra.mxu2 %v2106_v25  ;;  %3725 = vpow2.f32 %v1994_v29 }
 0x5af   : > { %2366 = vmatmul.bf16.gmra.mxu1 %v2107_v13 }
 0x5b0   : > { %v1833_v24 = vpop.xlane.xlu2 %1832 }
 0x5b1   : > { %v1922_v11 = vsub.f32 %v4664_v39, %v1833_v24  ;;  %v1923_v18 = vsub.f32 %v4699_v33, %v1833_v24  ;;  %v4814_v16 = vpop.f32.mrf.mxu3 }
 0x5b2   : > { %v4796_v7 = vpop.f32.mrf.mxu0 }
 0x5b3   : > { %v1996_v14 = vmul.f32 1.442695, %v1922_v11  ;;  %v1998_v17 = vmul.f32 1.442695, %v1923_v18  ;;  %v1876_v28 = vmax.f32 %v4775_v38, %v4796_v7  ;;  %v3724_v36 = vpop.eup %3723 }
 0x5b4   : > { %v3726_v45 = vpop.eup %3725 }
 0x5b5   : > { %3727 = vpow2.f32 %v1996_v14  ;;  %1877 = vmax.xlane.f32.xlu2 %v1876_v28 }
 0x5b6   : > { %3729 = vpow2.f32 %v1998_v17 }
 0x5b8   : > { %v1836_v23 = vpop.xlane.xlu0 %1835 }
 0x5b9   : > { %v1924_v48 = vsub.f32 %v4666_v26, %v1836_v23  ;;  %v1925_v52 = vsub.f32 %v4705_v40, %v1836_v23  ;;  %v4822_v14 = vpop.f32.mrf.mxu3 }
 0x5ba   : > { %v4802_v39 = vpop.f32.mrf.mxu0 }
 0x5bb   : > { %v3728_v33 = vpop.eup %3727  ;;  %v1879_v50 = vmax.f32 %v4784_v35, %v4802_v39  ;;  %v2000_v59 = vmul.f32 1.442695, %v1924_v48  ;;  %v2002_v5 = vmul.f32 1.442695, %v1925_v52 }
 0x5bc   : > { %v3730_v61 = vpop.eup %3729  ;;  %v2108_v8 = vpack.c.bf16 %v3728_v33, %v3724_v36 }
 0x5bd   : > { %1880 = vmax.xlane.f32.xlu0 %v1879_v50  ;;  %v2109_v60 = vpack.c.bf16 %v3730_v61, %v3726_v45  ;;  %3731 = vpow2.f32 %v2000_v59 }
 0x5be   : > { %2282 = vmatmul.bf16.gmra.mxu2 %v2108_v8  ;;  %3733 = vpow2.f32 %v2002_v5 }
 0x5bf   : > { %2371 = vmatmul.bf16.gmra.mxu1 %v2109_v60 }
 0x5c0   : > { %v1839_v2 = vpop.xlane.xlu1 %1838 }
 0x5c1   : > { %v1926_v12 = vsub.f32 %v4670_v27, %v1839_v2  ;;  %v1927_v9 = vsub.f32 %v4709_v46, %v1839_v2  ;;  %v4830_v50 = vpop.f32.mrf.mxu3 }
 0x5c2   : > { %v4810_v58 = vpop.f32.mrf.mxu0 }
 0x5c3   : > { %v2004_v26 = vmul.f32 1.442695, %v1926_v12  ;;  %v2006_v19 = vmul.f32 1.442695, %v1927_v9  ;;  %v1882_v40 = vmax.f32 %v4792_v43, %v4810_v58  ;;  %v3732_v10 = vpop.eup %3731 }
 0x5c4   : > { %v3734_v25 = vpop.eup %3733 }
 0x5c5   : > { %3735 = vpow2.f32 %v2004_v26  ;;  %1883 = vmax.xlane.f32.xlu1 %v1882_v40 }
 0x5c6   : > { %3737 = vpow2.f32 %v2006_v19 }
 0x5c8   : > { %v1842_v21 = vpop.xlane.xlu2 %1841 }
 0x5c9   : > { %v1928_v13 = vsub.f32 %v4685_v20, %v1842_v21  ;;  %v1929_v24 = vsub.f32 %v4715_v47, %v1842_v21 }
 0x5ca   : > { %v4816_v27 = vpop.f32.mrf.mxu0 }
 0x5cb   : > { %v3736_v46 = vpop.eup %3735  ;;  %v1885_v4 = vmax.f32 %v4800_v41, %v4816_v27  ;;  %v2008_v17 = vmul.f32 1.442695, %v1928_v13  ;;  %v2010_v28 = vmul.f32 1.442695, %v1929_v24 }
 0x5cc   : > { %v3738_v29 = vpop.eup %3737  ;;  %v2110_v11 = vpack.c.bf16 %v3736_v46, %v3732_v10 }
 0x5cd   : > { %1886 = vmax.xlane.f32.xlu2 %v1885_v4  ;;  %v2111_v18 = vpack.c.bf16 %v3738_v29, %v3734_v25  ;;  %3739 = vpow2.f32 %v2008_v17  ;;  %v4840_v25 = vpop.f32.mrf.mxu3 }
 0x5ce   : > { %2287 = vmatmul.bf16.gmra.mxu2 %v2110_v11  ;;  %3741 = vpow2.f32 %v2010_v28 }
 0x5cf   : > { %2376 = vmatmul.bf16.gmra.mxu1 %v2111_v18 }
 0x5d0   : > { %v1845_v23 = vpop.xlane.xlu0 %1844 }
 0x5d1   : > { %v1930_v36 = vsub.f32 %v4691_v3, %v1845_v23  ;;  %v1931_v20 = vsub.f32 %v4721_v30, %v1845_v23 }
 0x5d2   : > { %v4826_v45 = vpop.f32.mrf.mxu0 }
 0x5d3   : > { %v2012_v33 = vmul.f32 1.442695, %v1930_v36  ;;  %v2014_v48 = vmul.f32 1.442695, %v1931_v20  ;;  %v1888_v47 = vmax.f32 %v4814_v16, %v4826_v45  ;;  %v3740_v52 = vpop.eup %3739 }
 0x5d4   : > { %v3742_v8 = vpop.eup %3741 }
 0x5d5   : > { %3743 = vpow2.f32 %v2012_v33  ;;  %1889 = vmax.xlane.f32.xlu0 %v1888_v47  ;;  %v4851_v28 = vpop.f32.mrf.mxu3 }
 0x5d6   : > { %3745 = vpow2.f32 %v2014_v48 }
 0x5d8   : > { %v1848_v61 = vpop.xlane.xlu1 %1847 }
 0x5d9   : > { %v1932_v60 = vsub.f32 %v4697_v31, %v1848_v61  ;;  %v1933_v2 = vsub.f32 %v4727_v49, %v1848_v61 }
 0x5da   : > { %v4832_v3 = vpop.f32.mrf.mxu0 }
 0x5db   : > { %v3744_v30 = vpop.eup %3743  ;;  %v1891_v59 = vmax.f32 %v4822_v14, %v4832_v3  ;;  %v2016_v26 = vmul.f32 1.442695, %v1932_v60  ;;  %v2018_v19 = vmul.f32 1.442695, %v1933_v2 }
 0x5dc   : > { %v3746_v5 = vpop.eup %3745  ;;  %v2112_v12 = vpack.c.bf16 %v3744_v30, %v3740_v52 }
 0x5dd   : > { %1892 = vmax.xlane.f32.xlu1 %v1891_v59  ;;  %v2113_v9 = vpack.c.bf16 %v3746_v5, %v3742_v8  ;;  %3747 = vpow2.f32 %v2016_v26  ;;  %v4860_v60 = vpop.f32.mrf.mxu3 }
 0x5de   : > { %2292 = vmatmul.bf16.gmra.mxu2 %v2112_v12  ;;  %3749 = vpow2.f32 %v2018_v19 }
 0x5df   : > { %2381 = vmatmul.bf16.gmra.mxu1 %v2113_v9 }
 0x5e0   : > { %v1851_v40 = vpop.xlane.xlu2 %1850 }
 0x5e1   : > { %v1934_v21 = vsub.f32 %v4703_v37, %v1851_v40  ;;  %v1935_v10 = vsub.f32 %v4733_v51, %v1851_v40 }
 0x5e2   : > { %v4842_v31 = vpop.f32.mrf.mxu0 }
 0x5e3   : > { %v2020_v46 = vmul.f32 1.442695, %v1934_v21  ;;  %v2022_v13 = vmul.f32 1.442695, %v1935_v10  ;;  %v1894_v49 = vmax.f32 %v4830_v50, %v4842_v31  ;;  %v3748_v29 = vpop.eup %3747 }
 0x5e4   : > { %v3750_v24 = vpop.eup %3749 }
 0x5e5   : > { %3751 = vpow2.f32 %v2020_v46  ;;  %1895 = vmax.xlane.f32.xlu2 %v1894_v49  ;;  %v4868_v46 = vpop.f32.mrf.mxu3 }
 0x5e6   : > { %3753 = vpow2.f32 %v2022_v13 }
 0x5e8   : > { %v1854_v4 = vpop.xlane.xlu0 %1853 }
 0x5e9   : > { %v1936_v11 = vsub.f32 %v4713_v44, %v1854_v4  ;;  %v1937_v23 = vsub.f32 %v4737_v32, %v1854_v4 }
 0x5ea   : > { %v4846_v37 = vpop.f32.mrf.mxu0 }
 0x5eb   : > { %v3752_v51 = vpop.eup %3751  ;;  %v1897_v18 = vmax.f32 %v4840_v25, %v4846_v37  ;;  %v2024_v33 = vmul.f32 1.442695, %v1936_v11  ;;  %v2026_v48 = vmul.f32 1.442695, %v1937_v23 }
 0x5ec   : > { %v3754_v17 = vpop.eup %3753  ;;  %v2114_v36 = vpack.c.bf16 %v3752_v51, %v3748_v29 }
 0x5ed   : > { %1898 = vmax.xlane.f32.xlu0 %v1897_v18  ;;  %v2115_v20 = vpack.c.bf16 %v3754_v17, %v3750_v24  ;;  %3755 = vpow2.f32 %v2024_v33  ;;  %v4876_v23 = vpop.f32.mrf.mxu3 }
 0x5ee   : > { %2297 = vmatmul.bf16.gmra.mxu2 %v2114_v36  ;;  %3757 = vpow2.f32 %v2026_v48 }
 0x5ef   : > { %2386 = vmatmul.bf16.gmra.mxu1 %v2115_v20 }
 0x5f0   : > { %v1857_v47 = vpop.xlane.xlu1 %1856 }
 0x5f1   : > { %v1938_v61 = vsub.f32 %v4719_v22, %v1857_v47  ;;  %v1939_v44 = vsub.f32 %v4743_v62, %v1857_v47 }
 0x5f2   : > { %v4856_v52 = vpop.f32.mrf.mxu0 }
 0x5f3   : > { %v2028_v8 = vmul.f32 1.442695, %v1938_v61  ;;  %v2030_v30 = vmul.f32 1.442695, %v1939_v44  ;;  %v1900_v32 = vmax.f32 %v4851_v28, %v4856_v52  ;;  %v3756_v5 = vpop.eup %3755 }
 0x5f4   : > { %v3758_v2 = vpop.eup %3757 }
 0x5f5   : > { %3759 = vpow2.f32 %v2028_v8  ;;  %1901 = vmax.xlane.f32.xlu1 %v1900_v32 }
 0x5f6   : > { %3761 = vpow2.f32 %v2030_v30 }
 0x5f8   : > { %v1860_v59 = vpop.xlane.xlu2 %1859 }
 0x5f9   : > { %v1940_v12 = vsub.f32 %v4725_v53, %v1860_v59  ;;  %v1941_v19 = vsub.f32 %v4749_v63, %v1860_v59 }
 0x5fa   : > { %v4862_v22 = vpop.f32.mrf.mxu0 }
 0x5fb   : > { %v3760_v62 = vpop.eup %3759  ;;  %v1903_v9 = vmax.f32 %v4860_v60, %v4862_v22  ;;  %v2032_v10 = vmul.f32 1.442695, %v1940_v12  ;;  %v2034_v13 = vmul.f32 1.442695, %v1941_v19 }
 0x5fc   : > { %v3762_v26 = vpop.eup %3761  ;;  %v2116_v40 = vpack.c.bf16 %v3760_v62, %v3756_v5 }
 0x5fd   : > { %1904 = vmax.xlane.f32.xlu2 %v1903_v9  ;;  %v2117_v21 = vpack.c.bf16 %v3762_v26, %v3758_v2  ;;  %3763 = vpow2.f32 %v2032_v10 }
 0x5fe   : > { %2302 = vmatmul.bf16.gmra.mxu2 %v2116_v40  ;;  %3765 = vpow2.f32 %v2034_v13 }
 0x5ff   : > { %2391 = vmatmul.bf16.gmra.mxu1 %v2117_v21 }
 0x600   : > { %v1863_v49 = vpop.xlane.xlu0 %1862 }
 0x601   : > { %v1942_v4 = vsub.f32 %v4731_v56, %v1863_v49  ;;  %v1943_v53 = vsub.f32 %v4756_v0, %v1863_v49 }
 0x602   : > { %v4872_v29 = vpop.f32.mrf.mxu0 }
 0x603   : > { %v2036_v24 = vmul.f32 1.442695, %v1942_v4  ;;  %v2038_v51 = vmul.f32 1.442695, %v1943_v53  ;;  %v1906_v63 = vmax.f32 %v4868_v46, %v4872_v29  ;;  %v3764_v18 = vpop.eup %3763 }
 0x604   : > { %v3766_v17 = vpop.eup %3765 }
 0x605   : > { %3767 = vpow2.f32 %v2036_v24  ;;  %1907 = vmax.xlane.f32.xlu2 %v1906_v63 }
 0x606   : > { %3769 = vpow2.f32 %v2038_v51 }
 0x608   : > { %v1866_v11 = vpop.xlane.xlu1 %1865 }
 0x609   : > { %v1944_v36 = vsub.f32 %v4741_v57, %v1866_v11  ;;  %v1945_v48 = vsub.f32 %v4766_v15, %v1866_v11 }
 0x60a   : > { %v4878_v56 = vpop.f32.mrf.mxu0 }
 0x60b   : > { %v3768_v0 = vpop.eup %3767  ;;  %v1909_v20 = vmax.f32 %v4876_v23, %v4878_v56  ;;  %v2040_v44 = vmul.f32 1.442695, %v1944_v36  ;;  %v2042_v8 = vmul.f32 1.442695, %v1945_v48 }
 0x60c   : > { %v3770_v33 = vpop.eup %3769  ;;  %v2118_v47 = vpack.c.bf16 %v3768_v0, %v3764_v18 }
 0x60d   : > { %1910 = vmax.xlane.f32.xlu2 %v1909_v20  ;;  %v2119_v61 = vpack.c.bf16 %v3770_v33, %v3766_v17  ;;  %3771 = vpow2.f32 %v2040_v44  ;;  %v3924_v44 = vmov 32  }
 0x60e   : > { %2307 = vmatmul.bf16.gmra.mxu2 %v2118_v47  ;;  %3773 = vpow2.f32 %v2042_v8  ;;  %3699 = vset.pattern.permute.xlu0 %v3924_v44 }
 0x60f   : > { %2396 = vmatmul.bf16.gmra.mxu1 %v2119_v61  ;;  %3700 = vset.pattern.permute.xlu1 %v3924_v44 }
 0x610   : > { %v1869_v30 = vpop.xlane.xlu2 %1868  ;;  %3701 = vset.pattern.permute.xlu2 %v3924_v44 }
 0x611   : > { %v1946_v32 = vsub.f32 %v4747_v42, %v1869_v30  ;;  %v1947_v59 = vsub.f32 %v4770_v34, %v1869_v30 }
 0x613   : > { %v2044_v57 = vmul.f32 1.442695, %v1946_v32  ;;  %v2046_v5 = vmul.f32 1.442695, %v1947_v59  ;;  %v3772_v15 = vpop.eup %3771 }
 0x614   : > { %v3774_v62 = vpop.eup %3773 }
 0x615   : > { %3775 = vpow2.f32 %v2044_v57 }
 0x616   : > { %3777 = vpow2.f32 %v2046_v5 }
 0x618   : > { %v1872_v2 = vpop.xlane.xlu0 %1871 }
 0x619   : > { %v1948_v9 = vsub.f32 %v4754_v1, %v1872_v2  ;;  %v1949_v19 = vsub.f32 %v4780_v54, %v1872_v2 }
 0x61b   : > { %v3776_v12 = vpop.eup %3775  ;;  %v2048_v34 = vmul.f32 1.442695, %v1948_v9  ;;  %v2050_v10 = vmul.f32 1.442695, %v1949_v19 }
 0x61c   : > { %v3778_v26 = vpop.eup %3777  ;;  %v2362_v40 = vpop.f32.mrf.mxu1  ;;  %v2120_v21 = vpack.c.bf16 %v3776_v12, %v3772_v15 }
 0x61d   : > { %v2121_v42 = vpack.c.bf16 %v3778_v26, %v3774_v62  ;;  %3779 = vpow2.f32 %v2048_v34 }
 0x61e   : > { %2312 = vmatmul.bf16.gmra.mxu2 %v2120_v21  ;;  %3781 = vpow2.f32 %v2050_v10 }
 0x61f   : > { %2401 = vmatmul.bf16.gmra.mxu1 %v2121_v42 }
 0x620   : > { %v1875_v13 = vpop.xlane.xlu1 %1874 }
 0x621   : > { %v1950_v49 = vsub.f32 %v4764_v6, %v1875_v13  ;;  %v1951_v4 = vsub.f32 %v4786_v55, %v1875_v13  ;;  %v2273_v53 = vpop.f32.mrf.mxu2 }
 0x622   : > { %v4890_v24 = vadd.f32 %v2362_v40, %v2273_v53 }
 0x623   : > { %v2052_v1 = vmul.f32 1.442695, %v1950_v49  ;;  %v2054_v51 = vmul.f32 1.442695, %v1951_v4  ;;  %v3780_v11 = vpop.eup %3779 }
 0x624   : > { %v2364_v54 = vpop.f32.mrf.mxu1  ;;  %v3782_v17 = vpop.eup %3781 }
 0x625   : > { %3783 = vpow2.f32 %v2052_v1 }
 0x626   : > { %3785 = vpow2.f32 %v2054_v51 }
 0x628   : > { %v1878_v63 = vpop.xlane.xlu2 %1877 }
 0x629   : > { %v2275_v18 = vpop.f32.mrf.mxu2  ;;  %v1952_v6 = vsub.f32 %v4775_v38, %v1878_v63  ;;  %v1953_v20 = vsub.f32 %v4796_v7, %v1878_v63 }
 0x62a   : > { %v4892_v0 = vadd.f32 %v2364_v54, %v2275_v18 }
 0x62b   : > { %v3784_v36 = vpop.eup %3783  ;;  %v2056_v61 = vmul.f32 1.442695, %v1952_v6  ;;  %v2058_v8 = vmul.f32 1.442695, %v1953_v20 }
 0x62c   : > { %v3786_v55 = vpop.eup %3785  ;;  %v2367_v33 = vpop.f32.mrf.mxu1  ;;  %v2122_v48 = vpack.c.bf16 %v3784_v36, %v3780_v11 }
 0x62d   : > { %v2123_v47 = vpack.c.bf16 %v3786_v55, %v3782_v17  ;;  %3787 = vpow2.f32 %v2056_v61 }
 0x62e   : > { %2317 = vmatmul.bf16.gmra.mxu2 %v2122_v48  ;;  %3789 = vpow2.f32 %v2058_v8 }
 0x62f   : > { %2406 = vmatmul.bf16.gmra.mxu1 %v2123_v47 }
 0x630   : > { %v1881_v30 = vpop.xlane.xlu0 %1880 }
 0x631   : > { %v1954_v32 = vsub.f32 %v4784_v35, %v1881_v30  ;;  %v1955_v59 = vsub.f32 %v4802_v39, %v1881_v30  ;;  %v2278_v38 = vpop.f32.mrf.mxu2 }
 0x632   : > { %v4898_v57 = vadd.f32 %v2367_v33, %v2278_v38 }
 0x633   : > { %v2060_v7 = vmul.f32 1.442695, %v1954_v32  ;;  %v2062_v5 = vmul.f32 1.442695, %v1955_v59  ;;  %v3788_v62 = vpop.eup %3787 }
 0x634   : > { %v2369_v2 = vpop.f32.mrf.mxu1  ;;  %v3790_v9 = vpop.eup %3789 }
 0x635   : > { %3791 = vpow2.f32 %v2060_v7 }
 0x636   : > { %3793 = vpow2.f32 %v2062_v5 }
 0x638   : > { %v1884_v15 = vpop.xlane.xlu1 %1883 }
 0x639   : > { %v2280_v12 = vpop.f32.mrf.mxu2  ;;  %v1956_v26 = vsub.f32 %v4792_v43, %v1884_v15  ;;  %v1957_v39 = vsub.f32 %v4810_v58, %v1884_v15 }
 0x63a   : > { %v4901_v19 = vadd.f32 %v2369_v2, %v2280_v12 }
 0x63b   : > { %v3792_v35 = vpop.eup %3791  ;;  %v2064_v10 = vmul.f32 1.442695, %v1956_v26  ;;  %v2066_v13 = vmul.f32 1.442695, %v1957_v39 }
 0x63c   : > { %v3794_v40 = vpop.eup %3793  ;;  %v2372_v21 = vpop.f32.mrf.mxu1  ;;  %v2124_v42 = vpack.c.bf16 %v3792_v35, %v3788_v62 }
 0x63d   : > { %v2125_v34 = vpack.c.bf16 %v3794_v40, %v3790_v9  ;;  %3795 = vpow2.f32 %v2064_v10 }
 0x63e   : > { %2322 = vmatmul.bf16.gmra.mxu2 %v2124_v42  ;;  %3797 = vpow2.f32 %v2066_v13 }
 0x63f   : > { %2411 = vmatmul.bf16.gmra.mxu1 %v2125_v34 }
 0x640   : > { %v1887_v49 = vpop.xlane.xlu2 %1886 }
 0x641   : > { %v1958_v4 = vsub.f32 %v4800_v41, %v1887_v49  ;;  %v1959_v53 = vsub.f32 %v4816_v27, %v1887_v49  ;;  %v2283_v1 = vpop.f32.mrf.mxu2 }
 0x642   : > { %v4906_v43 = vadd.f32 %v2372_v21, %v2283_v1 }
 0x643   : > { %v2068_v51 = vmul.f32 1.442695, %v1958_v4  ;;  %v2070_v58 = vmul.f32 1.442695, %v1959_v53  ;;  %v3796_v63 = vpop.eup %3795 }
 0x644   : > { %3799 = vrcp.f32 %v4906_v43  ;;  %v2374_v54 = vpop.f32.mrf.mxu1  ;;  %v3798_v18 = vpop.eup %3797 }
 0x645   : > { %3801 = vpow2.f32 %v2068_v51 }
 0x646   : > { %3803 = vpow2.f32 %v2070_v58 }
 0x648   : > { %v1890_v11 = vpop.xlane.xlu0 %1889 }
 0x649   : > { %v2285_v17 = vpop.f32.mrf.mxu2  ;;  %v1960_v41 = vsub.f32 %v4814_v16, %v1890_v11  ;;  %v1961_v55 = vsub.f32 %v4826_v45, %v1890_v11 }
 0x64a   : > { %v3800_v36 = vpop.eup %3799  ;;  %v4910_v27 = vadd.f32 %v2374_v54, %v2285_v17 }
 0x64b   : > { %v3802_v6 = vpop.eup %3801  ;;  %2496 = vperm.xlu0 %3699, %v3800_v36   ;;  %v2072_v61 = vmul.f32 1.442695, %v1960_v41  ;;  %v2074_v44 = vmul.f32 1.442695, %v1961_v55 }
 0x64c   : > { %v3804_v20 = vpop.eup %3803  ;;  %3805 = vrcp.f32 %v4910_v27  ;;  %v2377_v33 = vpop.f32.mrf.mxu1  ;;  %v2126_v48 = vpack.c.bf16 %v3802_v6, %v3796_v63 }
 0x64d   : > { %v2127_v47 = vpack.c.bf16 %v3804_v20, %v3798_v18  ;;  %3807 = vpow2.f32 %v2072_v61 }
 0x64e   : > { %2327 = vmatmul.bf16.gmra.mxu2 %v2126_v48  ;;  %3809 = vpow2.f32 %v2074_v44 }
 0x64f   : > { %2416 = vmatmul.bf16.gmra.mxu1 %v2127_v47 }
 0x650   : > { %v1893_v8 = vpop.xlane.xlu1 %1892 }
 0x651   : > { %v1962_v30 = vsub.f32 %v4822_v14, %v1893_v8  ;;  %v1963_v16 = vsub.f32 %v4832_v3, %v1893_v8  ;;  %v2288_v32 = vpop.f32.mrf.mxu2 }
 0x652   : > { %v3806_v59 = vpop.eup %3805  ;;  %v4916_v45 = vadd.f32 %v2377_v33, %v2288_v32  ;;  %v3371_v33 = vld [vmem:[%s5221_s6 + $0x38] sm:$0xff] }
 0x653   : > { %v2076_v38 = vmul.f32 1.442695, %v1962_v30  ;;  %v2078_v7 = vmul.f32 1.442695, %v1963_v16  ;;  %2501 = vperm.xlu1 %3700, %v3806_v59   ;;  %v3808_v2 = vpop.eup %3807  ;;  %3658 = vmatpush.bf16.msrb.mxu3 %v3371_v33 }
 0x654   : > { %3811 = vrcp.f32 %v4916_v45  ;;  %v2379_v5 = vpop.f32.mrf.mxu1  ;;  %v3810_v62 = vpop.eup %3809  ;;  %3657 = vmatpush.bf16.msrb.mxu2 %v3371_v33  ;;  %2750 = vmatpush.bf16.msrb.mxu0 %v3371_v33 }
 0x655   : > { %3813 = vpow2.f32 %v2076_v38 }
 0x656   : > { %3815 = vpow2.f32 %v2078_v7 }
 0x658   : > { %v1896_v15 = vpop.xlane.xlu2 %1895 }
 0x659   : > { %v2290_v14 = vpop.f32.mrf.mxu2  ;;  %v1964_v3 = vsub.f32 %v4830_v50, %v1896_v15  ;;  %v1965_v35 = vsub.f32 %v4842_v31, %v1896_v15 }
 0x65a   : > { %v3812_v12 = vpop.eup %3811  ;;  %v4920_v9 = vadd.f32 %v2379_v5, %v2290_v14 }
 0x65b   : > { %v3814_v26 = vpop.eup %3813  ;;  %2506 = vperm.xlu2 %3701, %v3812_v12   ;;  %v2080_v34 = vmul.f32 1.442695, %v1964_v3  ;;  %v2082_v10 = vmul.f32 1.442695, %v1965_v35 }
 0x65c   : > { %v3816_v39 = vpop.eup %3815  ;;  %3817 = vrcp.f32 %v4920_v9  ;;  %v2382_v40 = vpop.f32.mrf.mxu1  ;;  %v2128_v21 = vpack.c.bf16 %v3814_v26, %v3808_v2 }
 0x65d   : > { %v2129_v42 = vpack.c.bf16 %v3816_v39, %v3810_v62  ;;  %3819 = vpow2.f32 %v2080_v34 }
 0x65e   : > { %2332 = vmatmul.bf16.gmra.mxu2 %v2128_v21  ;;  %3821 = vpow2.f32 %v2082_v10 }
 0x65f   : > { %2421 = vmatmul.bf16.gmra.mxu1 %v2129_v42 }
 0x660   : > { %v1899_v13 = vpop.xlane.xlu0 %1898 }
 0x661   : > { %v1966_v49 = vsub.f32 %v4840_v25, %v1899_v13  ;;  %v1967_v50 = vsub.f32 %v4846_v37, %v1899_v13  ;;  %v2293_v4 = vpop.f32.mrf.mxu2 }
 0x662   : > { %v3818_v53 = vpop.eup %3817  ;;  %v4926_v31 = vadd.f32 %v2382_v40, %v2293_v4 }
 0x663   : > { %v2084_v1 = vmul.f32 1.442695, %v1966_v49  ;;  %v2086_v51 = vmul.f32 1.442695, %v1967_v50  ;;  %2511 = vperm.xlu1 %3700, %v3818_v53   ;;  %v3820_v54 = vpop.eup %3819 }
 0x664   : > { %3823 = vrcp.f32 %v4926_v31  ;;  %v2384_v58 = vpop.f32.mrf.mxu1  ;;  %v3822_v11 = vpop.eup %3821 }
 0x665   : > { %3825 = vpow2.f32 %v2084_v1 }
 0x666   : > { %3827 = vpow2.f32 %v2086_v51 }
 0x668   : > { %v1902_v63 = vpop.xlane.xlu1 %1901 }
 0x669   : > { %v2295_v25 = vpop.f32.mrf.mxu2  ;;  %v1968_v37 = vsub.f32 %v4851_v28, %v1902_v63  ;;  %v1969_v41 = vsub.f32 %v4856_v52, %v1902_v63 }
 0x66a   : > { %v3824_v18 = vpop.eup %3823  ;;  %v4930_v17 = vadd.f32 %v2384_v58, %v2295_v25  ;;  %v3370_v25 = vld [vmem:[%s5221_s6 + $0x30] sm:$0xff] }
 0x66b   : > { %v3826_v36 = vpop.eup %3825  ;;  %2516 = vperm.xlu1 %3700, %v3824_v18   ;;  %v2088_v47 = vmul.f32 1.442695, %v1968_v37  ;;  %v2090_v28 = vmul.f32 1.442695, %v1969_v41  ;;  %3660 = vmatpush.bf16.msrb.mxu3 %v3370_v25 }
 0x66c   : > { %v3828_v6 = vpop.eup %3827  ;;  %3829 = vrcp.f32 %v4930_v17  ;;  %v2387_v55 = vpop.f32.mrf.mxu1  ;;  %v2130_v20 = vpack.c.bf16 %v3826_v36, %v3820_v54  ;;  %3659 = vmatpush.bf16.msrb.mxu2 %v3370_v25  ;;  %2751 = vmatpush.bf16.msrb.mxu0 %v3370_v25 }
 0x66d   : > { %v2131_v48 = vpack.c.bf16 %v3828_v6, %v3822_v11  ;;  %3831 = vpow2.f32 %v2088_v47 }
 0x66e   : > { %2337 = vmatmul.bf16.gmra.mxu2 %v2130_v20  ;;  %3833 = vpow2.f32 %v2090_v28  ;;  %v3368_v20 = vld [vmem:[%s5221_s6 + $0x20] sm:$0xff] }
 0x66f   : > { %2426 = vmatmul.bf16.gmra.mxu1 %v2131_v48 }
 0x670   : > { %v1905_v61 = vpop.xlane.xlu2 %1904 }
 0x671   : > { %v1970_v52 = vsub.f32 %v4860_v60, %v1905_v61  ;;  %v1971_v44 = vsub.f32 %v4862_v22, %v1905_v61  ;;  %v2298_v8 = vpop.f32.mrf.mxu2  ;;  %v3367_v61 = vld [vmem:[%s5221_s6 + $0x18] sm:$0xff] }
 0x672   : > { %v3830_v30 = vpop.eup %3829  ;;  %v4939_v16 = vadd.f32 %v2387_v55, %v2298_v8  ;;  %v3369_v55 = vld [vmem:[%s5221_s6 + $0x28] sm:$0xff] }
 0x673   : > { %v2092_v32 = vmul.f32 1.442695, %v1970_v52  ;;  %v2094_v59 = vmul.f32 1.442695, %v1971_v44  ;;  %2521 = vperm.xlu0 %3699, %v3830_v30   ;;  %v3832_v7 = vpop.eup %3831  ;;  %3662 = vmatpush.bf16.msrb.mxu3 %v3369_v55  ;;  %v3366_v52 = vld [vmem:[%s5221_s6 + $0x10] sm:$0xff] }
 0x674   : > { %3835 = vrcp.f32 %v4939_v16  ;;  %v2389_v38 = vpop.f32.mrf.mxu1  ;;  %v3834_v2 = vpop.eup %3833  ;;  %3661 = vmatpush.bf16.msrb.mxu2 %v3369_v55  ;;  %2752 = vmatpush.bf16.msrb.mxu0 %v3369_v55 }
 0x675   : > { %3837 = vpow2.f32 %v2092_v32 }
 0x676   : > { %3839 = vpow2.f32 %v2094_v59  ;;  %v3365_v59 = vld [vmem:[%s5221_s6 + $0x8] sm:$0xff] }
 0x677   : > { %3664 = vmatpush.bf16.msrb.mxu3 %v3368_v20 }
 0x678   : > { %v1908_v5 = vpop.xlane.xlu2 %1907  ;;  %3663 = vmatpush.bf16.msrb.mxu2 %v3368_v20  ;;  %2753 = vmatpush.bf16.msrb.mxu0 %v3368_v20 }
 0x679   : > { %v2300_v60 = vpop.f32.mrf.mxu2  ;;  %v1972_v22 = vsub.f32 %v4868_v46, %v1908_v5  ;;  %v1973_v12 = vsub.f32 %v4872_v29, %v1908_v5 }
 0x67a   : > { %v3836_v15 = vpop.eup %3835  ;;  %v4943_v62 = vadd.f32 %v2389_v38, %v2300_v60  ;;  %v3364_v38 = vld [vmem:[%s5221_s6] sm:$0xff] }
 0x67b   : > { %v3838_v14 = vpop.eup %3837  ;;  %2526 = vperm.xlu2 %3701, %v3836_v15   ;;  %v2096_v40 = vmul.f32 1.442695, %v1972_v22  ;;  %v2098_v21 = vmul.f32 1.442695, %v1973_v12  ;;  %3666 = vmatpush.bf16.msrb.mxu3 %v3367_v61 }
 0x67c   : > { %v3840_v3 = vpop.eup %3839  ;;  %3841 = vrcp.f32 %v4943_v62  ;;  %v2392_v26 = vpop.f32.mrf.mxu1  ;;  %v2132_v35 = vpack.c.bf16 %v3838_v14, %v3832_v7  ;;  %3665 = vmatpush.bf16.msrb.mxu2 %v3367_v61  ;;  %2754 = vmatpush.bf16.msrb.mxu0 %v3367_v61 }
 0x67d   : > { %v2133_v39 = vpack.c.bf16 %v3840_v3, %v3834_v2  ;;  %3843 = vpow2.f32 %v2096_v40 }
 0x67e   : > { %2342 = vmatmul.bf16.gmra.mxu2 %v2132_v35  ;;  %3845 = vpow2.f32 %v2098_v21 }
 0x67f   : > { %2431 = vmatmul.bf16.gmra.mxu1 %v2133_v39  ;;  %3668 = vmatpush.bf16.msrb.mxu3 %v3366_v52 }
 0x680   : > { %v1911_v42 = vpop.xlane.xlu2 %1910  ;;  %3667 = vmatpush.bf16.msrb.mxu2 %v3366_v52  ;;  %2755 = vmatpush.bf16.msrb.mxu0 %v3366_v52 }
 0x681   : > { %v1974_v34 = vsub.f32 %v4876_v23, %v1911_v42  ;;  %v1975_v46 = vsub.f32 %v4878_v56, %v1911_v42  ;;  %v2303_v10 = vpop.f32.mrf.mxu2 }
 0x682   : > { %v3842_v13 = vpop.eup %3841  ;;  %v4949_v29 = vadd.f32 %v2392_v26, %v2303_v10 }
 0x683   : > { %v2100_v49 = vmul.f32 1.442695, %v1974_v34  ;;  %v2102_v50 = vmul.f32 1.442695, %v1975_v46  ;;  %2531 = vperm.xlu1 %3700, %v3842_v13   ;;  %v3844_v53 = vpop.eup %3843  ;;  %3670 = vmatpush.bf16.msrb.mxu3 %v3365_v59 }
 0x684   : > { %3847 = vrcp.f32 %v4949_v29  ;;  %v2394_v4 = vpop.f32.mrf.mxu1  ;;  %v3846_v1 = vpop.eup %3845  ;;  %3669 = vmatpush.bf16.msrb.mxu2 %v3365_v59  ;;  %2756 = vmatpush.bf16.msrb.mxu0 %v3365_v59 }
 0x685   : > { %3849 = vpow2.f32 %v2100_v49 }
 0x686   : > { %3851 = vpow2.f32 %v2102_v50 }
 0x687   : > { %3672 = vmatpush.bf16.msrb.mxu3 %v3364_v38 }
 0x688   : > { %3671 = vmatpush.bf16.msrb.mxu2 %v3364_v38  ;;  %2757 = vmatpush.bf16.msrb.mxu0 %v3364_v38 }
 0x689   : > { %v2305_v51 = vpop.f32.mrf.mxu2 }
 0x68a   : > { %v3848_v23 = vpop.eup %3847  ;;  %v4952_v58 = vadd.f32 %v2394_v4, %v2305_v51 }
 0x68b   : > { %v3850_v56 = vpop.eup %3849  ;;  %2536 = vperm.xlu0 %3699, %v3848_v23  }
 0x68c   : > { %v3852_v54 = vpop.eup %3851  ;;  %3853 = vrcp.f32 %v4952_v58  ;;  %v2397_v63 = vpop.f32.mrf.mxu1  ;;  %v2134_v11 = vpack.c.bf16 %v3850_v56, %v3844_v53 }
 0x68d   : > { %v2135_v18 = vpack.c.bf16 %v3852_v54, %v3846_v1 }
 0x68e   : > { %2347 = vmatmul.bf16.gmra.mxu2 %v2134_v11 }
 0x68f   : > { %2436 = vmatmul.bf16.gmra.mxu1 %v2135_v18 }
 0x691   : > { %v2308_v37 = vpop.f32.mrf.mxu2 }
 0x692   : > { %v3854_v36 = vpop.eup %3853  ;;  %v4958_v41 = vadd.f32 %v2397_v63, %v2308_v37 }
 0x693   : > { %2541 = vperm.xlu2 %3701, %v3854_v36  }
 0x694   : > { %3855 = vrcp.f32 %v4958_v41  ;;  %v2399_v6 = vpop.f32.mrf.mxu1 }
 0x699   : > { %v2310_v33 = vpop.f32.mrf.mxu2 }
 0x69a   : > { %v3856_v48 = vpop.eup %3855  ;;  %v4967_v47 = vadd.f32 %v2399_v6, %v2310_v33 }
 0x69b   : > { %2546 = vperm.xlu1 %3700, %v3856_v48  }
 0x69c   : > { %3857 = vrcp.f32 %v4967_v47  ;;  %v2402_v28 = vpop.f32.mrf.mxu1 }
 0x6a1   : > { %v2313_v44 = vpop.f32.mrf.mxu2 }
 0x6a2   : > { %v3858_v8 = vpop.eup %3857  ;;  %v4976_v30 = vadd.f32 %v2402_v28, %v2313_v44 }
 0x6a3   : > { %2551 = vperm.xlu0 %3699, %v3858_v8  }
 0x6a4   : > { %3859 = vrcp.f32 %v4976_v30  ;;  %v2404_v32 = vpop.f32.mrf.mxu1 }
 0x6a9   : > { %v2315_v7 = vpop.f32.mrf.mxu2 }
 0x6aa   : > { %v3860_v5 = vpop.eup %3859  ;;  %v4985_v2 = vadd.f32 %v2404_v32, %v2315_v7 }
 0x6ab   : > { %2556 = vperm.xlu2 %3701, %v3860_v5  }
 0x6ac   : > { %3861 = vrcp.f32 %v4985_v2  ;;  %v2407_v60 = vpop.f32.mrf.mxu1 }
 0x6b1   : > { %v2318_v15 = vpop.f32.mrf.mxu2 }
 0x6b2   : > { %v3862_v22 = vpop.eup %3861  ;;  %v4988_v14 = vadd.f32 %v2407_v60, %v2318_v15 }
 0x6b3   : > { %2561 = vperm.xlu1 %3700, %v3862_v22  }
 0x6b4   : > { %3863 = vrcp.f32 %v4988_v14  ;;  %v2409_v12 = vpop.f32.mrf.mxu1 }
 0x6b5   : > { %v2507_v63 = vpop.permute.xlu2 %2506 }
 0x6b6   : > { %v2640_v11 = vmul.f32 %v2507_v63, %v4916_v45 }
 0x6b9   : > { %v2320_v3 = vpop.f32.mrf.mxu2 }
 0x6ba   : > { %v3864_v26 = vpop.eup %3863  ;;  %v4991_v35 = vadd.f32 %v2409_v12, %v2320_v3 }
 0x6bb   : > { %2566 = vperm.xlu0 %3699, %v3864_v26  }
 0x6bc   : > { %3865 = vrcp.f32 %v4991_v35  ;;  %v2412_v39 = vpop.f32.mrf.mxu1 }
 0x6bd   : > { %v2497_v34 = vpop.permute.xlu0 %2496 }
 0x6be   : > { %v2638_v13 = vmul.f32 %v2497_v34, %v4906_v43 }
 0x6c1   : > { %v2323_v40 = vpop.f32.mrf.mxu2 }
 0x6c2   : > { %v3866_v21 = vpop.eup %3865  ;;  %v4994_v42 = vadd.f32 %v2412_v39, %v2323_v40 }
 0x6c3   : > { %2571 = vperm.xlu2 %3701, %v3866_v21  }
 0x6c4   : > { %3867 = vrcp.f32 %v4994_v42  ;;  %v2414_v46 = vpop.f32.mrf.mxu1 }
 0x6c5   : > { %v2502_v10 = vpop.permute.xlu1 %2501 }
 0x6c6   : > { %v2639_v49 = vmul.f32 %v2502_v10, %v4910_v27 }
 0x6c8   : > { %v2668_v50 = vpack.c.bf16 %v2639_v49, %v2638_v13 }
 0x6c9   : > { %v2325_v4 = vpop.f32.mrf.mxu2 }
 0x6ca   : > { %v3868_v53 = vpop.eup %3867  ;;  %v4999_v1 = vadd.f32 %v2414_v46, %v2325_v4  ;;  %2768 = vmatmul.bf16.vlgmr.msrb.gmra.mxu3 %v2668_v50 }
 0x6cb   : > { %2576 = vperm.xlu1 %3700, %v3868_v53  }
 0x6cc   : > { %3869 = vrcp.f32 %v4999_v1  ;;  %v2417_v51 = vpop.f32.mrf.mxu1 }
 0x6d1   : > { %v2328_v23 = vpop.f32.mrf.mxu2 }
 0x6d2   : > { %v3870_v56 = vpop.eup %3869  ;;  %v5002_v54 = vadd.f32 %v2417_v51, %v2328_v23 }
 0x6d3   : > { %2581 = vperm.xlu0 %3699, %v3870_v56  }
 0x6d4   : > { %3871 = vrcp.f32 %v5002_v54  ;;  %v2419_v43 = vpop.f32.mrf.mxu1 }
 0x6d5   : > { %v2512_v27 = vpop.permute.xlu1 %2511  ;;  %v2527_v15 = vpop.permute.xlu2 %2526 }
 0x6d6   : > { %v2641_v25 = vmul.f32 %v2512_v27, %v4920_v9  ;;  %v2644_v22 = vmul.f32 %v2527_v15, %v4939_v16 }
 0x6d8   : > { %v2669_v18 = vpack.c.bf16 %v2641_v25, %v2640_v11 }
 0x6d9   : > { %v2330_v37 = vpop.f32.mrf.mxu2 }
 0x6da   : > { %v3872_v36 = vpop.eup %3871  ;;  %v5007_v6 = vadd.f32 %v2419_v43, %v2330_v37  ;;  %2773 = vmatmul.bf16.gmra.mxu3 %v2669_v18 }
 0x6db   : > { %2586 = vperm.xlu2 %3701, %v3872_v36  }
 0x6dc   : > { %3873 = vrcp.f32 %v5007_v6  ;;  %v2422_v55 = vpop.f32.mrf.mxu1 }
 0x6dd   : > { %v2517_v28 = vpop.permute.xlu1 %2516 }
 0x6de   : > { %v2642_v61 = vmul.f32 %v2517_v28, %v4926_v31 }
 0x6e1   : > { %v2333_v20 = vpop.f32.mrf.mxu2 }
 0x6e2   : > { %v3874_v33 = vpop.eup %3873  ;;  %v5010_v48 = vadd.f32 %v2422_v55, %v2333_v20 }
 0x6e3   : > { %2591 = vperm.xlu1 %3700, %v3874_v33  }
 0x6e4   : > { %3875 = vrcp.f32 %v5010_v48  ;;  %v2424_v45 = vpop.f32.mrf.mxu1 }
 0x6e5   : > { %v2522_v9 = vpop.permute.xlu0 %2521 }
 0x6e6   : > { %v2643_v52 = vmul.f32 %v2522_v9, %v4930_v17 }
 0x6e8   : > { %v2670_v44 = vpack.c.bf16 %v2643_v52, %v2642_v61 }
 0x6e9   : > { %v2335_v8 = vpop.f32.mrf.mxu2 }
 0x6ea   : > { %v3876_v32 = vpop.eup %3875  ;;  %v5015_v59 = vadd.f32 %v2424_v45, %v2335_v8  ;;  %2778 = vmatmul.bf16.gmra.mxu3 %v2670_v44 }
 0x6eb   : > { %2596 = vperm.xlu0 %3699, %v3876_v32  }
 0x6ec   : > { %3877 = vrcp.f32 %v5015_v59  ;;  %v2427_v38 = vpop.f32.mrf.mxu1 }
 0x6ed   : > { %v2542_v16 = vpop.permute.xlu2 %2541 }
 0x6ee   : > { %v2647_v50 = vmul.f32 %v2542_v16, %v4952_v58 }
 0x6f1   : > { %v2338_v7 = vpop.f32.mrf.mxu2 }
 0x6f2   : > { %v3878_v5 = vpop.eup %3877  ;;  %v5018_v60 = vadd.f32 %v2427_v38, %v2338_v7 }
 0x6f3   : > { %2601 = vperm.xlu2 %3701, %v3878_v5  }
 0x6f4   : > { %3879 = vrcp.f32 %v5018_v60  ;;  %v2429_v31 = vpop.f32.mrf.mxu1 }
 0x6f5   : > { %v2532_v17 = vpop.permute.xlu1 %2531 }
 0x6f6   : > { %v2645_v12 = vmul.f32 %v2532_v17, %v4943_v62 }
 0x6f8   : > { %v2671_v3 = vpack.c.bf16 %v2645_v12, %v2644_v22  ;;  %v5055_v12 = vld [vmem:[%s5222_s7] ss:$0 sm:$0xff] }
 0x6f9   : > { %v2340_v26 = vpop.f32.mrf.mxu2 }
 0x6fa   : > { %v3880_v39 = vpop.eup %3879  ;;  %v5023_v40 = vadd.f32 %v2429_v31, %v2340_v26  ;;  %2783 = vmatmul.bf16.gmra.mxu3 %v2671_v3  ;;  %v1386_v3 = vld [vmem:[%s4009_s20 + $0x20] sm:$0xff] }
 0x6fb   : > { %2606 = vperm.xlu1 %3700, %v3880_v39   ;;  %v1387_v39 = vld [vmem:[%s4009_s20 + $0x28] sm:$0xff] }
 0x6fc   : > { %3881 = vrcp.f32 %v5023_v40  ;;  %v2432_v21 = vpop.f32.mrf.mxu1 }
 0x6fd   : > { %v2537_v34 = vpop.permute.xlu0 %2536  ;;  %3883 = vrcp.f32 %v4898_v57 }
 0x6fe   : > { %v2646_v62 = vmul.f32 %v2537_v34, %v4949_v29 }
 0x700   : > { %v2672_v4 = vpack.c.bf16 %v2647_v50, %v2646_v62 }
 0x701   : > { %v2343_v46 = vpop.f32.mrf.mxu2 }
 0x702   : > { %v3882_v10 = vpop.eup %3881  ;;  %v5026_v13 = vadd.f32 %v2432_v21, %v2343_v46 }
 0x703   : > { %2611 = vperm.xlu0 %3699, %v3882_v10   ;;  %v3884_v53 = vpop.eup %3883 }
 0x704   : > { %3885 = vrcp.f32 %v5026_v13  ;;  %v2434_v49 = vpop.f32.mrf.mxu1 }
 0x705   : > { %3887 = vrcp.f32 %v4901_v19  ;;  %v2557_v52 = vpop.permute.xlu2 %2556 }
 0x709   : > { %v2345_v51 = vpop.f32.mrf.mxu2 }
 0x70a   : > { %v3886_v23 = vpop.eup %3885  ;;  %v5032_v56 = vadd.f32 %v2434_v49, %v2345_v51  ;;  %2788 = vmatmul.bf16.gmra.mxu3 %v2672_v4  ;;  %v1388_v49 = vld [vmem:[%s4009_s20 + $0x30] sm:$0xff] }
 0x70b   : > { %2486 = vperm.xlu0 %3699, %v3884_v53   ;;  %2616 = vperm.xlu2 %3701, %v3886_v23   ;;  %v3888_v29 = vpop.eup %3887  ;;  %v1389_v23 = vld [vmem:[%s4009_s20 + $0x38] sm:$0xff] }
 0x70c   : > { %3889 = vrcp.f32 %v5032_v56  ;;  %v2437_v63 = vpop.f32.mrf.mxu1 }
 0x70d   : > { %3891 = vrcp.f32 %v4890_v24  ;;  %v2547_v58 = vpop.permute.xlu1 %2546 }
 0x70e   : > { %v2648_v18 = vmul.f32 %v2547_v58, %v4958_v41 }
 0x711   : > { %v2348_v43 = vpop.f32.mrf.mxu2 }
 0x712   : > { %v3890_v27 = vpop.eup %3889  ;;  %v5036_v11 = vadd.f32 %v2437_v63, %v2348_v43 }
 0x713   : > { %2621 = vperm.xlu1 %3700, %v3890_v27   ;;  %2491 = vperm.xlu2 %3701, %v3888_v29   ;;  %v3892_v55 = vpop.eup %3891 }
 0x714   : > { %3893 = vrcp.f32 %v5036_v11  ;;  %v2439_v20 = vpop.f32.mrf.mxu1 }
 0x715   : > { %v2552_v25 = vpop.permute.xlu0 %2551  ;;  %3895 = vrcp.f32 %v4892_v0 }
 0x716   : > { %v2649_v37 = vmul.f32 %v2552_v25, %v4967_v47  ;;  %v2650_v47 = vmul.f32 %v2557_v52, %v4976_v30  ;;  %v1390_v25 = vld [vmem:[%s4009_s20 + $0x40] sm:$0xff] }
 0x718   : > { %v2673_v36 = vpack.c.bf16 %v2649_v37, %v2648_v18 }
 0x719   : > { %v2350_v33 = vpop.f32.mrf.mxu2 }
 0x71a   : > { %v3894_v28 = vpop.eup %3893  ;;  %v5042_v45 = vadd.f32 %v2439_v20, %v2350_v33  ;;  %2793 = vmatmul.bf16.gmra.mxu3 %v2673_v36 }
 0x71b   : > { %2476 = vperm.xlu2 %3701, %v3892_v55   ;;  %2626 = vperm.xlu1 %3700, %v3894_v28   ;;  %v3896_v9 = vpop.eup %3895 }
 0x71c   : > { %3897 = vrcp.f32 %v5042_v45 }
 0x71d   : > { %v2572_v38 = vpop.permute.xlu2 %2571 }
 0x71e   : > { %v2653_v5 = vmul.f32 %v2572_v38, %v4991_v35 }
 0x722   : > { %v3898_v61 = vpop.eup %3897 }
 0x723   : > { %2481 = vperm.xlu1 %3700, %v3896_v9   ;;  %2631 = vperm.xlu0 %3699, %v3898_v61  }
 0x725   : > { %v2562_v41 = vpop.permute.xlu1 %2561 }
 0x726   : > { %v2651_v44 = vmul.f32 %v2562_v41, %v4985_v2 }
 0x728   : > { %v2674_v8 = vpack.c.bf16 %v2651_v44, %v2650_v47 }
 0x72a   : > { %2798 = vmatmul.bf16.gmra.mxu3 %v2674_v8  ;;  %v1392_v8 = vld [vmem:[%s4009_s20 + $0x50] sm:$0xff] }
 0x72d   : > { %v2567_v32 = vpop.permute.xlu0 %2566 }
 0x72e   : > { %v2652_v7 = vmul.f32 %v2567_v32, %v4988_v14 }
 0x730   : > { %v2675_v15 = vpack.c.bf16 %v2653_v5, %v2652_v7 }
 0x73a   : > { %2803 = vmatmul.bf16.gmra.mxu3 %v2675_v15 }
 0x73d   : > { %v2577_v31 = vpop.permute.xlu1 %2576 }
 0x73e   : > { %v2654_v22 = vmul.f32 %v2577_v31, %v4994_v42  ;;  %v1393_v31 = vld [vmem:[%s4009_s20 + $0x58] sm:$0xff] }
 0x745   : > { %v2582_v17 = vpop.permute.xlu0 %2581 }
 0x746   : > { %v2655_v30 = vmul.f32 %v2582_v17, %v4999_v1  ;;  %v2587_v1 = vpop.permute.xlu2 %2586 }
 0x747   : > { %v2656_v34 = vmul.f32 %v2587_v1, %v5002_v54 }
 0x748   : > { %v2676_v2 = vpack.c.bf16 %v2655_v30, %v2654_v22 }
 0x74a   : > { %2808 = vmatmul.bf16.gmra.mxu3 %v2676_v2 }
 0x74d   : > { %v2769_v14 = vpop.f32.mrf.mxu3 }
 0x74e   : > { %v2770_v35 = vadd.f32 %v5055_v12, %v2769_v14  ;;  %v2602_v54 = vpop.permute.xlu2 %2601  ;;  %v1394_v14 = vld [vmem:[%s4009_s20 + $0x60] sm:$0xff] }
 0x74f   : > { %v2659_v29 = vmul.f32 %v2602_v54, %v5015_v59  ;;  %v1391_v59 = vld [vmem:[%s4009_s20 + $0x48] sm:$0xff] }
 0x750   : > { %v2843_v42 = vadd.f32 %v2770_v35, %v1386_v3 }
 0x752   : > { %2876 = vst.msk [vmem:[%s5064_s23 + $0x20] sm:$0xff] %vm370_vm0, %v2843_v42 }
 0x755   : > { %v2592_v26 = vpop.permute.xlu1 %2591  ;;  %v2771_v21 = vpop.f32.mrf.mxu3 }
 0x756   : > { %v2657_v46 = vmul.f32 %v2592_v26, %v5007_v6  ;;  %v2772_v10 = vadd.f32 %v5055_v12, %v2771_v21 }
 0x758   : > { %v2677_v16 = vpack.c.bf16 %v2657_v46, %v2656_v34  ;;  %v2844_v62 = vadd.f32 %v2772_v10, %v1387_v39  ;;  %v1395_v10 = vld [vmem:[%s4009_s20 + $0x68] sm:$0xff] }
 0x75a   : > { %2877 = vst.msk [vmem:[%s5064_s23 + $0x28] sm:$0xff] %vm370_vm0, %v2844_v62  ;;  %2813 = vmatmul.bf16.gmra.mxu3 %v2677_v16 }
 0x75d   : > { %v2774_v50 = vpop.f32.mrf.mxu3  ;;  %v2597_v51 = vpop.permute.xlu0 %2596 }
 0x75e   : > { %v2775_v4 = vadd.f32 %v5055_v12, %v2774_v50  ;;  %v2658_v6 = vmul.f32 %v2597_v51, %v5010_v48 }
 0x760   : > { %v2845_v53 = vadd.f32 %v2775_v4, %v1388_v49  ;;  %v2678_v27 = vpack.c.bf16 %v2659_v29, %v2658_v6 }
 0x762   : > { %2878 = vst.msk [vmem:[%s5064_s23 + $0x30] sm:$0xff] %vm370_vm0, %v2845_v53  ;;  %v1397_v53 = vld [vmem:[%s4009_s20 + $0x78] sm:$0xff] }
 0x765   : > { %v2776_v63 = vpop.f32.mrf.mxu3  ;;  %v2617_v48 = vpop.permute.xlu2 %2616 }
 0x766   : > { %v2777_v43 = vadd.f32 %v5055_v12, %v2776_v63  ;;  %v2662_v22 = vmul.f32 %v2617_v48, %v5026_v13 }
 0x768   : > { %v2846_v58 = vadd.f32 %v2777_v43, %v1389_v23  ;;  %v1398_v23 = vld [vmem:[%s4009_s20 + $0x80] sm:$0xff] }
 0x76a   : > { %2879 = vst.msk [vmem:[%s5064_s23 + $0x38] sm:$0xff] %vm370_vm0, %v2846_v58  ;;  %2818 = vmatmul.bf16.gmra.mxu3 %v2678_v27  ;;  %v1399_v27 = vld [vmem:[%s4009_s20 + $0x88] sm:$0xff] }
 0x76d   : > { %v2779_v18 = vpop.f32.mrf.mxu3  ;;  %v2607_v55 = vpop.permute.xlu1 %2606 }
 0x76e   : > { %v2780_v37 = vadd.f32 %v5055_v12, %v2779_v18  ;;  %v2660_v28 = vmul.f32 %v2607_v55, %v5018_v60  ;;  %v2492_v47 = vpop.permute.xlu2 %2491 }
 0x76f   : > { %v2637_v38 = vmul.f32 %v2492_v47, %v4901_v19  ;;  %v1403_v47 = vld [vmem:[%s4009_s20 + $0xa8] sm:$0xff] }
 0x770   : > { %v2847_v36 = vadd.f32 %v2780_v37, %v1390_v25  ;;  %v1400_v37 = vld [vmem:[%s4009_s20 + $0x90] sm:$0xff] }
 0x772   : > { %2880 = vst.msk [vmem:[%s5064_s23 + $0x40] sm:$0xff] %vm370_vm0, %v2847_v36 }
 0x775   : > { %v2612_v20 = vpop.permute.xlu0 %2611  ;;  %v2781_v33 = vpop.f32.mrf.mxu3 }
 0x776   : > { %v2661_v9 = vmul.f32 %v2612_v20, %v5023_v40  ;;  %v2782_v61 = vadd.f32 %v5055_v12, %v2781_v33  ;;  %v2477_v13 = vpop.permute.xlu2 %2476  ;;  %v1401_v20 = vld [vmem:[%s4009_s20 + $0x98] sm:$0xff] }
 0x777   : > { %v2634_v39 = vmul.f32 %v2477_v13, %v4890_v24  ;;  %v1396_v24 = vld [vmem:[%s4009_s20 + $0x70] sm:$0xff] }
 0x778   : > { %v2679_v52 = vpack.c.bf16 %v2661_v9, %v2660_v28  ;;  %v2848_v41 = vadd.f32 %v2782_v61, %v1391_v59  ;;  %v1402_v9 = vld [vmem:[%s4009_s20 + $0xa0] sm:$0xff] }
 0x77a   : > { %2881 = vst.msk [vmem:[%s5064_s23 + $0x48] sm:$0xff] %vm370_vm0, %v2848_v41  ;;  %2823 = vmatmul.bf16.gmra.mxu3 %v2679_v52 }
 0x77d   : > { %v2487_v44 = vpop.permute.xlu0 %2486  ;;  %v2784_v32 = vpop.f32.mrf.mxu3 }
 0x77e   : > { %v2636_v60 = vmul.f32 %v2487_v44, %v4898_v57  ;;  %v2785_v7 = vadd.f32 %v5055_v12, %v2784_v32 }
 0x780   : > { %v2667_v40 = vpack.c.bf16 %v2637_v38, %v2636_v60  ;;  %v2849_v5 = vadd.f32 %v2785_v7, %v1392_v8  ;;  %v1404_v38 = vld [vmem:[%s4009_s20 + $0xb0] sm:$0xff] }
 0x782   : > { %2882 = vst.msk [vmem:[%s5064_s23 + $0x50] sm:$0xff] %vm370_vm0, %v2849_v5  ;;  %2763 = vmatmul.bf16.vlgmr.msrb.gmra.mxu2 %v2667_v40  ;;  %v1405_v5 = vld [vmem:[%s4009_s20 + $0xb8] sm:$0xff] }
 0x785   : > { %v2622_v15 = vpop.permute.xlu1 %2621  ;;  %v2786_v17 = vpop.f32.mrf.mxu3 }
 0x786   : > { %v2663_v30 = vmul.f32 %v2622_v15, %v5032_v56  ;;  %v2787_v19 = vadd.f32 %v5055_v12, %v2786_v17 }
 0x788   : > { %v2680_v2 = vpack.c.bf16 %v2663_v30, %v2662_v22  ;;  %v2850_v57 = vadd.f32 %v2787_v19, %v1393_v31  ;;  %v1406_v22 = vld [vmem:[%s4009_s20 + $0xc0] sm:$0xff] }
 0x78a   : > { %2883 = vst.msk [vmem:[%s5064_s23 + $0x58] sm:$0xff] %vm370_vm0, %v2850_v57  ;;  %2828 = vmatmul.bf16.gmra.mxu3 %v2680_v2  ;;  %v1407_v57 = vld [vmem:[%s4009_s20 + $0xc8] sm:$0xff] }
 0x78d   : > { %v2627_v3 = vpop.permute.xlu1 %2626  ;;  %v2789_v35 = vpop.f32.mrf.mxu3 }
 0x78e   : > { %v2790_v42 = vadd.f32 %v5055_v12, %v2789_v35  ;;  %v2664_v21 = vmul.f32 %v2627_v3, %v5036_v11 }
 0x790   : > { %v2851_v1 = vadd.f32 %v2790_v42, %v1394_v14  ;;  %v1408_v42 = vld [vmem:[%s4009_s20 + $0xd0] sm:$0xff] }
 0x792   : > { %2884 = vst.msk [vmem:[%s5064_s23 + $0x60] sm:$0xff] %vm370_vm0, %v2851_v1 }
 0x795   : > { %v2482_v56 = vpop.permute.xlu1 %2481  ;;  %v2632_v26 = vpop.permute.xlu0 %2631 }
 0x796   : > { %v2635_v34 = vmul.f32 %v2482_v56, %v4892_v0  ;;  %v2665_v46 = vmul.f32 %v2632_v26, %v5042_v45  ;;  %v2791_v16 = vpop.f32.mrf.mxu3  ;;  %v1384_v26 = vld [vmem:[%s4009_s20 + $0x10] sm:$0xff] }
 0x797   : > { %v2792_v62 = vadd.f32 %v5055_v12, %v2791_v16 }
 0x798   : > { %v2666_v49 = vpack.c.bf16 %v2635_v34, %v2634_v39  ;;  %v2681_v50 = vpack.c.bf16 %v2665_v46, %v2664_v21  ;;  %v1409_v34 = vld [vmem:[%s4009_s20 + $0xd8] sm:$0xff] }
 0x799   : > { %v2852_v4 = vadd.f32 %v2792_v62, %v1395_v10 }
 0x79a   : > { %2758 = vmatmul.bf16.vlgmr.msrb.gmra.mxu0 %v2666_v49  ;;  %2833 = vmatmul.bf16.gmra.mxu3 %v2681_v50  ;;  %v1385_v49 = vld [vmem:[%s4009_s20 + $0x18] sm:$0xff] }
 0x79b   : > { %2885 = vst.msk [vmem:[%s5064_s23 + $0x68] sm:$0xff] %vm370_vm0, %v2852_v4 }
 0x79e   : > { %v2794_v0 = vpop.f32.mrf.mxu3 }
 0x79f   : > { %v2795_v11 = vadd.f32 %v5055_v12, %v2794_v0 }
 0x7a1   : > { %v2853_v45 = vadd.f32 %v2795_v11, %v1396_v24  ;;  %v1410_v24 = vld [vmem:[%s4009_s20 + $0xe0] sm:$0xff] }
 0x7a3   : > { %2886 = vst.msk [vmem:[%s5064_s23 + $0x70] sm:$0xff] %vm370_vm0, %v2853_v45 }
 0x7a6   : > { %v2796_v51 = vpop.f32.mrf.mxu3 }
 0x7a7   : > { %v2797_v54 = vadd.f32 %v5055_v12, %v2796_v51  ;;  %v1411_v51 = vld [vmem:[%s4009_s20 + $0xe8] sm:$0xff] }
 0x7a9   : > { %v2854_v6 = vadd.f32 %v2797_v54, %v1397_v53 }
 0x7ab   : > { %2887 = vst.msk [vmem:[%s5064_s23 + $0x78] sm:$0xff] %vm370_vm0, %v2854_v6 }
 0x7ae   : > { %v2799_v63 = vpop.f32.mrf.mxu3 }
 0x7af   : > { %v2800_v29 = vadd.f32 %v5055_v12, %v2799_v63 }
 0x7b1   : > { %v2855_v43 = vadd.f32 %v2800_v29, %v1398_v23  ;;  %v1382_v23 = vld [vmem:[%s4009_s20] sm:$0xff] }
 0x7b3   : > { %2888 = vst.msk [vmem:[%s5064_s23 + $0x80] sm:$0xff] %vm370_vm0, %v2855_v43 }
 0x7b6   : > { %v2801_v58 = vpop.f32.mrf.mxu3 }
 0x7b7   : > { %v2802_v25 = vadd.f32 %v5055_v12, %v2801_v58  ;;  %v1412_v58 = vld [vmem:[%s4009_s20 + $0xf0] sm:$0xff] }
 0x7b9   : > { %v2856_v18 = vadd.f32 %v2802_v25, %v1399_v27 }
 0x7bb   : > { %2889 = vst.msk [vmem:[%s5064_s23 + $0x88] sm:$0xff] %vm370_vm0, %v2856_v18 }
 0x7be   : > { %v2804_v36 = vpop.f32.mrf.mxu3 }
 0x7bf   : > { %v2805_v48 = vadd.f32 %v5055_v12, %v2804_v36 }
 0x7c1   : > { %v2857_v55 = vadd.f32 %v2805_v48, %v1400_v37  ;;  %v1383_v37 = vld [vmem:[%s4009_s20 + $0x8] sm:$0xff] }
 0x7c3   : > { %2890 = vst.msk [vmem:[%s5064_s23 + $0x90] sm:$0xff] %vm370_vm0, %v2857_v55 }
 0x7c6   : > { %v2806_v59 = vpop.f32.mrf.mxu3 }
 0x7c7   : > { %v2807_v33 = vadd.f32 %v5055_v12, %v2806_v59  ;;  %v1413_v59 = vld [vmem:[%s4009_s20 + $0xf8] sm:$0xff] }
 0x7c9   : > { %v2858_v28 = vadd.f32 %v2807_v33, %v1401_v20 }
 0x7cb   : > { %2891 = vst.msk [vmem:[%s5064_s23 + $0x98] sm:$0xff] %vm370_vm0, %v2858_v28 }
 0x7ce   : > { %v2809_v61 = vpop.f32.mrf.mxu3 }
 0x7cf   : > { %v2810_v52 = vadd.f32 %v5055_v12, %v2809_v61 }
 0x7d1   : > { %v2859_v41 = vadd.f32 %v2810_v52, %v1402_v9 }
 0x7d3   : > { %2892 = vst.msk [vmem:[%s5064_s23 + $0xa0] sm:$0xff] %vm370_vm0, %v2859_v41 }
 0x7d6   : > { %v2811_v44 = vpop.f32.mrf.mxu3 }
 0x7d7   : > { %v2812_v8 = vadd.f32 %v5055_v12, %v2811_v44 }
 0x7d9   : > { %v2860_v32 = vadd.f32 %v2812_v8, %v1403_v47 }
 0x7db   : > { %2893 = vst.msk [vmem:[%s5064_s23 + $0xa8] sm:$0xff] %vm370_vm0, %v2860_v32 }
 0x7de   : > { %v2814_v60 = vpop.f32.mrf.mxu3 }
 0x7df   : > { %v2815_v7 = vadd.f32 %v5055_v12, %v2814_v60 }
 0x7e1   : > { %v2861_v40 = vadd.f32 %v2815_v7, %v1404_v38 }
 0x7e3   : > { %2894 = vst.msk [vmem:[%s5064_s23 + $0xb0] sm:$0xff] %vm370_vm0, %v2861_v40 }
 0x7e6   : > { %v2816_v15 = vpop.f32.mrf.mxu3 }
 0x7e7   : > { %v2817_v31 = vadd.f32 %v5055_v12, %v2816_v15 }
 0x7e9   : > { %v2862_v17 = vadd.f32 %v2817_v31, %v1405_v5 }
 0x7eb   : > { %2895 = vst.msk [vmem:[%s5064_s23 + $0xb8] sm:$0xff] %vm370_vm0, %v2862_v17 }
 0x7ee   : > { %v2819_v30 = vpop.f32.mrf.mxu3 }
 0x7ef   : > { %v2820_v19 = vadd.f32 %v5055_v12, %v2819_v30 }
 0x7f1   : > { %v2863_v2 = vadd.f32 %v2820_v19, %v1406_v22 }
 0x7f3   : > { %2896 = vst.msk [vmem:[%s5064_s23 + $0xc0] sm:$0xff] %vm370_vm0, %v2863_v2 }
 0x7f6   : > { %v2821_v3 = vpop.f32.mrf.mxu3 }
 0x7f7   : > { %v2822_v14 = vadd.f32 %v5055_v12, %v2821_v3 }
 0x7f9   : > { %v2864_v35 = vadd.f32 %v2822_v14, %v1407_v57 }
 0x7fb   : > { %2897 = vst.msk [vmem:[%s5064_s23 + $0xc8] sm:$0xff] %vm370_vm0, %v2864_v35 }
 0x7fe   : > { %v2824_v1 = vpop.f32.mrf.mxu3 }
 0x7ff   : > { %v2825_v13 = vadd.f32 %v5055_v12, %v2824_v1 }
 0x801   : > { %v2865_v56 = vadd.f32 %v2825_v13, %v1408_v42 }
 0x803   : > { %2898 = vst.msk [vmem:[%s5064_s23 + $0xd0] sm:$0xff] %vm370_vm0, %v2865_v56 }
 0x805   : > { %v2764_v39 = vpop.f32.mrf.mxu2 }
 0x806   : > { %v2765_v21 = vadd.f32 %v5055_v12, %v2764_v39  ;;  %v2826_v46 = vpop.f32.mrf.mxu3 }
 0x807   : > { %v2827_v10 = vadd.f32 %v5055_v12, %v2826_v46 }
 0x808   : > { %v2841_v16 = vadd.f32 %v2765_v21, %v1384_v26 }
 0x809   : > { %v2866_v62 = vadd.f32 %v2827_v10, %v1409_v34 }
 0x80a   : > { %2874 = vst.msk [vmem:[%s5064_s23 + $0x10] sm:$0xff] %vm370_vm0, %v2841_v16 }
 0x80b   : > { %2899 = vst.msk [vmem:[%s5064_s23 + $0xd8] sm:$0xff] %vm370_vm0, %v2866_v62 }
 0x80d   : > { %v2766_v50 = vpop.f32.mrf.mxu2 }
 0x80e   : > { %v2767_v4 = vadd.f32 %v5055_v12, %v2766_v50  ;;  %v2829_v0 = vpop.f32.mrf.mxu3 }
 0x80f   : > { %v2830_v11 = vadd.f32 %v5055_v12, %v2829_v0 }
 0x810   : > { %v2842_v45 = vadd.f32 %v2767_v4, %v1385_v49 }
 0x811   : > { %v2867_v53 = vadd.f32 %v2830_v11, %v1410_v24 }
 0x812   : > { %2875 = vst.msk [vmem:[%s5064_s23 + $0x18] sm:$0xff] %vm370_vm0, %v2842_v45 }
 0x813   : > { %2900 = vst.msk [vmem:[%s5064_s23 + $0xe0] sm:$0xff] %vm370_vm0, %v2867_v53 }
 0x816   : > { %v2831_v54 = vpop.f32.mrf.mxu3 }
 0x817   : > { %v2832_v6 = vadd.f32 %v5055_v12, %v2831_v54  ;;  %v2759_v63 = vpop.f32.mrf.mxu0 }
 0x818   : > { %v2760_v29 = vadd.f32 %v5055_v12, %v2759_v63 }
 0x819   : > { %v2868_v43 = vadd.f32 %v2832_v6, %v1411_v51 }
 0x81a   : > { %v2839_v27 = vadd.f32 %v2760_v29, %v1382_v23 }
 0x81b   : > { %2901 = vst.msk [vmem:[%s5064_s23 + $0xe8] sm:$0xff] %vm370_vm0, %v2868_v43 }
 0x81c   : > { %2872 = vst.msk [vmem:[%s5064_s23] sm:$0xff] %vm370_vm0, %v2839_v27 }
 0x81e   : > { %v2834_v25 = vpop.f32.mrf.mxu3 }
 0x81f   : > { %v2835_v18 = vadd.f32 %v5055_v12, %v2834_v25  ;;  %v2761_v36 = vpop.f32.mrf.mxu0 }
 0x820   : > { %v2762_v48 = vadd.f32 %v5055_v12, %v2761_v36 }
 0x821   : > { %v2869_v55 = vadd.f32 %v2835_v18, %v1412_v58 }
 0x822   : > { %v2840_v20 = vadd.f32 %v2762_v48, %v1383_v37 }
 0x823   : > { %2902 = vst.msk [vmem:[%s5064_s23 + $0xf0] sm:$0xff] %vm370_vm0, %v2869_v55 }
 0x824   : > { %2873 = vst.msk [vmem:[%s5064_s23 + $0x8] sm:$0xff] %vm370_vm0, %v2840_v20 }
 0x826   : > { %v2836_v33 = vpop.f32.mrf.mxu3 }
 0x827   : > { %v2837_v28 = vadd.f32 %v5055_v12, %v2836_v33 }
 0x829   : > { %v2870_v9 = vadd.f32 %v2837_v28, %v1413_v59 }
 0x82b   : > { %2903 = vst.msk [vmem:[%s5064_s23 + $0xf8] sm:$0xff] %vm370_vm0, %v2870_v9 }
 0x82c PF: > { %s18_s29 = sadd.s32 1, %s3921_s29   ;;  %s5224_s27 = smov %s3917_s28 }
 0x82d   : > { %p15_p5 = scmp.ge.s32.totalorder %s18_s29, 4   ;;  %s5225_s28 = smov %s5227_s30 }
 0x82f   :  { %17 = sbr.rel (!%p15_p5) target bundleno = 2 (0x2), region = 88 }

</bundles_post_ra>
